<compile_context>
chip_gen: v6e
topology: v6e:2x2x1
jax: 0.10.0
libtpu: 0.0.40
codegen_flags: <defaults>
</compile_context>

<pallas_src>
import jax
import jax.numpy as jnp
from jax import lax
from jax.experimental import pallas as pl
from jax.experimental.pallas import tpu as pltpu

LN10 = 2.302585092994046


def _round_up(x, m):
    return ((x + m - 1) // m) * m


def _make_solver_kernel(n, k, R, C, unroll):
    """Builds the kernel body. n features, k RHS columns, (R, C) padded layout."""

    def _finalize(A, c_ref, lane128):
        # Compact solution columns [n, n+k) into lanes [0, k): one XLU lane-rotate,
        # then a lane-dense (R, 128) store (unmasked vst).
        sol = pltpu.roll(A, C - n, axis=1)[:, :128]
        c_ref[...] = jnp.where(lane128 < k, sol, 0.0)

    if unroll:
        # ---- small-n path: register-carried A, fully unrolled (n is static) ----
        def kernel(ab_ref, regp_ref, aug_ref, c_ref):
            alpha = ab_ref[0]
            beta = ab_ref[1]

            lane = lax.broadcasted_iota(jnp.int32, (1, C), 1)
            sub_r = lax.broadcasted_iota(jnp.int32, (R, 1), 0)
            lane128 = lax.broadcasted_iota(jnp.int32, (1, 128), 1)

            # Per-feature regularizer, one fused EUP exp.  Padded lanes (incl. RHS
            # columns) have reg_base == 0 -> reg == 0 there.
            reg = jnp.exp(alpha * LN10 + beta * regp_ref[0:1, :]) * regp_ref[1:2, :]

            # Augmented working matrix [symm + diag(reg) | RHS | 0-pad].
            A = aug_ref[...] + jnp.where(sub_r == lane, reg, 0.0)

            for i in range(n):  # n is a trace-time constant
                row_i = A[i:i + 1, :]                                         # static sublane slice
                # Pivot stays a (1,1) vector: no sreg round trip in the chain.
                pivot = jnp.sum(jnp.where(lane == i, row_i, 0.0),
                                axis=1, keepdims=True)                        # (1, 1)
                row_n = row_i / pivot                                         # vector divide
                # Pivot column: VPU select + XLU lane-reduce (exact, no MXU).
                col = jnp.sum(jnp.where(lane == i, A, 0.0),
                              axis=1, keepdims=True)                          # (R, 1)
                # Fold pivot-row normalisation into the single rank-1 update.
                factor = col - (sub_r == i).astype(jnp.float32)
                A = A - factor * row_n

            _finalize(A, c_ref, lane128)

        return kernel

    # ---- large-n path: A lives in a VMEM scratch ref, updated in place ----
    def kernel(ab_ref, regp_ref, aug_ref, c_ref, A_ref):
        alpha = ab_ref[0]
        beta = ab_ref[1]

        lane = lax.broadcasted_iota(jnp.int32, (1, C), 1)
        sub_r = lax.broadcasted_iota(jnp.int32, (R, 1), 0)
        lane128 = lax.broadcasted_iota(jnp.int32, (1, 128), 1)

        reg = jnp.exp(alpha * LN10 + beta * regp_ref[0:1, :]) * regp_ref[1:2, :]
        A_ref[...] = aug_ref[...] + jnp.where(sub_r == lane, reg, 0.0)

        def gj_step(i, carry):
            row_i = A_ref[pl.ds(i, 1), :]                                     # plain vld
            pivot = jnp.sum(jnp.where(lane == i, row_i, 0.0),
                            axis=1, keepdims=True)                            # (1, 1)
            row_n = row_i / pivot
            A = A_ref[...]
            col = jnp.sum(jnp.where(lane == i, A, 0.0), axis=1, keepdims=True)
            factor = col - (sub_r == i).astype(jnp.float32)
            A_ref[...] = A - factor * row_n                                   # in-place update
            return carry

        # TODO(synk): for n in the hundreds+, replace this with 128/256-wide blocked
        # Cholesky panels + MXU trailing updates (and in-kernel assembly of the
        # augmented slab from HBM-resident symm/vec via pl.ANY + manual DMA).
        lax.fori_loop(0, n, gj_step, 0, unroll=(4 if n % 4 == 0 else 1))

        _finalize(A_ref[...], c_ref, lane128)

    return kernel


def solver_forward(alpha, beta, LE_reg_base, symm, vec):
    """JAX/Pallas equivalent of Solver.forward(symm, vec).

    vec may be (n,) (module semantics) or (n, k): extra RHS columns are packed into
    the free augmented lanes and solved in the same elimination pass.
    """
    n = symm.shape[0]
    vec = jnp.asarray(vec, jnp.float32)
    single_rhs = (vec.ndim == 1)
    V = vec.reshape(n, 1) if single_rhs else vec
    k = V.shape[1]
    assert k <= 128, "at most 128 packed RHS columns per call"

    reg_base = jnp.concatenate([jnp.asarray(t, jnp.float32).reshape(-1)
                                for t in LE_reg_base])
    nu_vec = jnp.concatenate([jnp.full((int(jnp.asarray(t).shape[0]),), float(nu), jnp.float32)
                              for nu, t in enumerate(LE_reg_base)])
    assert reg_base.shape[0] == n, "concat(LE_reg_base) must match symm.shape[0]"

    R = _round_up(n, 8)            # sublane-pad rows
    C = _round_up(n + k, 128)      # lane-pad cols; columns [n, n+k) hold the RHS

    # Host-side layout plumbing (cheap at small n).
    # TODO(synk): for large n, assemble the augmented slab inside the kernel from raw
    # symm/vec (pl.ANY + manual DMA) to avoid this extra n^2 HBM round trip.
    aug = jnp.zeros((R, C), jnp.float32)
    aug = aug.at[:n, :n].set(jnp.asarray(symm, jnp.float32))
    aug = aug.at[:n, n:n + k].set(V)

    # Packed regularizer parameters: row 0 = nu per feature, row 1 = reg_base.
    regp = jnp.zeros((2, C), jnp.float32)
    regp = regp.at[0, :n].set(nu_vec)
    regp = regp.at[1, :n].set(reg_base)

    unroll = n <= 127
    kernel = _make_solver_kernel(n, k, R, C, unroll)
    scratch = () if unroll else (pltpu.VMEM((R, C), jnp.float32),)

    # VMEM budget: working matrix exists once (unrolled, register/VMEM value) or twice
    # (input block + scratch).  Raise the scoped limit only when we outgrow defaults.
    n_working = 1 if unroll else 2
    vmem_need = (n_working * R * C + R * 128 + 2 * C) * 4
    cp_kwargs = {}
    if vmem_need > 30 * 1024 * 1024:
        cp_kwargs["vmem_limit_bytes"] = min(int(vmem_need * 1.25) + (1 << 20),
                                            120 * 1024 * 1024)

    out = pl.pallas_call(
        kernel,
        out_shape=jax.ShapeDtypeStruct((R, 128), jnp.float32),
        in_specs=[
            pl.BlockSpec(memory_space=pltpu.MemorySpace.SMEM),   # (alpha, beta)
            pl.BlockSpec(memory_space=pltpu.MemorySpace.VMEM),   # (2, C) nu / reg_base
            pl.BlockSpec(memory_space=pltpu.MemorySpace.VMEM),   # (R, C) [symm | RHS | 0]
        ],
        out_specs=pl.BlockSpec(memory_space=pltpu.MemorySpace.VMEM),
        scratch_shapes=scratch,
        compiler_params=pltpu.CompilerParams(**cp_kwargs),
    )(
        jnp.asarray([alpha, beta], jnp.float32),
        regp,
        aug,
    )

    c = out[:n, :k]
    return c[:, 0] if single_rhs else c


if __name__ == "__main__":
    key = jax.random.PRNGKey(0)
    k1, k2, k3, k4 = jax.random.split(key, 4)

    # Module hyper-parameters (small, deterministic).
    nu_max = 2
    sizes = [8, 12, 12]                 # per-nu feature counts
    n_feat = sum(sizes)                 # 32
    alpha_start = -1.0
    beta_start = 0.25

    # LE_reg_base: positive per-nu regularizer vectors (deterministic init).
    offs = [0] + list(jnp.cumsum(jnp.asarray(sizes)).tolist())
    base_all = 0.5 + jax.random.uniform(k3, (n_feat,), jnp.float32)
    LE_reg_base = [base_all[offs[i]:offs[i + 1]] for i in range(nu_max + 1)]

    # Inputs: symm is SPD (normal-equation style), vec is the rhs.
    M = jax.random.normal(k1, (n_feat, n_feat), jnp.float32)
    symm = M @ M.T + n_feat * jnp.eye(n_feat, dtype=jnp.float32)
    vec = jax.random.normal(k2, (n_feat,), jnp.float32)

    # --- single-RHS (module semantics) ---
    c = solver_forward(alpha_start, beta_start, LE_reg_base, symm, vec)
    c = jax.block_until_ready(c)

    reg_base = jnp.concatenate(LE_reg_base)
    nu_vec = jnp.concatenate([jnp.full((s,), float(nu), jnp.float32)
                              for nu, s in enumerate(sizes)])
    reg = (10.0 ** alpha_start) * jnp.exp(beta_start * nu_vec) * reg_base
    A_reg = symm + jnp.diag(reg)
    c_ref = jnp.linalg.solve(A_reg, vec)
    assert jnp.allclose(c, c_ref, rtol=5e-4, atol=1e-4), (c, c_ref)

    # --- multi-RHS packed into the free lanes (same kernel, k=3) ---
    V3 = jax.random.normal(k4, (n_feat, 3), jnp.float32)
    C3 = solver_forward(alpha_start, beta_start, LE_reg_base, symm, V3)
    C3 = jax.block_until_ready(C3)
    C3_ref = jnp.linalg.solve(A_reg, V3)
    assert jnp.allclose(C3, C3_ref, rtol=5e-4, atol=1e-4), (C3, C3_ref)

    print("KERNEL_OK")
</pallas_src>

<mosaic_0001>
module attributes {stable_mosaic.version = 11 : i64} {
  func.func @kernel(%arg0: memref<2xf32, #tpu.memory_space<smem>>, %arg1: memref<2x128xf32, #tpu.memory_space<vmem>>, %arg2: memref<32x128xf32, #tpu.memory_space<vmem>>, %arg3: memref<32x128xf32, #tpu.memory_space<vmem>>) attributes {dimension_semantics = [], scalar_prefetch = 0 : i64, scratch_operands = 0 : i64, tpu.core_type = #tpu.core_type<tc>} {
    %c0 = arith.constant 0 : index
    %0 = memref.load %arg0[%c0] : memref<2xf32, #tpu.memory_space<smem>>
    %c1 = arith.constant 1 : index
    %1 = memref.load %arg0[%c1] : memref<2xf32, #tpu.memory_space<smem>>
    %2 = tpu.iota {dimensions = array<i32: 1>} : vector<1x128xi32>
    %3 = tpu.iota {dimensions = array<i32: 0>} : vector<32x1xi32>
    %4 = tpu.iota {dimensions = array<i32: 1>} : vector<1x128xi32>
    %cst = arith.constant 2.30258512 : f32
    %5 = arith.mulf %0, %cst : f32
    %c0_0 = arith.constant 0 : index
    %c0_1 = arith.constant 0 : index
    %6 = vector.load %arg1[%c0_0, %c0_1] : memref<2x128xf32, #tpu.memory_space<vmem>>, vector<1x128xf32>
    %7 = vector.broadcast %1 : f32 to vector<1x128xf32>
    %8 = arith.mulf %7, %6 : vector<1x128xf32>
    %9 = vector.broadcast %5 : f32 to vector<1x128xf32>
    %10 = arith.addf %9, %8 : vector<1x128xf32>
    %11 = math.exp %10 : vector<1x128xf32>
    %c1_2 = arith.constant 1 : index
    %c0_3 = arith.constant 0 : index
    %12 = vector.load %arg1[%c1_2, %c0_3] : memref<2x128xf32, #tpu.memory_space<vmem>>, vector<1x128xf32>
    %13 = arith.mulf %11, %12 : vector<1x128xf32>
    %c0_4 = arith.constant 0 : index
    %c0_5 = arith.constant 0 : index
    %14 = vector.load %arg2[%c0_4, %c0_5] : memref<32x128xf32, #tpu.memory_space<vmem>>, vector<32x128xf32>
    %15 = vector.broadcast %3 : vector<32x1xi32> to vector<32x128xi32>
    %16 = vector.broadcast %2 : vector<1x128xi32> to vector<32x128xi32>
    %17 = arith.cmpi eq, %15, %16 : vector<32x128xi32>
    %cst_6 = arith.constant 0.000000e+00 : f32
    %18 = vector.shape_cast %13 : vector<1x128xf32> to vector<1x128xf32>
    %19 = vector.broadcast %18 : vector<1x128xf32> to vector<32x128xf32>
    %20 = vector.broadcast %cst_6 : f32 to vector<32x128xf32>
    %21 = arith.select %17, %19, %20 : vector<32x128xi1>, vector<32x128xf32>
    %22 = arith.addf %14, %21 : vector<32x128xf32>
    %23 = vector.extract_strided_slice %22 {offsets = [0, 0], sizes = [1, 128], strides = [1, 1]} : vector<32x128xf32> to vector<1x128xf32>
    %c0_i32 = arith.constant 0 : i32
    %24 = vector.broadcast %c0_i32 : i32 to vector<1x128xi32>
    %25 = arith.cmpi eq, %2, %24 : vector<1x128xi32>
    %cst_7 = arith.constant 0.000000e+00 : f32
    %26 = vector.broadcast %cst_7 : f32 to vector<1x128xf32>
    %27 = arith.select %25, %23, %26 : vector<1x128xi1>, vector<1x128xf32>
    %cst_8 = arith.constant dense<0.000000e+00> : vector<1xf32>
    %28 = vector.multi_reduction <add>, %27, %cst_8 [1] : vector<1x128xf32> to vector<1xf32>
    %29 = vector.shape_cast %28 : vector<1xf32> to vector<1x1xf32>
    %30 = vector.broadcast %29 : vector<1x1xf32> to vector<1x128xf32>
    %31 = arith.divf %23, %30 : vector<1x128xf32>
    %c0_i32_9 = arith.constant 0 : i32
    %32 = vector.broadcast %c0_i32_9 : i32 to vector<1x128xi32>
    %33 = arith.cmpi eq, %2, %32 : vector<1x128xi32>
    %cst_10 = arith.constant 0.000000e+00 : f32
    %34 = vector.shape_cast %33 : vector<1x128xi1> to vector<1x128xi1>
    %35 = vector.broadcast %34 : vector<1x128xi1> to vector<32x128xi1>
    %36 = vector.broadcast %cst_10 : f32 to vector<32x128xf32>
    %37 = arith.select %35, %22, %36 : vector<32x128xi1>, vector<32x128xf32>
    %cst_11 = arith.constant dense<0.000000e+00> : vector<32xf32>
    %38 = vector.multi_reduction <add>, %37, %cst_11 [1] : vector<32x128xf32> to vector<32xf32>
    %39 = vector.shape_cast %38 : vector<32xf32> to vector<32x1xf32>
    %c0_i32_12 = arith.constant 0 : i32
    %40 = vector.broadcast %c0_i32_12 : i32 to vector<32x1xi32>
    %41 = arith.cmpi eq, %3, %40 : vector<32x1xi32>
    %42 = arith.extui %41 : vector<32x1xi1> to vector<32x1xi32>
    %43 = arith.sitofp %42 : vector<32x1xi32> to vector<32x1xf32>
    %44 = arith.subf %39, %43 : vector<32x1xf32>
    %45 = vector.broadcast %44 : vector<32x1xf32> to vector<32x128xf32>
    %46 = vector.broadcast %31 : vector<1x128xf32> to vector<32x128xf32>
    %47 = arith.mulf %45, %46 : vector<32x128xf32>
    %48 = arith.subf %22, %47 : vector<32x128xf32>
    %49 = vector.extract_strided_slice %48 {offsets = [1, 0], sizes = [1, 128], strides = [1, 1]} : vector<32x128xf32> to vector<1x128xf32>
    %c1_i32 = arith.constant 1 : i32
    %50 = vector.broadcast %c1_i32 : i32 to vector<1x128xi32>
    %51 = arith.cmpi eq, %2, %50 : vector<1x128xi32>
    %cst_13 = arith.constant 0.000000e+00 : f32
    %52 = vector.broadcast %cst_13 : f32 to vector<1x128xf32>
    %53 = arith.select %51, %49, %52 : vector<1x128xi1>, vector<1x128xf32>
    %cst_14 = arith.constant dense<0.000000e+00> : vector<1xf32>
    %54 = vector.multi_reduction <add>, %53, %cst_14 [1] : vector<1x128xf32> to vector<1xf32>
    %55 = vector.shape_cast %54 : vector<1xf32> to vector<1x1xf32>
    %56 = vector.broadcast %55 : vector<1x1xf32> to vector<1x128xf32>
    %57 = arith.divf %49, %56 : vector<1x128xf32>
    %c1_i32_15 = arith.constant 1 : i32
    %58 = vector.broadcast %c1_i32_15 : i32 to vector<1x128xi32>
    %59 = arith.cmpi eq, %2, %58 : vector<1x128xi32>
    %cst_16 = arith.constant 0.000000e+00 : f32
    %60 = vector.shape_cast %59 : vector<1x128xi1> to vector<1x128xi1>
    %61 = vector.broadcast %60 : vector<1x128xi1> to vector<32x128xi1>
    %62 = vector.broadcast %cst_16 : f32 to vector<32x128xf32>
    %63 = arith.select %61, %48, %62 : vector<32x128xi1>, vector<32x128xf32>
    %cst_17 = arith.constant dense<0.000000e+00> : vector<32xf32>
    %64 = vector.multi_reduction <add>, %63, %cst_17 [1] : vector<32x128xf32> to vector<32xf32>
    %65 = vector.shape_cast %64 : vector<32xf32> to vector<32x1xf32>
    %c1_i32_18 = arith.constant 1 : i32
    %66 = vector.broadcast %c1_i32_18 : i32 to vector<32x1xi32>
    %67 = arith.cmpi eq, %3, %66 : vector<32x1xi32>
    %68 = arith.extui %67 : vector<32x1xi1> to vector<32x1xi32>
    %69 = arith.sitofp %68 : vector<32x1xi32> to vector<32x1xf32>
    %70 = arith.subf %65, %69 : vector<32x1xf32>
    %71 = vector.broadcast %70 : vector<32x1xf32> to vector<32x128xf32>
    %72 = vector.broadcast %57 : vector<1x128xf32> to vector<32x128xf32>
    %73 = arith.mulf %71, %72 : vector<32x128xf32>
    %74 = arith.subf %48, %73 : vector<32x128xf32>
    %75 = vector.extract_strided_slice %74 {offsets = [2, 0], sizes = [1, 128], strides = [1, 1]} : vector<32x128xf32> to vector<1x128xf32>
    %c2_i32 = arith.constant 2 : i32
    %76 = vector.broadcast %c2_i32 : i32 to vector<1x128xi32>
    %77 = arith.cmpi eq, %2, %76 : vector<1x128xi32>
    %cst_19 = arith.constant 0.000000e+00 : f32
    %78 = vector.broadcast %cst_19 : f32 to vector<1x128xf32>
    %79 = arith.select %77, %75, %78 : vector<1x128xi1>, vector<1x128xf32>
    %cst_20 = arith.constant dense<0.000000e+00> : vector<1xf32>
    %80 = vector.multi_reduction <add>, %79, %cst_20 [1] : vector<1x128xf32> to vector<1xf32>
    %81 = vector.shape_cast %80 : vector<1xf32> to vector<1x1xf32>
    %82 = vector.broadcast %81 : vector<1x1xf32> to vector<1x128xf32>
    %83 = arith.divf %75, %82 : vector<1x128xf32>
    %c2_i32_21 = arith.constant 2 : i32
    %84 = vector.broadcast %c2_i32_21 : i32 to vector<1x128xi32>
    %85 = arith.cmpi eq, %2, %84 : vector<1x128xi32>
    %cst_22 = arith.constant 0.000000e+00 : f32
    %86 = vector.shape_cast %85 : vector<1x128xi1> to vector<1x128xi1>
    %87 = vector.broadcast %86 : vector<1x128xi1> to vector<32x128xi1>
    %88 = vector.broadcast %cst_22 : f32 to vector<32x128xf32>
    %89 = arith.select %87, %74, %88 : vector<32x128xi1>, vector<32x128xf32>
    %cst_23 = arith.constant dense<0.000000e+00> : vector<32xf32>
    %90 = vector.multi_reduction <add>, %89, %cst_23 [1] : vector<32x128xf32> to vector<32xf32>
    %91 = vector.shape_cast %90 : vector<32xf32> to vector<32x1xf32>
    %c2_i32_24 = arith.constant 2 : i32
    %92 = vector.broadcast %c2_i32_24 : i32 to vector<32x1xi32>
    %93 = arith.cmpi eq, %3, %92 : vector<32x1xi32>
    %94 = arith.extui %93 : vector<32x1xi1> to vector<32x1xi32>
    %95 = arith.sitofp %94 : vector<32x1xi32> to vector<32x1xf32>
    %96 = arith.subf %91, %95 : vector<32x1xf32>
    %97 = vector.broadcast %96 : vector<32x1xf32> to vector<32x128xf32>
    %98 = vector.broadcast %83 : vector<1x128xf32> to vector<32x128xf32>
    %99 = arith.mulf %97, %98 : vector<32x128xf32>
    %100 = arith.subf %74, %99 : vector<32x128xf32>
    %101 = vector.extract_strided_slice %100 {offsets = [3, 0], sizes = [1, 128], strides = [1, 1]} : vector<32x128xf32> to vector<1x128xf32>
    %c3_i32 = arith.constant 3 : i32
    %102 = vector.broadcast %c3_i32 : i32 to vector<1x128xi32>
    %103 = arith.cmpi eq, %2, %102 : vector<1x128xi32>
    %cst_25 = arith.constant 0.000000e+00 : f32
    %104 = vector.broadcast %cst_25 : f32 to vector<1x128xf32>
    %105 = arith.select %103, %101, %104 : vector<1x128xi1>, vector<1x128xf32>
    %cst_26 = arith.constant dense<0.000000e+00> : vector<1xf32>
    %106 = vector.multi_reduction <add>, %105, %cst_26 [1] : vector<1x128xf32> to vector<1xf32>
    %107 = vector.shape_cast %106 : vector<1xf32> to vector<1x1xf32>
    %108 = vector.broadcast %107 : vector<1x1xf32> to vector<1x128xf32>
    %109 = arith.divf %101, %108 : vector<1x128xf32>
    %c3_i32_27 = arith.constant 3 : i32
    %110 = vector.broadcast %c3_i32_27 : i32 to vector<1x128xi32>
    %111 = arith.cmpi eq, %2, %110 : vector<1x128xi32>
    %cst_28 = arith.constant 0.000000e+00 : f32
    %112 = vector.shape_cast %111 : vector<1x128xi1> to vector<1x128xi1>
    %113 = vector.broadcast %112 : vector<1x128xi1> to vector<32x128xi1>
    %114 = vector.broadcast %cst_28 : f32 to vector<32x128xf32>
    %115 = arith.select %113, %100, %114 : vector<32x128xi1>, vector<32x128xf32>
    %cst_29 = arith.constant dense<0.000000e+00> : vector<32xf32>
    %116 = vector.multi_reduction <add>, %115, %cst_29 [1] : vector<32x128xf32> to vector<32xf32>
    %117 = vector.shape_cast %116 : vector<32xf32> to vector<32x1xf32>
    %c3_i32_30 = arith.constant 3 : i32
    %118 = vector.broadcast %c3_i32_30 : i32 to vector<32x1xi32>
    %119 = arith.cmpi eq, %3, %118 : vector<32x1xi32>
    %120 = arith.extui %119 : vector<32x1xi1> to vector<32x1xi32>
    %121 = arith.sitofp %120 : vector<32x1xi32> to vector<32x1xf32>
    %122 = arith.subf %117, %121 : vector<32x1xf32>
    %123 = vector.broadcast %122 : vector<32x1xf32> to vector<32x128xf32>
    %124 = vector.broadcast %109 : vector<1x128xf32> to vector<32x128xf32>
    %125 = arith.mulf %123, %124 : vector<32x128xf32>
    %126 = arith.subf %100, %125 : vector<32x128xf32>
    %127 = vector.extract_strided_slice %126 {offsets = [4, 0], sizes = [1, 128], strides = [1, 1]} : vector<32x128xf32> to vector<1x128xf32>
    %c4_i32 = arith.constant 4 : i32
    %128 = vector.broadcast %c4_i32 : i32 to vector<1x128xi32>
    %129 = arith.cmpi eq, %2, %128 : vector<1x128xi32>
    %cst_31 = arith.constant 0.000000e+00 : f32
    %130 = vector.broadcast %cst_31 : f32 to vector<1x128xf32>
    %131 = arith.select %129, %127, %130 : vector<1x128xi1>, vector<1x128xf32>
    %cst_32 = arith.constant dense<0.000000e+00> : vector<1xf32>
    %132 = vector.multi_reduction <add>, %131, %cst_32 [1] : vector<1x128xf32> to vector<1xf32>
    %133 = vector.shape_cast %132 : vector<1xf32> to vector<1x1xf32>
    %134 = vector.broadcast %133 : vector<1x1xf32> to vector<1x128xf32>
    %135 = arith.divf %127, %134 : vector<1x128xf32>
    %c4_i32_33 = arith.constant 4 : i32
    %136 = vector.broadcast %c4_i32_33 : i32 to vector<1x128xi32>
    %137 = arith.cmpi eq, %2, %136 : vector<1x128xi32>
    %cst_34 = arith.constant 0.000000e+00 : f32
    %138 = vector.shape_cast %137 : vector<1x128xi1> to vector<1x128xi1>
    %139 = vector.broadcast %138 : vector<1x128xi1> to vector<32x128xi1>
    %140 = vector.broadcast %cst_34 : f32 to vector<32x128xf32>
    %141 = arith.select %139, %126, %140 : vector<32x128xi1>, vector<32x128xf32>
    %cst_35 = arith.constant dense<0.000000e+00> : vector<32xf32>
    %142 = vector.multi_reduction <add>, %141, %cst_35 [1] : vector<32x128xf32> to vector<32xf32>
    %143 = vector.shape_cast %142 : vector<32xf32> to vector<32x1xf32>
    %c4_i32_36 = arith.constant 4 : i32
    %144 = vector.broadcast %c4_i32_36 : i32 to vector<32x1xi32>
    %145 = arith.cmpi eq, %3, %144 : vector<32x1xi32>
    %146 = arith.extui %145 : vector<32x1xi1> to vector<32x1xi32>
    %147 = arith.sitofp %146 : vector<32x1xi32> to vector<32x1xf32>
    %148 = arith.subf %143, %147 : vector<32x1xf32>
    %149 = vector.broadcast %148 : vector<32x1xf32> to vector<32x128xf32>
    %150 = vector.broadcast %135 : vector<1x128xf32> to vector<32x128xf32>
    %151 = arith.mulf %149, %150 : vector<32x128xf32>
    %152 = arith.subf %126, %151 : vector<32x128xf32>
    %153 = vector.extract_strided_slice %152 {offsets = [5, 0], sizes = [1, 128], strides = [1, 1]} : vector<32x128xf32> to vector<1x128xf32>
    %c5_i32 = arith.constant 5 : i32
    %154 = vector.broadcast %c5_i32 : i32 to vector<1x128xi32>
    %155 = arith.cmpi eq, %2, %154 : vector<1x128xi32>
    %cst_37 = arith.constant 0.000000e+00 : f32
    %156 = vector.broadcast %cst_37 : f32 to vector<1x128xf32>
    %157 = arith.select %155, %153, %156 : vector<1x128xi1>, vector<1x128xf32>
    %cst_38 = arith.constant dense<0.000000e+00> : vector<1xf32>
    %158 = vector.multi_reduction <add>, %157, %cst_38 [1] : vector<1x128xf32> to vector<1xf32>
    %159 = vector.shape_cast %158 : vector<1xf32> to vector<1x1xf32>
    %160 = vector.broadcast %159 : vector<1x1xf32> to vector<1x128xf32>
    %161 = arith.divf %153, %160 : vector<1x128xf32>
    %c5_i32_39 = arith.constant 5 : i32
    %162 = vector.broadcast %c5_i32_39 : i32 to vector<1x128xi32>
    %163 = arith.cmpi eq, %2, %162 : vector<1x128xi32>
    %cst_40 = arith.constant 0.000000e+00 : f32
    %164 = vector.shape_cast %163 : vector<1x128xi1> to vector<1x128xi1>
    %165 = vector.broadcast %164 : vector<1x128xi1> to vector<32x128xi1>
    %166 = vector.broadcast %cst_40 : f32 to vector<32x128xf32>
    %167 = arith.select %165, %152, %166 : vector<32x128xi1>, vector<32x128xf32>
    %cst_41 = arith.constant dense<0.000000e+00> : vector<32xf32>
    %168 = vector.multi_reduction <add>, %167, %cst_41 [1] : vector<32x128xf32> to vector<32xf32>
    %169 = vector.shape_cast %168 : vector<32xf32> to vector<32x1xf32>
    %c5_i32_42 = arith.constant 5 : i32
    %170 = vector.broadcast %c5_i32_42 : i32 to vector<32x1xi32>
    %171 = arith.cmpi eq, %3, %170 : vector<32x1xi32>
    %172 = arith.extui %171 : vector<32x1xi1> to vector<32x1xi32>
    %173 = arith.sitofp %172 : vector<32x1xi32> to vector<32x1xf32>
    %174 = arith.subf %169, %173 : vector<32x1xf32>
    %175 = vector.broadcast %174 : vector<32x1xf32> to vector<32x128xf32>
    %176 = vector.broadcast %161 : vector<1x128xf32> to vector<32x128xf32>
    %177 = arith.mulf %175, %176 : vector<32x128xf32>
    %178 = arith.subf %152, %177 : vector<32x128xf32>
    %179 = vector.extract_strided_slice %178 {offsets = [6, 0], sizes = [1, 128], strides = [1, 1]} : vector<32x128xf32> to vector<1x128xf32>
    %c6_i32 = arith.constant 6 : i32
    %180 = vector.broadcast %c6_i32 : i32 to vector<1x128xi32>
    %181 = arith.cmpi eq, %2, %180 : vector<1x128xi32>
    %cst_43 = arith.constant 0.000000e+00 : f32
    %182 = vector.broadcast %cst_43 : f32 to vector<1x128xf32>
    %183 = arith.select %181, %179, %182 : vector<1x128xi1>, vector<1x128xf32>
    %cst_44 = arith.constant dense<0.000000e+00> : vector<1xf32>
    %184 = vector.multi_reduction <add>, %183, %cst_44 [1] : vector<1x128xf32> to vector<1xf32>
    %185 = vector.shape_cast %184 : vector<1xf32> to vector<1x1xf32>
    %186 = vector.broadcast %185 : vector<1x1xf32> to vector<1x128xf32>
    %187 = arith.divf %179, %186 : vector<1x128xf32>
    %c6_i32_45 = arith.constant 6 : i32
    %188 = vector.broadcast %c6_i32_45 : i32 to vector<1x128xi32>
    %189 = arith.cmpi eq, %2, %188 : vector<1x128xi32>
    %cst_46 = arith.constant 0.000000e+00 : f32
    %190 = vector.shape_cast %189 : vector<1x128xi1> to vector<1x128xi1>
    %191 = vector.broadcast %190 : vector<1x128xi1> to vector<32x128xi1>
    %192 = vector.broadcast %cst_46 : f32 to vector<32x128xf32>
    %193 = arith.select %191, %178, %192 : vector<32x128xi1>, vector<32x128xf32>
    %cst_47 = arith.constant dense<0.000000e+00> : vector<32xf32>
    %194 = vector.multi_reduction <add>, %193, %cst_47 [1] : vector<32x128xf32> to vector<32xf32>
    %195 = vector.shape_cast %194 : vector<32xf32> to vector<32x1xf32>
    %c6_i32_48 = arith.constant 6 : i32
    %196 = vector.broadcast %c6_i32_48 : i32 to vector<32x1xi32>
    %197 = arith.cmpi eq, %3, %196 : vector<32x1xi32>
    %198 = arith.extui %197 : vector<32x1xi1> to vector<32x1xi32>
    %199 = arith.sitofp %198 : vector<32x1xi32> to vector<32x1xf32>
    %200 = arith.subf %195, %199 : vector<32x1xf32>
    %201 = vector.broadcast %200 : vector<32x1xf32> to vector<32x128xf32>
    %202 = vector.broadcast %187 : vector<1x128xf32> to vector<32x128xf32>
    %203 = arith.mulf %201, %202 : vector<32x128xf32>
    %204 = arith.subf %178, %203 : vector<32x128xf32>
    %205 = vector.extract_strided_slice %204 {offsets = [7, 0], sizes = [1, 128], strides = [1, 1]} : vector<32x128xf32> to vector<1x128xf32>
    %c7_i32 = arith.constant 7 : i32
    %206 = vector.broadcast %c7_i32 : i32 to vector<1x128xi32>
    %207 = arith.cmpi eq, %2, %206 : vector<1x128xi32>
    %cst_49 = arith.constant 0.000000e+00 : f32
    %208 = vector.broadcast %cst_49 : f32 to vector<1x128xf32>
    %209 = arith.select %207, %205, %208 : vector<1x128xi1>, vector<1x128xf32>
    %cst_50 = arith.constant dense<0.000000e+00> : vector<1xf32>
    %210 = vector.multi_reduction <add>, %209, %cst_50 [1] : vector<1x128xf32> to vector<1xf32>
    %211 = vector.shape_cast %210 : vector<1xf32> to vector<1x1xf32>
    %212 = vector.broadcast %211 : vector<1x1xf32> to vector<1x128xf32>
    %213 = arith.divf %205, %212 : vector<1x128xf32>
    %c7_i32_51 = arith.constant 7 : i32
    %214 = vector.broadcast %c7_i32_51 : i32 to vector<1x128xi32>
    %215 = arith.cmpi eq, %2, %214 : vector<1x128xi32>
    %cst_52 = arith.constant 0.000000e+00 : f32
    %216 = vector.shape_cast %215 : vector<1x128xi1> to vector<1x128xi1>
    %217 = vector.broadcast %216 : vector<1x128xi1> to vector<32x128xi1>
    %218 = vector.broadcast %cst_52 : f32 to vector<32x128xf32>
    %219 = arith.select %217, %204, %218 : vector<32x128xi1>, vector<32x128xf32>
    %cst_53 = arith.constant dense<0.000000e+00> : vector<32xf32>
    %220 = vector.multi_reduction <add>, %219, %cst_53 [1] : vector<32x128xf32> to vector<32xf32>
    %221 = vector.shape_cast %220 : vector<32xf32> to vector<32x1xf32>
    %c7_i32_54 = arith.constant 7 : i32
    %222 = vector.broadcast %c7_i32_54 : i32 to vector<32x1xi32>
    %223 = arith.cmpi eq, %3, %222 : vector<32x1xi32>
    %224 = arith.extui %223 : vector<32x1xi1> to vector<32x1xi32>
    %225 = arith.sitofp %224 : vector<32x1xi32> to vector<32x1xf32>
    %226 = arith.subf %221, %225 : vector<32x1xf32>
    %227 = vector.broadcast %226 : vector<32x1xf32> to vector<32x128xf32>
    %228 = vector.broadcast %213 : vector<1x128xf32> to vector<32x128xf32>
    %229 = arith.mulf %227, %228 : vector<32x128xf32>
    %230 = arith.subf %204, %229 : vector<32x128xf32>
    %231 = vector.extract_strided_slice %230 {offsets = [8, 0], sizes = [1, 128], strides = [1, 1]} : vector<32x128xf32> to vector<1x128xf32>
    %c8_i32 = arith.constant 8 : i32
    %232 = vector.broadcast %c8_i32 : i32 to vector<1x128xi32>
    %233 = arith.cmpi eq, %2, %232 : vector<1x128xi32>
    %cst_55 = arith.constant 0.000000e+00 : f32
    %234 = vector.broadcast %cst_55 : f32 to vector<1x128xf32>
    %235 = arith.select %233, %231, %234 : vector<1x128xi1>, vector<1x128xf32>
    %cst_56 = arith.constant dense<0.000000e+00> : vector<1xf32>
    %236 = vector.multi_reduction <add>, %235, %cst_56 [1] : vector<1x128xf32> to vector<1xf32>
    %237 = vector.shape_cast %236 : vector<1xf32> to vector<1x1xf32>
    %238 = vector.broadcast %237 : vector<1x1xf32> to vector<1x128xf32>
    %239 = arith.divf %231, %238 : vector<1x128xf32>
    %c8_i32_57 = arith.constant 8 : i32
    %240 = vector.broadcast %c8_i32_57 : i32 to vector<1x128xi32>
    %241 = arith.cmpi eq, %2, %240 : vector<1x128xi32>
    %cst_58 = arith.constant 0.000000e+00 : f32
    %242 = vector.shape_cast %241 : vector<1x128xi1> to vector<1x128xi1>
    %243 = vector.broadcast %242 : vector<1x128xi1> to vector<32x128xi1>
    %244 = vector.broadcast %cst_58 : f32 to vector<32x128xf32>
    %245 = arith.select %243, %230, %244 : vector<32x128xi1>, vector<32x128xf32>
    %cst_59 = arith.constant dense<0.000000e+00> : vector<32xf32>
    %246 = vector.multi_reduction <add>, %245, %cst_59 [1] : vector<32x128xf32> to vector<32xf32>
    %247 = vector.shape_cast %246 : vector<32xf32> to vector<32x1xf32>
    %c8_i32_60 = arith.constant 8 : i32
    %248 = vector.broadcast %c8_i32_60 : i32 to vector<32x1xi32>
    %249 = arith.cmpi eq, %3, %248 : vector<32x1xi32>
    %250 = arith.extui %249 : vector<32x1xi1> to vector<32x1xi32>
    %251 = arith.sitofp %250 : vector<32x1xi32> to vector<32x1xf32>
    %252 = arith.subf %247, %251 : vector<32x1xf32>
    %253 = vector.broadcast %252 : vector<32x1xf32> to vector<32x128xf32>
    %254 = vector.broadcast %239 : vector<1x128xf32> to vector<32x128xf32>
    %255 = arith.mulf %253, %254 : vector<32x128xf32>
    %256 = arith.subf %230, %255 : vector<32x128xf32>
    %257 = vector.extract_strided_slice %256 {offsets = [9, 0], sizes = [1, 128], strides = [1, 1]} : vector<32x128xf32> to vector<1x128xf32>
    %c9_i32 = arith.constant 9 : i32
    %258 = vector.broadcast %c9_i32 : i32 to vector<1x128xi32>
    %259 = arith.cmpi eq, %2, %258 : vector<1x128xi32>
    %cst_61 = arith.constant 0.000000e+00 : f32
    %260 = vector.broadcast %cst_61 : f32 to vector<1x128xf32>
    %261 = arith.select %259, %257, %260 : vector<1x128xi1>, vector<1x128xf32>
    %cst_62 = arith.constant dense<0.000000e+00> : vector<1xf32>
    %262 = vector.multi_reduction <add>, %261, %cst_62 [1] : vector<1x128xf32> to vector<1xf32>
    %263 = vector.shape_cast %262 : vector<1xf32> to vector<1x1xf32>
    %264 = vector.broadcast %263 : vector<1x1xf32> to vector<1x128xf32>
    %265 = arith.divf %257, %264 : vector<1x128xf32>
    %c9_i32_63 = arith.constant 9 : i32
    %266 = vector.broadcast %c9_i32_63 : i32 to vector<1x128xi32>
    %267 = arith.cmpi eq, %2, %266 : vector<1x128xi32>
    %cst_64 = arith.constant 0.000000e+00 : f32
    %268 = vector.shape_cast %267 : vector<1x128xi1> to vector<1x128xi1>
    %269 = vector.broadcast %268 : vector<1x128xi1> to vector<32x128xi1>
    %270 = vector.broadcast %cst_64 : f32 to vector<32x128xf32>
    %271 = arith.select %269, %256, %270 : vector<32x128xi1>, vector<32x128xf32>
    %cst_65 = arith.constant dense<0.000000e+00> : vector<32xf32>
    %272 = vector.multi_reduction <add>, %271, %cst_65 [1] : vector<32x128xf32> to vector<32xf32>
    %273 = vector.shape_cast %272 : vector<32xf32> to vector<32x1xf32>
    %c9_i32_66 = arith.constant 9 : i32
    %274 = vector.broadcast %c9_i32_66 : i32 to vector<32x1xi32>
    %275 = arith.cmpi eq, %3, %274 : vector<32x1xi32>
    %276 = arith.extui %275 : vector<32x1xi1> to vector<32x1xi32>
    %277 = arith.sitofp %276 : vector<32x1xi32> to vector<32x1xf32>
    %278 = arith.subf %273, %277 : vector<32x1xf32>
    %279 = vector.broadcast %278 : vector<32x1xf32> to vector<32x128xf32>
    %280 = vector.broadcast %265 : vector<1x128xf32> to vector<32x128xf32>
    %281 = arith.mulf %279, %280 : vector<32x128xf32>
    %282 = arith.subf %256, %281 : vector<32x128xf32>
    %283 = vector.extract_strided_slice %282 {offsets = [10, 0], sizes = [1, 128], strides = [1, 1]} : vector<32x128xf32> to vector<1x128xf32>
    %c10_i32 = arith.constant 10 : i32
    %284 = vector.broadcast %c10_i32 : i32 to vector<1x128xi32>
    %285 = arith.cmpi eq, %2, %284 : vector<1x128xi32>
    %cst_67 = arith.constant 0.000000e+00 : f32
    %286 = vector.broadcast %cst_67 : f32 to vector<1x128xf32>
    %287 = arith.select %285, %283, %286 : vector<1x128xi1>, vector<1x128xf32>
    %cst_68 = arith.constant dense<0.000000e+00> : vector<1xf32>
    %288 = vector.multi_reduction <add>, %287, %cst_68 [1] : vector<1x128xf32> to vector<1xf32>
    %289 = vector.shape_cast %288 : vector<1xf32> to vector<1x1xf32>
    %290 = vector.broadcast %289 : vector<1x1xf32> to vector<1x128xf32>
    %291 = arith.divf %283, %290 : vector<1x128xf32>
    %c10_i32_69 = arith.constant 10 : i32
    %292 = vector.broadcast %c10_i32_69 : i32 to vector<1x128xi32>
    %293 = arith.cmpi eq, %2, %292 : vector<1x128xi32>
    %cst_70 = arith.constant 0.000000e+00 : f32
    %294 = vector.shape_cast %293 : vector<1x128xi1> to vector<1x128xi1>
    %295 = vector.broadcast %294 : vector<1x128xi1> to vector<32x128xi1>
    %296 = vector.broadcast %cst_70 : f32 to vector<32x128xf32>
    %297 = arith.select %295, %282, %296 : vector<32x128xi1>, vector<32x128xf32>
    %cst_71 = arith.constant dense<0.000000e+00> : vector<32xf32>
    %298 = vector.multi_reduction <add>, %297, %cst_71 [1] : vector<32x128xf32> to vector<32xf32>
    %299 = vector.shape_cast %298 : vector<32xf32> to vector<32x1xf32>
    %c10_i32_72 = arith.constant 10 : i32
    %300 = vector.broadcast %c10_i32_72 : i32 to vector<32x1xi32>
    %301 = arith.cmpi eq, %3, %300 : vector<32x1xi32>
    %302 = arith.extui %301 : vector<32x1xi1> to vector<32x1xi32>
    %303 = arith.sitofp %302 : vector<32x1xi32> to vector<32x1xf32>
    %304 = arith.subf %299, %303 : vector<32x1xf32>
    %305 = vector.broadcast %304 : vector<32x1xf32> to vector<32x128xf32>
    %306 = vector.broadcast %291 : vector<1x128xf32> to vector<32x128xf32>
    %307 = arith.mulf %305, %306 : vector<32x128xf32>
    %308 = arith.subf %282, %307 : vector<32x128xf32>
    %309 = vector.extract_strided_slice %308 {offsets = [11, 0], sizes = [1, 128], strides = [1, 1]} : vector<32x128xf32> to vector<1x128xf32>
    %c11_i32 = arith.constant 11 : i32
    %310 = vector.broadcast %c11_i32 : i32 to vector<1x128xi32>
    %311 = arith.cmpi eq, %2, %310 : vector<1x128xi32>
    %cst_73 = arith.constant 0.000000e+00 : f32
    %312 = vector.broadcast %cst_73 : f32 to vector<1x128xf32>
    %313 = arith.select %311, %309, %312 : vector<1x128xi1>, vector<1x128xf32>
    %cst_74 = arith.constant dense<0.000000e+00> : vector<1xf32>
    %314 = vector.multi_reduction <add>, %313, %cst_74 [1] : vector<1x128xf32> to vector<1xf32>
    %315 = vector.shape_cast %314 : vector<1xf32> to vector<1x1xf32>
    %316 = vector.broadcast %315 : vector<1x1xf32> to vector<1x128xf32>
    %317 = arith.divf %309, %316 : vector<1x128xf32>
    %c11_i32_75 = arith.constant 11 : i32
    %318 = vector.broadcast %c11_i32_75 : i32 to vector<1x128xi32>
    %319 = arith.cmpi eq, %2, %318 : vector<1x128xi32>
    %cst_76 = arith.constant 0.000000e+00 : f32
    %320 = vector.shape_cast %319 : vector<1x128xi1> to vector<1x128xi1>
    %321 = vector.broadcast %320 : vector<1x128xi1> to vector<32x128xi1>
    %322 = vector.broadcast %cst_76 : f32 to vector<32x128xf32>
    %323 = arith.select %321, %308, %322 : vector<32x128xi1>, vector<32x128xf32>
    %cst_77 = arith.constant dense<0.000000e+00> : vector<32xf32>
    %324 = vector.multi_reduction <add>, %323, %cst_77 [1] : vector<32x128xf32> to vector<32xf32>
    %325 = vector.shape_cast %324 : vector<32xf32> to vector<32x1xf32>
    %c11_i32_78 = arith.constant 11 : i32
    %326 = vector.broadcast %c11_i32_78 : i32 to vector<32x1xi32>
    %327 = arith.cmpi eq, %3, %326 : vector<32x1xi32>
    %328 = arith.extui %327 : vector<32x1xi1> to vector<32x1xi32>
    %329 = arith.sitofp %328 : vector<32x1xi32> to vector<32x1xf32>
    %330 = arith.subf %325, %329 : vector<32x1xf32>
    %331 = vector.broadcast %330 : vector<32x1xf32> to vector<32x128xf32>
    %332 = vector.broadcast %317 : vector<1x128xf32> to vector<32x128xf32>
    %333 = arith.mulf %331, %332 : vector<32x128xf32>
    %334 = arith.subf %308, %333 : vector<32x128xf32>
    %335 = vector.extract_strided_slice %334 {offsets = [12, 0], sizes = [1, 128], strides = [1, 1]} : vector<32x128xf32> to vector<1x128xf32>
    %c12_i32 = arith.constant 12 : i32
    %336 = vector.broadcast %c12_i32 : i32 to vector<1x128xi32>
    %337 = arith.cmpi eq, %2, %336 : vector<1x128xi32>
    %cst_79 = arith.constant 0.000000e+00 : f32
    %338 = vector.broadcast %cst_79 : f32 to vector<1x128xf32>
    %339 = arith.select %337, %335, %338 : vector<1x128xi1>, vector<1x128xf32>
    %cst_80 = arith.constant dense<0.000000e+00> : vector<1xf32>
    %340 = vector.multi_reduction <add>, %339, %cst_80 [1] : vector<1x128xf32> to vector<1xf32>
    %341 = vector.shape_cast %340 : vector<1xf32> to vector<1x1xf32>
    %342 = vector.broadcast %341 : vector<1x1xf32> to vector<1x128xf32>
    %343 = arith.divf %335, %342 : vector<1x128xf32>
    %c12_i32_81 = arith.constant 12 : i32
    %344 = vector.broadcast %c12_i32_81 : i32 to vector<1x128xi32>
    %345 = arith.cmpi eq, %2, %344 : vector<1x128xi32>
    %cst_82 = arith.constant 0.000000e+00 : f32
    %346 = vector.shape_cast %345 : vector<1x128xi1> to vector<1x128xi1>
    %347 = vector.broadcast %346 : vector<1x128xi1> to vector<32x128xi1>
    %348 = vector.broadcast %cst_82 : f32 to vector<32x128xf32>
    %349 = arith.select %347, %334, %348 : vector<32x128xi1>, vector<32x128xf32>
    %cst_83 = arith.constant dense<0.000000e+00> : vector<32xf32>
    %350 = vector.multi_reduction <add>, %349, %cst_83 [1] : vector<32x128xf32> to vector<32xf32>
    %351 = vector.shape_cast %350 : vector<32xf32> to vector<32x1xf32>
    %c12_i32_84 = arith.constant 12 : i32
    %352 = vector.broadcast %c12_i32_84 : i32 to vector<32x1xi32>
    %353 = arith.cmpi eq, %3, %352 : vector<32x1xi32>
    %354 = arith.extui %353 : vector<32x1xi1> to vector<32x1xi32>
    %355 = arith.sitofp %354 : vector<32x1xi32> to vector<32x1xf32>
    %356 = arith.subf %351, %355 : vector<32x1xf32>
    %357 = vector.broadcast %356 : vector<32x1xf32> to vector<32x128xf32>
    %358 = vector.broadcast %343 : vector<1x128xf32> to vector<32x128xf32>
    %359 = arith.mulf %357, %358 : vector<32x128xf32>
    %360 = arith.subf %334, %359 : vector<32x128xf32>
    %361 = vector.extract_strided_slice %360 {offsets = [13, 0], sizes = [1, 128], strides = [1, 1]} : vector<32x128xf32> to vector<1x128xf32>
    %c13_i32 = arith.constant 13 : i32
    %362 = vector.broadcast %c13_i32 : i32 to vector<1x128xi32>
    %363 = arith.cmpi eq, %2, %362 : vector<1x128xi32>
    %cst_85 = arith.constant 0.000000e+00 : f32
    %364 = vector.broadcast %cst_85 : f32 to vector<1x128xf32>
    %365 = arith.select %363, %361, %364 : vector<1x128xi1>, vector<1x128xf32>
    %cst_86 = arith.constant dense<0.000000e+00> : vector<1xf32>
    %366 = vector.multi_reduction <add>, %365, %cst_86 [1] : vector<1x128xf32> to vector<1xf32>
    %367 = vector.shape_cast %366 : vector<1xf32> to vector<1x1xf32>
    %368 = vector.broadcast %367 : vector<1x1xf32> to vector<1x128xf32>
    %369 = arith.divf %361, %368 : vector<1x128xf32>
    %c13_i32_87 = arith.constant 13 : i32
    %370 = vector.broadcast %c13_i32_87 : i32 to vector<1x128xi32>
    %371 = arith.cmpi eq, %2, %370 : vector<1x128xi32>
    %cst_88 = arith.constant 0.000000e+00 : f32
    %372 = vector.shape_cast %371 : vector<1x128xi1> to vector<1x128xi1>
    %373 = vector.broadcast %372 : vector<1x128xi1> to vector<32x128xi1>
    %374 = vector.broadcast %cst_88 : f32 to vector<32x128xf32>
    %375 = arith.select %373, %360, %374 : vector<32x128xi1>, vector<32x128xf32>
    %cst_89 = arith.constant dense<0.000000e+00> : vector<32xf32>
    %376 = vector.multi_reduction <add>, %375, %cst_89 [1] : vector<32x128xf32> to vector<32xf32>
    %377 = vector.shape_cast %376 : vector<32xf32> to vector<32x1xf32>
    %c13_i32_90 = arith.constant 13 : i32
    %378 = vector.broadcast %c13_i32_90 : i32 to vector<32x1xi32>
    %379 = arith.cmpi eq, %3, %378 : vector<32x1xi32>
    %380 = arith.extui %379 : vector<32x1xi1> to vector<32x1xi32>
    %381 = arith.sitofp %380 : vector<32x1xi32> to vector<32x1xf32>
    %382 = arith.subf %377, %381 : vector<32x1xf32>
    %383 = vector.broadcast %382 : vector<32x1xf32> to vector<32x128xf32>
    %384 = vector.broadcast %369 : vector<1x128xf32> to vector<32x128xf32>
    %385 = arith.mulf %383, %384 : vector<32x128xf32>
    %386 = arith.subf %360, %385 : vector<32x128xf32>
    %387 = vector.extract_strided_slice %386 {offsets = [14, 0], sizes = [1, 128], strides = [1, 1]} : vector<32x128xf32> to vector<1x128xf32>
    %c14_i32 = arith.constant 14 : i32
    %388 = vector.broadcast %c14_i32 : i32 to vector<1x128xi32>
    %389 = arith.cmpi eq, %2, %388 : vector<1x128xi32>
    %cst_91 = arith.constant 0.000000e+00 : f32
    %390 = vector.broadcast %cst_91 : f32 to vector<1x128xf32>
    %391 = arith.select %389, %387, %390 : vector<1x128xi1>, vector<1x128xf32>
    %cst_92 = arith.constant dense<0.000000e+00> : vector<1xf32>
    %392 = vector.multi_reduction <add>, %391, %cst_92 [1] : vector<1x128xf32> to vector<1xf32>
    %393 = vector.shape_cast %392 : vector<1xf32> to vector<1x1xf32>
    %394 = vector.broadcast %393 : vector<1x1xf32> to vector<1x128xf32>
    %395 = arith.divf %387, %394 : vector<1x128xf32>
    %c14_i32_93 = arith.constant 14 : i32
    %396 = vector.broadcast %c14_i32_93 : i32 to vector<1x128xi32>
    %397 = arith.cmpi eq, %2, %396 : vector<1x128xi32>
    %cst_94 = arith.constant 0.000000e+00 : f32
    %398 = vector.shape_cast %397 : vector<1x128xi1> to vector<1x128xi1>
    %399 = vector.broadcast %398 : vector<1x128xi1> to vector<32x128xi1>
    %400 = vector.broadcast %cst_94 : f32 to vector<32x128xf32>
    %401 = arith.select %399, %386, %400 : vector<32x128xi1>, vector<32x128xf32>
    %cst_95 = arith.constant dense<0.000000e+00> : vector<32xf32>
    %402 = vector.multi_reduction <add>, %401, %cst_95 [1] : vector<32x128xf32> to vector<32xf32>
    %403 = vector.shape_cast %402 : vector<32xf32> to vector<32x1xf32>
    %c14_i32_96 = arith.constant 14 : i32
    %404 = vector.broadcast %c14_i32_96 : i32 to vector<32x1xi32>
    %405 = arith.cmpi eq, %3, %404 : vector<32x1xi32>
    %406 = arith.extui %405 : vector<32x1xi1> to vector<32x1xi32>
    %407 = arith.sitofp %406 : vector<32x1xi32> to vector<32x1xf32>
    %408 = arith.subf %403, %407 : vector<32x1xf32>
    %409 = vector.broadcast %408 : vector<32x1xf32> to vector<32x128xf32>
    %410 = vector.broadcast %395 : vector<1x128xf32> to vector<32x128xf32>
    %411 = arith.mulf %409, %410 : vector<32x128xf32>
    %412 = arith.subf %386, %411 : vector<32x128xf32>
    %413 = vector.extract_strided_slice %412 {offsets = [15, 0], sizes = [1, 128], strides = [1, 1]} : vector<32x128xf32> to vector<1x128xf32>
    %c15_i32 = arith.constant 15 : i32
    %414 = vector.broadcast %c15_i32 : i32 to vector<1x128xi32>
    %415 = arith.cmpi eq, %2, %414 : vector<1x128xi32>
    %cst_97 = arith.constant 0.000000e+00 : f32
    %416 = vector.broadcast %cst_97 : f32 to vector<1x128xf32>
    %417 = arith.select %415, %413, %416 : vector<1x128xi1>, vector<1x128xf32>
    %cst_98 = arith.constant dense<0.000000e+00> : vector<1xf32>
    %418 = vector.multi_reduction <add>, %417, %cst_98 [1] : vector<1x128xf32> to vector<1xf32>
    %419 = vector.shape_cast %418 : vector<1xf32> to vector<1x1xf32>
    %420 = vector.broadcast %419 : vector<1x1xf32> to vector<1x128xf32>
    %421 = arith.divf %413, %420 : vector<1x128xf32>
    %c15_i32_99 = arith.constant 15 : i32
    %422 = vector.broadcast %c15_i32_99 : i32 to vector<1x128xi32>
    %423 = arith.cmpi eq, %2, %422 : vector<1x128xi32>
    %cst_100 = arith.constant 0.000000e+00 : f32
    %424 = vector.shape_cast %423 : vector<1x128xi1> to vector<1x128xi1>
    %425 = vector.broadcast %424 : vector<1x128xi1> to vector<32x128xi1>
    %426 = vector.broadcast %cst_100 : f32 to vector<32x128xf32>
    %427 = arith.select %425, %412, %426 : vector<32x128xi1>, vector<32x128xf32>
    %cst_101 = arith.constant dense<0.000000e+00> : vector<32xf32>
    %428 = vector.multi_reduction <add>, %427, %cst_101 [1] : vector<32x128xf32> to vector<32xf32>
    %429 = vector.shape_cast %428 : vector<32xf32> to vector<32x1xf32>
    %c15_i32_102 = arith.constant 15 : i32
    %430 = vector.broadcast %c15_i32_102 : i32 to vector<32x1xi32>
    %431 = arith.cmpi eq, %3, %430 : vector<32x1xi32>
    %432 = arith.extui %431 : vector<32x1xi1> to vector<32x1xi32>
    %433 = arith.sitofp %432 : vector<32x1xi32> to vector<32x1xf32>
    %434 = arith.subf %429, %433 : vector<32x1xf32>
    %435 = vector.broadcast %434 : vector<32x1xf32> to vector<32x128xf32>
    %436 = vector.broadcast %421 : vector<1x128xf32> to vector<32x128xf32>
    %437 = arith.mulf %435, %436 : vector<32x128xf32>
    %438 = arith.subf %412, %437 : vector<32x128xf32>
    %439 = vector.extract_strided_slice %438 {offsets = [16, 0], sizes = [1, 128], strides = [1, 1]} : vector<32x128xf32> to vector<1x128xf32>
    %c16_i32 = arith.constant 16 : i32
    %440 = vector.broadcast %c16_i32 : i32 to vector<1x128xi32>
    %441 = arith.cmpi eq, %2, %440 : vector<1x128xi32>
    %cst_103 = arith.constant 0.000000e+00 : f32
    %442 = vector.broadcast %cst_103 : f32 to vector<1x128xf32>
    %443 = arith.select %441, %439, %442 : vector<1x128xi1>, vector<1x128xf32>
    %cst_104 = arith.constant dense<0.000000e+00> : vector<1xf32>
    %444 = vector.multi_reduction <add>, %443, %cst_104 [1] : vector<1x128xf32> to vector<1xf32>
    %445 = vector.shape_cast %444 : vector<1xf32> to vector<1x1xf32>
    %446 = vector.broadcast %445 : vector<1x1xf32> to vector<1x128xf32>
    %447 = arith.divf %439, %446 : vector<1x128xf32>
    %c16_i32_105 = arith.constant 16 : i32
    %448 = vector.broadcast %c16_i32_105 : i32 to vector<1x128xi32>
    %449 = arith.cmpi eq, %2, %448 : vector<1x128xi32>
    %cst_106 = arith.constant 0.000000e+00 : f32
    %450 = vector.shape_cast %449 : vector<1x128xi1> to vector<1x128xi1>
    %451 = vector.broadcast %450 : vector<1x128xi1> to vector<32x128xi1>
    %452 = vector.broadcast %cst_106 : f32 to vector<32x128xf32>
    %453 = arith.select %451, %438, %452 : vector<32x128xi1>, vector<32x128xf32>
    %cst_107 = arith.constant dense<0.000000e+00> : vector<32xf32>
    %454 = vector.multi_reduction <add>, %453, %cst_107 [1] : vector<32x128xf32> to vector<32xf32>
    %455 = vector.shape_cast %454 : vector<32xf32> to vector<32x1xf32>
    %c16_i32_108 = arith.constant 16 : i32
    %456 = vector.broadcast %c16_i32_108 : i32 to vector<32x1xi32>
    %457 = arith.cmpi eq, %3, %456 : vector<32x1xi32>
    %458 = arith.extui %457 : vector<32x1xi1> to vector<32x1xi32>
    %459 = arith.sitofp %458 : vector<32x1xi32> to vector<32x1xf32>
    %460 = arith.subf %455, %459 : vector<32x1xf32>
    %461 = vector.broadcast %460 : vector<32x1xf32> to vector<32x128xf32>
    %462 = vector.broadcast %447 : vector<1x128xf32> to vector<32x128xf32>
    %463 = arith.mulf %461, %462 : vector<32x128xf32>
    %464 = arith.subf %438, %463 : vector<32x128xf32>
    %465 = vector.extract_strided_slice %464 {offsets = [17, 0], sizes = [1, 128], strides = [1, 1]} : vector<32x128xf32> to vector<1x128xf32>
    %c17_i32 = arith.constant 17 : i32
    %466 = vector.broadcast %c17_i32 : i32 to vector<1x128xi32>
    %467 = arith.cmpi eq, %2, %466 : vector<1x128xi32>
    %cst_109 = arith.constant 0.000000e+00 : f32
    %468 = vector.broadcast %cst_109 : f32 to vector<1x128xf32>
    %469 = arith.select %467, %465, %468 : vector<1x128xi1>, vector<1x128xf32>
    %cst_110 = arith.constant dense<0.000000e+00> : vector<1xf32>
    %470 = vector.multi_reduction <add>, %469, %cst_110 [1] : vector<1x128xf32> to vector<1xf32>
    %471 = vector.shape_cast %470 : vector<1xf32> to vector<1x1xf32>
    %472 = vector.broadcast %471 : vector<1x1xf32> to vector<1x128xf32>
    %473 = arith.divf %465, %472 : vector<1x128xf32>
    %c17_i32_111 = arith.constant 17 : i32
    %474 = vector.broadcast %c17_i32_111 : i32 to vector<1x128xi32>
    %475 = arith.cmpi eq, %2, %474 : vector<1x128xi32>
    %cst_112 = arith.constant 0.000000e+00 : f32
    %476 = vector.shape_cast %475 : vector<1x128xi1> to vector<1x128xi1>
    %477 = vector.broadcast %476 : vector<1x128xi1> to vector<32x128xi1>
    %478 = vector.broadcast %cst_112 : f32 to vector<32x128xf32>
    %479 = arith.select %477, %464, %478 : vector<32x128xi1>, vector<32x128xf32>
    %cst_113 = arith.constant dense<0.000000e+00> : vector<32xf32>
    %480 = vector.multi_reduction <add>, %479, %cst_113 [1] : vector<32x128xf32> to vector<32xf32>
    %481 = vector.shape_cast %480 : vector<32xf32> to vector<32x1xf32>
    %c17_i32_114 = arith.constant 17 : i32
    %482 = vector.broadcast %c17_i32_114 : i32 to vector<32x1xi32>
    %483 = arith.cmpi eq, %3, %482 : vector<32x1xi32>
    %484 = arith.extui %483 : vector<32x1xi1> to vector<32x1xi32>
    %485 = arith.sitofp %484 : vector<32x1xi32> to vector<32x1xf32>
    %486 = arith.subf %481, %485 : vector<32x1xf32>
    %487 = vector.broadcast %486 : vector<32x1xf32> to vector<32x128xf32>
    %488 = vector.broadcast %473 : vector<1x128xf32> to vector<32x128xf32>
    %489 = arith.mulf %487, %488 : vector<32x128xf32>
    %490 = arith.subf %464, %489 : vector<32x128xf32>
    %491 = vector.extract_strided_slice %490 {offsets = [18, 0], sizes = [1, 128], strides = [1, 1]} : vector<32x128xf32> to vector<1x128xf32>
    %c18_i32 = arith.constant 18 : i32
    %492 = vector.broadcast %c18_i32 : i32 to vector<1x128xi32>
    %493 = arith.cmpi eq, %2, %492 : vector<1x128xi32>
    %cst_115 = arith.constant 0.000000e+00 : f32
    %494 = vector.broadcast %cst_115 : f32 to vector<1x128xf32>
    %495 = arith.select %493, %491, %494 : vector<1x128xi1>, vector<1x128xf32>
    %cst_116 = arith.constant dense<0.000000e+00> : vector<1xf32>
    %496 = vector.multi_reduction <add>, %495, %cst_116 [1] : vector<1x128xf32> to vector<1xf32>
    %497 = vector.shape_cast %496 : vector<1xf32> to vector<1x1xf32>
    %498 = vector.broadcast %497 : vector<1x1xf32> to vector<1x128xf32>
    %499 = arith.divf %491, %498 : vector<1x128xf32>
    %c18_i32_117 = arith.constant 18 : i32
    %500 = vector.broadcast %c18_i32_117 : i32 to vector<1x128xi32>
    %501 = arith.cmpi eq, %2, %500 : vector<1x128xi32>
    %cst_118 = arith.constant 0.000000e+00 : f32
    %502 = vector.shape_cast %501 : vector<1x128xi1> to vector<1x128xi1>
    %503 = vector.broadcast %502 : vector<1x128xi1> to vector<32x128xi1>
    %504 = vector.broadcast %cst_118 : f32 to vector<32x128xf32>
    %505 = arith.select %503, %490, %504 : vector<32x128xi1>, vector<32x128xf32>
    %cst_119 = arith.constant dense<0.000000e+00> : vector<32xf32>
    %506 = vector.multi_reduction <add>, %505, %cst_119 [1] : vector<32x128xf32> to vector<32xf32>
    %507 = vector.shape_cast %506 : vector<32xf32> to vector<32x1xf32>
    %c18_i32_120 = arith.constant 18 : i32
    %508 = vector.broadcast %c18_i32_120 : i32 to vector<32x1xi32>
    %509 = arith.cmpi eq, %3, %508 : vector<32x1xi32>
    %510 = arith.extui %509 : vector<32x1xi1> to vector<32x1xi32>
    %511 = arith.sitofp %510 : vector<32x1xi32> to vector<32x1xf32>
    %512 = arith.subf %507, %511 : vector<32x1xf32>
    %513 = vector.broadcast %512 : vector<32x1xf32> to vector<32x128xf32>
    %514 = vector.broadcast %499 : vector<1x128xf32> to vector<32x128xf32>
    %515 = arith.mulf %513, %514 : vector<32x128xf32>
    %516 = arith.subf %490, %515 : vector<32x128xf32>
    %517 = vector.extract_strided_slice %516 {offsets = [19, 0], sizes = [1, 128], strides = [1, 1]} : vector<32x128xf32> to vector<1x128xf32>
    %c19_i32 = arith.constant 19 : i32
    %518 = vector.broadcast %c19_i32 : i32 to vector<1x128xi32>
    %519 = arith.cmpi eq, %2, %518 : vector<1x128xi32>
    %cst_121 = arith.constant 0.000000e+00 : f32
    %520 = vector.broadcast %cst_121 : f32 to vector<1x128xf32>
    %521 = arith.select %519, %517, %520 : vector<1x128xi1>, vector<1x128xf32>
    %cst_122 = arith.constant dense<0.000000e+00> : vector<1xf32>
    %522 = vector.multi_reduction <add>, %521, %cst_122 [1] : vector<1x128xf32> to vector<1xf32>
    %523 = vector.shape_cast %522 : vector<1xf32> to vector<1x1xf32>
    %524 = vector.broadcast %523 : vector<1x1xf32> to vector<1x128xf32>
    %525 = arith.divf %517, %524 : vector<1x128xf32>
    %c19_i32_123 = arith.constant 19 : i32
    %526 = vector.broadcast %c19_i32_123 : i32 to vector<1x128xi32>
    %527 = arith.cmpi eq, %2, %526 : vector<1x128xi32>
    %cst_124 = arith.constant 0.000000e+00 : f32
    %528 = vector.shape_cast %527 : vector<1x128xi1> to vector<1x128xi1>
    %529 = vector.broadcast %528 : vector<1x128xi1> to vector<32x128xi1>
    %530 = vector.broadcast %cst_124 : f32 to vector<32x128xf32>
    %531 = arith.select %529, %516, %530 : vector<32x128xi1>, vector<32x128xf32>
    %cst_125 = arith.constant dense<0.000000e+00> : vector<32xf32>
    %532 = vector.multi_reduction <add>, %531, %cst_125 [1] : vector<32x128xf32> to vector<32xf32>
    %533 = vector.shape_cast %532 : vector<32xf32> to vector<32x1xf32>
    %c19_i32_126 = arith.constant 19 : i32
    %534 = vector.broadcast %c19_i32_126 : i32 to vector<32x1xi32>
    %535 = arith.cmpi eq, %3, %534 : vector<32x1xi32>
    %536 = arith.extui %535 : vector<32x1xi1> to vector<32x1xi32>
    %537 = arith.sitofp %536 : vector<32x1xi32> to vector<32x1xf32>
    %538 = arith.subf %533, %537 : vector<32x1xf32>
    %539 = vector.broadcast %538 : vector<32x1xf32> to vector<32x128xf32>
    %540 = vector.broadcast %525 : vector<1x128xf32> to vector<32x128xf32>
    %541 = arith.mulf %539, %540 : vector<32x128xf32>
    %542 = arith.subf %516, %541 : vector<32x128xf32>
    %543 = vector.extract_strided_slice %542 {offsets = [20, 0], sizes = [1, 128], strides = [1, 1]} : vector<32x128xf32> to vector<1x128xf32>
    %c20_i32 = arith.constant 20 : i32
    %544 = vector.broadcast %c20_i32 : i32 to vector<1x128xi32>
    %545 = arith.cmpi eq, %2, %544 : vector<1x128xi32>
    %cst_127 = arith.constant 0.000000e+00 : f32
    %546 = vector.broadcast %cst_127 : f32 to vector<1x128xf32>
    %547 = arith.select %545, %543, %546 : vector<1x128xi1>, vector<1x128xf32>
    %cst_128 = arith.constant dense<0.000000e+00> : vector<1xf32>
    %548 = vector.multi_reduction <add>, %547, %cst_128 [1] : vector<1x128xf32> to vector<1xf32>
    %549 = vector.shape_cast %548 : vector<1xf32> to vector<1x1xf32>
    %550 = vector.broadcast %549 : vector<1x1xf32> to vector<1x128xf32>
    %551 = arith.divf %543, %550 : vector<1x128xf32>
    %c20_i32_129 = arith.constant 20 : i32
    %552 = vector.broadcast %c20_i32_129 : i32 to vector<1x128xi32>
    %553 = arith.cmpi eq, %2, %552 : vector<1x128xi32>
    %cst_130 = arith.constant 0.000000e+00 : f32
    %554 = vector.shape_cast %553 : vector<1x128xi1> to vector<1x128xi1>
    %555 = vector.broadcast %554 : vector<1x128xi1> to vector<32x128xi1>
    %556 = vector.broadcast %cst_130 : f32 to vector<32x128xf32>
    %557 = arith.select %555, %542, %556 : vector<32x128xi1>, vector<32x128xf32>
    %cst_131 = arith.constant dense<0.000000e+00> : vector<32xf32>
    %558 = vector.multi_reduction <add>, %557, %cst_131 [1] : vector<32x128xf32> to vector<32xf32>
    %559 = vector.shape_cast %558 : vector<32xf32> to vector<32x1xf32>
    %c20_i32_132 = arith.constant 20 : i32
    %560 = vector.broadcast %c20_i32_132 : i32 to vector<32x1xi32>
    %561 = arith.cmpi eq, %3, %560 : vector<32x1xi32>
    %562 = arith.extui %561 : vector<32x1xi1> to vector<32x1xi32>
    %563 = arith.sitofp %562 : vector<32x1xi32> to vector<32x1xf32>
    %564 = arith.subf %559, %563 : vector<32x1xf32>
    %565 = vector.broadcast %564 : vector<32x1xf32> to vector<32x128xf32>
    %566 = vector.broadcast %551 : vector<1x128xf32> to vector<32x128xf32>
    %567 = arith.mulf %565, %566 : vector<32x128xf32>
    %568 = arith.subf %542, %567 : vector<32x128xf32>
    %569 = vector.extract_strided_slice %568 {offsets = [21, 0], sizes = [1, 128], strides = [1, 1]} : vector<32x128xf32> to vector<1x128xf32>
    %c21_i32 = arith.constant 21 : i32
    %570 = vector.broadcast %c21_i32 : i32 to vector<1x128xi32>
    %571 = arith.cmpi eq, %2, %570 : vector<1x128xi32>
    %cst_133 = arith.constant 0.000000e+00 : f32
    %572 = vector.broadcast %cst_133 : f32 to vector<1x128xf32>
    %573 = arith.select %571, %569, %572 : vector<1x128xi1>, vector<1x128xf32>
    %cst_134 = arith.constant dense<0.000000e+00> : vector<1xf32>
    %574 = vector.multi_reduction <add>, %573, %cst_134 [1] : vector<1x128xf32> to vector<1xf32>
    %575 = vector.shape_cast %574 : vector<1xf32> to vector<1x1xf32>
    %576 = vector.broadcast %575 : vector<1x1xf32> to vector<1x128xf32>
    %577 = arith.divf %569, %576 : vector<1x128xf32>
    %c21_i32_135 = arith.constant 21 : i32
    %578 = vector.broadcast %c21_i32_135 : i32 to vector<1x128xi32>
    %579 = arith.cmpi eq, %2, %578 : vector<1x128xi32>
    %cst_136 = arith.constant 0.000000e+00 : f32
    %580 = vector.shape_cast %579 : vector<1x128xi1> to vector<1x128xi1>
    %581 = vector.broadcast %580 : vector<1x128xi1> to vector<32x128xi1>
    %582 = vector.broadcast %cst_136 : f32 to vector<32x128xf32>
    %583 = arith.select %581, %568, %582 : vector<32x128xi1>, vector<32x128xf32>
    %cst_137 = arith.constant dense<0.000000e+00> : vector<32xf32>
    %584 = vector.multi_reduction <add>, %583, %cst_137 [1] : vector<32x128xf32> to vector<32xf32>
    %585 = vector.shape_cast %584 : vector<32xf32> to vector<32x1xf32>
    %c21_i32_138 = arith.constant 21 : i32
    %586 = vector.broadcast %c21_i32_138 : i32 to vector<32x1xi32>
    %587 = arith.cmpi eq, %3, %586 : vector<32x1xi32>
    %588 = arith.extui %587 : vector<32x1xi1> to vector<32x1xi32>
    %589 = arith.sitofp %588 : vector<32x1xi32> to vector<32x1xf32>
    %590 = arith.subf %585, %589 : vector<32x1xf32>
    %591 = vector.broadcast %590 : vector<32x1xf32> to vector<32x128xf32>
    %592 = vector.broadcast %577 : vector<1x128xf32> to vector<32x128xf32>
    %593 = arith.mulf %591, %592 : vector<32x128xf32>
    %594 = arith.subf %568, %593 : vector<32x128xf32>
    %595 = vector.extract_strided_slice %594 {offsets = [22, 0], sizes = [1, 128], strides = [1, 1]} : vector<32x128xf32> to vector<1x128xf32>
    %c22_i32 = arith.constant 22 : i32
    %596 = vector.broadcast %c22_i32 : i32 to vector<1x128xi32>
    %597 = arith.cmpi eq, %2, %596 : vector<1x128xi32>
    %cst_139 = arith.constant 0.000000e+00 : f32
    %598 = vector.broadcast %cst_139 : f32 to vector<1x128xf32>
    %599 = arith.select %597, %595, %598 : vector<1x128xi1>, vector<1x128xf32>
    %cst_140 = arith.constant dense<0.000000e+00> : vector<1xf32>
    %600 = vector.multi_reduction <add>, %599, %cst_140 [1] : vector<1x128xf32> to vector<1xf32>
    %601 = vector.shape_cast %600 : vector<1xf32> to vector<1x1xf32>
    %602 = vector.broadcast %601 : vector<1x1xf32> to vector<1x128xf32>
    %603 = arith.divf %595, %602 : vector<1x128xf32>
    %c22_i32_141 = arith.constant 22 : i32
    %604 = vector.broadcast %c22_i32_141 : i32 to vector<1x128xi32>
    %605 = arith.cmpi eq, %2, %604 : vector<1x128xi32>
    %cst_142 = arith.constant 0.000000e+00 : f32
    %606 = vector.shape_cast %605 : vector<1x128xi1> to vector<1x128xi1>
    %607 = vector.broadcast %606 : vector<1x128xi1> to vector<32x128xi1>
    %608 = vector.broadcast %cst_142 : f32 to vector<32x128xf32>
    %609 = arith.select %607, %594, %608 : vector<32x128xi1>, vector<32x128xf32>
    %cst_143 = arith.constant dense<0.000000e+00> : vector<32xf32>
    %610 = vector.multi_reduction <add>, %609, %cst_143 [1] : vector<32x128xf32> to vector<32xf32>
    %611 = vector.shape_cast %610 : vector<32xf32> to vector<32x1xf32>
    %c22_i32_144 = arith.constant 22 : i32
    %612 = vector.broadcast %c22_i32_144 : i32 to vector<32x1xi32>
    %613 = arith.cmpi eq, %3, %612 : vector<32x1xi32>
    %614 = arith.extui %613 : vector<32x1xi1> to vector<32x1xi32>
    %615 = arith.sitofp %614 : vector<32x1xi32> to vector<32x1xf32>
    %616 = arith.subf %611, %615 : vector<32x1xf32>
    %617 = vector.broadcast %616 : vector<32x1xf32> to vector<32x128xf32>
    %618 = vector.broadcast %603 : vector<1x128xf32> to vector<32x128xf32>
    %619 = arith.mulf %617, %618 : vector<32x128xf32>
    %620 = arith.subf %594, %619 : vector<32x128xf32>
    %621 = vector.extract_strided_slice %620 {offsets = [23, 0], sizes = [1, 128], strides = [1, 1]} : vector<32x128xf32> to vector<1x128xf32>
    %c23_i32 = arith.constant 23 : i32
    %622 = vector.broadcast %c23_i32 : i32 to vector<1x128xi32>
    %623 = arith.cmpi eq, %2, %622 : vector<1x128xi32>
    %cst_145 = arith.constant 0.000000e+00 : f32
    %624 = vector.broadcast %cst_145 : f32 to vector<1x128xf32>
    %625 = arith.select %623, %621, %624 : vector<1x128xi1>, vector<1x128xf32>
    %cst_146 = arith.constant dense<0.000000e+00> : vector<1xf32>
    %626 = vector.multi_reduction <add>, %625, %cst_146 [1] : vector<1x128xf32> to vector<1xf32>
    %627 = vector.shape_cast %626 : vector<1xf32> to vector<1x1xf32>
    %628 = vector.broadcast %627 : vector<1x1xf32> to vector<1x128xf32>
    %629 = arith.divf %621, %628 : vector<1x128xf32>
    %c23_i32_147 = arith.constant 23 : i32
    %630 = vector.broadcast %c23_i32_147 : i32 to vector<1x128xi32>
    %631 = arith.cmpi eq, %2, %630 : vector<1x128xi32>
    %cst_148 = arith.constant 0.000000e+00 : f32
    %632 = vector.shape_cast %631 : vector<1x128xi1> to vector<1x128xi1>
    %633 = vector.broadcast %632 : vector<1x128xi1> to vector<32x128xi1>
    %634 = vector.broadcast %cst_148 : f32 to vector<32x128xf32>
    %635 = arith.select %633, %620, %634 : vector<32x128xi1>, vector<32x128xf32>
    %cst_149 = arith.constant dense<0.000000e+00> : vector<32xf32>
    %636 = vector.multi_reduction <add>, %635, %cst_149 [1] : vector<32x128xf32> to vector<32xf32>
    %637 = vector.shape_cast %636 : vector<32xf32> to vector<32x1xf32>
    %c23_i32_150 = arith.constant 23 : i32
    %638 = vector.broadcast %c23_i32_150 : i32 to vector<32x1xi32>
    %639 = arith.cmpi eq, %3, %638 : vector<32x1xi32>
    %640 = arith.extui %639 : vector<32x1xi1> to vector<32x1xi32>
    %641 = arith.sitofp %640 : vector<32x1xi32> to vector<32x1xf32>
    %642 = arith.subf %637, %641 : vector<32x1xf32>
    %643 = vector.broadcast %642 : vector<32x1xf32> to vector<32x128xf32>
    %644 = vector.broadcast %629 : vector<1x128xf32> to vector<32x128xf32>
    %645 = arith.mulf %643, %644 : vector<32x128xf32>
    %646 = arith.subf %620, %645 : vector<32x128xf32>
    %647 = vector.extract_strided_slice %646 {offsets = [24, 0], sizes = [1, 128], strides = [1, 1]} : vector<32x128xf32> to vector<1x128xf32>
    %c24_i32 = arith.constant 24 : i32
    %648 = vector.broadcast %c24_i32 : i32 to vector<1x128xi32>
    %649 = arith.cmpi eq, %2, %648 : vector<1x128xi32>
    %cst_151 = arith.constant 0.000000e+00 : f32
    %650 = vector.broadcast %cst_151 : f32 to vector<1x128xf32>
    %651 = arith.select %649, %647, %650 : vector<1x128xi1>, vector<1x128xf32>
    %cst_152 = arith.constant dense<0.000000e+00> : vector<1xf32>
    %652 = vector.multi_reduction <add>, %651, %cst_152 [1] : vector<1x128xf32> to vector<1xf32>
    %653 = vector.shape_cast %652 : vector<1xf32> to vector<1x1xf32>
    %654 = vector.broadcast %653 : vector<1x1xf32> to vector<1x128xf32>
    %655 = arith.divf %647, %654 : vector<1x128xf32>
    %c24_i32_153 = arith.constant 24 : i32
    %656 = vector.broadcast %c24_i32_153 : i32 to vector<1x128xi32>
    %657 = arith.cmpi eq, %2, %656 : vector<1x128xi32>
    %cst_154 = arith.constant 0.000000e+00 : f32
    %658 = vector.shape_cast %657 : vector<1x128xi1> to vector<1x128xi1>
    %659 = vector.broadcast %658 : vector<1x128xi1> to vector<32x128xi1>
    %660 = vector.broadcast %cst_154 : f32 to vector<32x128xf32>
    %661 = arith.select %659, %646, %660 : vector<32x128xi1>, vector<32x128xf32>
    %cst_155 = arith.constant dense<0.000000e+00> : vector<32xf32>
    %662 = vector.multi_reduction <add>, %661, %cst_155 [1] : vector<32x128xf32> to vector<32xf32>
    %663 = vector.shape_cast %662 : vector<32xf32> to vector<32x1xf32>
    %c24_i32_156 = arith.constant 24 : i32
    %664 = vector.broadcast %c24_i32_156 : i32 to vector<32x1xi32>
    %665 = arith.cmpi eq, %3, %664 : vector<32x1xi32>
    %666 = arith.extui %665 : vector<32x1xi1> to vector<32x1xi32>
    %667 = arith.sitofp %666 : vector<32x1xi32> to vector<32x1xf32>
    %668 = arith.subf %663, %667 : vector<32x1xf32>
    %669 = vector.broadcast %668 : vector<32x1xf32> to vector<32x128xf32>
    %670 = vector.broadcast %655 : vector<1x128xf32> to vector<32x128xf32>
    %671 = arith.mulf %669, %670 : vector<32x128xf32>
    %672 = arith.subf %646, %671 : vector<32x128xf32>
    %673 = vector.extract_strided_slice %672 {offsets = [25, 0], sizes = [1, 128], strides = [1, 1]} : vector<32x128xf32> to vector<1x128xf32>
    %c25_i32 = arith.constant 25 : i32
    %674 = vector.broadcast %c25_i32 : i32 to vector<1x128xi32>
    %675 = arith.cmpi eq, %2, %674 : vector<1x128xi32>
    %cst_157 = arith.constant 0.000000e+00 : f32
    %676 = vector.broadcast %cst_157 : f32 to vector<1x128xf32>
    %677 = arith.select %675, %673, %676 : vector<1x128xi1>, vector<1x128xf32>
    %cst_158 = arith.constant dense<0.000000e+00> : vector<1xf32>
    %678 = vector.multi_reduction <add>, %677, %cst_158 [1] : vector<1x128xf32> to vector<1xf32>
    %679 = vector.shape_cast %678 : vector<1xf32> to vector<1x1xf32>
    %680 = vector.broadcast %679 : vector<1x1xf32> to vector<1x128xf32>
    %681 = arith.divf %673, %680 : vector<1x128xf32>
    %c25_i32_159 = arith.constant 25 : i32
    %682 = vector.broadcast %c25_i32_159 : i32 to vector<1x128xi32>
    %683 = arith.cmpi eq, %2, %682 : vector<1x128xi32>
    %cst_160 = arith.constant 0.000000e+00 : f32
    %684 = vector.shape_cast %683 : vector<1x128xi1> to vector<1x128xi1>
    %685 = vector.broadcast %684 : vector<1x128xi1> to vector<32x128xi1>
    %686 = vector.broadcast %cst_160 : f32 to vector<32x128xf32>
    %687 = arith.select %685, %672, %686 : vector<32x128xi1>, vector<32x128xf32>
    %cst_161 = arith.constant dense<0.000000e+00> : vector<32xf32>
    %688 = vector.multi_reduction <add>, %687, %cst_161 [1] : vector<32x128xf32> to vector<32xf32>
    %689 = vector.shape_cast %688 : vector<32xf32> to vector<32x1xf32>
    %c25_i32_162 = arith.constant 25 : i32
    %690 = vector.broadcast %c25_i32_162 : i32 to vector<32x1xi32>
    %691 = arith.cmpi eq, %3, %690 : vector<32x1xi32>
    %692 = arith.extui %691 : vector<32x1xi1> to vector<32x1xi32>
    %693 = arith.sitofp %692 : vector<32x1xi32> to vector<32x1xf32>
    %694 = arith.subf %689, %693 : vector<32x1xf32>
    %695 = vector.broadcast %694 : vector<32x1xf32> to vector<32x128xf32>
    %696 = vector.broadcast %681 : vector<1x128xf32> to vector<32x128xf32>
    %697 = arith.mulf %695, %696 : vector<32x128xf32>
    %698 = arith.subf %672, %697 : vector<32x128xf32>
    %699 = vector.extract_strided_slice %698 {offsets = [26, 0], sizes = [1, 128], strides = [1, 1]} : vector<32x128xf32> to vector<1x128xf32>
    %c26_i32 = arith.constant 26 : i32
    %700 = vector.broadcast %c26_i32 : i32 to vector<1x128xi32>
    %701 = arith.cmpi eq, %2, %700 : vector<1x128xi32>
    %cst_163 = arith.constant 0.000000e+00 : f32
    %702 = vector.broadcast %cst_163 : f32 to vector<1x128xf32>
    %703 = arith.select %701, %699, %702 : vector<1x128xi1>, vector<1x128xf32>
    %cst_164 = arith.constant dense<0.000000e+00> : vector<1xf32>
    %704 = vector.multi_reduction <add>, %703, %cst_164 [1] : vector<1x128xf32> to vector<1xf32>
    %705 = vector.shape_cast %704 : vector<1xf32> to vector<1x1xf32>
    %706 = vector.broadcast %705 : vector<1x1xf32> to vector<1x128xf32>
    %707 = arith.divf %699, %706 : vector<1x128xf32>
    %c26_i32_165 = arith.constant 26 : i32
    %708 = vector.broadcast %c26_i32_165 : i32 to vector<1x128xi32>
    %709 = arith.cmpi eq, %2, %708 : vector<1x128xi32>
    %cst_166 = arith.constant 0.000000e+00 : f32
    %710 = vector.shape_cast %709 : vector<1x128xi1> to vector<1x128xi1>
    %711 = vector.broadcast %710 : vector<1x128xi1> to vector<32x128xi1>
    %712 = vector.broadcast %cst_166 : f32 to vector<32x128xf32>
    %713 = arith.select %711, %698, %712 : vector<32x128xi1>, vector<32x128xf32>
    %cst_167 = arith.constant dense<0.000000e+00> : vector<32xf32>
    %714 = vector.multi_reduction <add>, %713, %cst_167 [1] : vector<32x128xf32> to vector<32xf32>
    %715 = vector.shape_cast %714 : vector<32xf32> to vector<32x1xf32>
    %c26_i32_168 = arith.constant 26 : i32
    %716 = vector.broadcast %c26_i32_168 : i32 to vector<32x1xi32>
    %717 = arith.cmpi eq, %3, %716 : vector<32x1xi32>
    %718 = arith.extui %717 : vector<32x1xi1> to vector<32x1xi32>
    %719 = arith.sitofp %718 : vector<32x1xi32> to vector<32x1xf32>
    %720 = arith.subf %715, %719 : vector<32x1xf32>
    %721 = vector.broadcast %720 : vector<32x1xf32> to vector<32x128xf32>
    %722 = vector.broadcast %707 : vector<1x128xf32> to vector<32x128xf32>
    %723 = arith.mulf %721, %722 : vector<32x128xf32>
    %724 = arith.subf %698, %723 : vector<32x128xf32>
    %725 = vector.extract_strided_slice %724 {offsets = [27, 0], sizes = [1, 128], strides = [1, 1]} : vector<32x128xf32> to vector<1x128xf32>
    %c27_i32 = arith.constant 27 : i32
    %726 = vector.broadcast %c27_i32 : i32 to vector<1x128xi32>
    %727 = arith.cmpi eq, %2, %726 : vector<1x128xi32>
    %cst_169 = arith.constant 0.000000e+00 : f32
    %728 = vector.broadcast %cst_169 : f32 to vector<1x128xf32>
    %729 = arith.select %727, %725, %728 : vector<1x128xi1>, vector<1x128xf32>
    %cst_170 = arith.constant dense<0.000000e+00> : vector<1xf32>
    %730 = vector.multi_reduction <add>, %729, %cst_170 [1] : vector<1x128xf32> to vector<1xf32>
    %731 = vector.shape_cast %730 : vector<1xf32> to vector<1x1xf32>
    %732 = vector.broadcast %731 : vector<1x1xf32> to vector<1x128xf32>
    %733 = arith.divf %725, %732 : vector<1x128xf32>
    %c27_i32_171 = arith.constant 27 : i32
    %734 = vector.broadcast %c27_i32_171 : i32 to vector<1x128xi32>
    %735 = arith.cmpi eq, %2, %734 : vector<1x128xi32>
    %cst_172 = arith.constant 0.000000e+00 : f32
    %736 = vector.shape_cast %735 : vector<1x128xi1> to vector<1x128xi1>
    %737 = vector.broadcast %736 : vector<1x128xi1> to vector<32x128xi1>
    %738 = vector.broadcast %cst_172 : f32 to vector<32x128xf32>
    %739 = arith.select %737, %724, %738 : vector<32x128xi1>, vector<32x128xf32>
    %cst_173 = arith.constant dense<0.000000e+00> : vector<32xf32>
    %740 = vector.multi_reduction <add>, %739, %cst_173 [1] : vector<32x128xf32> to vector<32xf32>
    %741 = vector.shape_cast %740 : vector<32xf32> to vector<32x1xf32>
    %c27_i32_174 = arith.constant 27 : i32
    %742 = vector.broadcast %c27_i32_174 : i32 to vector<32x1xi32>
    %743 = arith.cmpi eq, %3, %742 : vector<32x1xi32>
    %744 = arith.extui %743 : vector<32x1xi1> to vector<32x1xi32>
    %745 = arith.sitofp %744 : vector<32x1xi32> to vector<32x1xf32>
    %746 = arith.subf %741, %745 : vector<32x1xf32>
    %747 = vector.broadcast %746 : vector<32x1xf32> to vector<32x128xf32>
    %748 = vector.broadcast %733 : vector<1x128xf32> to vector<32x128xf32>
    %749 = arith.mulf %747, %748 : vector<32x128xf32>
    %750 = arith.subf %724, %749 : vector<32x128xf32>
    %751 = vector.extract_strided_slice %750 {offsets = [28, 0], sizes = [1, 128], strides = [1, 1]} : vector<32x128xf32> to vector<1x128xf32>
    %c28_i32 = arith.constant 28 : i32
    %752 = vector.broadcast %c28_i32 : i32 to vector<1x128xi32>
    %753 = arith.cmpi eq, %2, %752 : vector<1x128xi32>
    %cst_175 = arith.constant 0.000000e+00 : f32
    %754 = vector.broadcast %cst_175 : f32 to vector<1x128xf32>
    %755 = arith.select %753, %751, %754 : vector<1x128xi1>, vector<1x128xf32>
    %cst_176 = arith.constant dense<0.000000e+00> : vector<1xf32>
    %756 = vector.multi_reduction <add>, %755, %cst_176 [1] : vector<1x128xf32> to vector<1xf32>
    %757 = vector.shape_cast %756 : vector<1xf32> to vector<1x1xf32>
    %758 = vector.broadcast %757 : vector<1x1xf32> to vector<1x128xf32>
    %759 = arith.divf %751, %758 : vector<1x128xf32>
    %c28_i32_177 = arith.constant 28 : i32
    %760 = vector.broadcast %c28_i32_177 : i32 to vector<1x128xi32>
    %761 = arith.cmpi eq, %2, %760 : vector<1x128xi32>
    %cst_178 = arith.constant 0.000000e+00 : f32
    %762 = vector.shape_cast %761 : vector<1x128xi1> to vector<1x128xi1>
    %763 = vector.broadcast %762 : vector<1x128xi1> to vector<32x128xi1>
    %764 = vector.broadcast %cst_178 : f32 to vector<32x128xf32>
    %765 = arith.select %763, %750, %764 : vector<32x128xi1>, vector<32x128xf32>
    %cst_179 = arith.constant dense<0.000000e+00> : vector<32xf32>
    %766 = vector.multi_reduction <add>, %765, %cst_179 [1] : vector<32x128xf32> to vector<32xf32>
    %767 = vector.shape_cast %766 : vector<32xf32> to vector<32x1xf32>
    %c28_i32_180 = arith.constant 28 : i32
    %768 = vector.broadcast %c28_i32_180 : i32 to vector<32x1xi32>
    %769 = arith.cmpi eq, %3, %768 : vector<32x1xi32>
    %770 = arith.extui %769 : vector<32x1xi1> to vector<32x1xi32>
    %771 = arith.sitofp %770 : vector<32x1xi32> to vector<32x1xf32>
    %772 = arith.subf %767, %771 : vector<32x1xf32>
    %773 = vector.broadcast %772 : vector<32x1xf32> to vector<32x128xf32>
    %774 = vector.broadcast %759 : vector<1x128xf32> to vector<32x128xf32>
    %775 = arith.mulf %773, %774 : vector<32x128xf32>
    %776 = arith.subf %750, %775 : vector<32x128xf32>
    %777 = vector.extract_strided_slice %776 {offsets = [29, 0], sizes = [1, 128], strides = [1, 1]} : vector<32x128xf32> to vector<1x128xf32>
    %c29_i32 = arith.constant 29 : i32
    %778 = vector.broadcast %c29_i32 : i32 to vector<1x128xi32>
    %779 = arith.cmpi eq, %2, %778 : vector<1x128xi32>
    %cst_181 = arith.constant 0.000000e+00 : f32
    %780 = vector.broadcast %cst_181 : f32 to vector<1x128xf32>
    %781 = arith.select %779, %777, %780 : vector<1x128xi1>, vector<1x128xf32>
    %cst_182 = arith.constant dense<0.000000e+00> : vector<1xf32>
    %782 = vector.multi_reduction <add>, %781, %cst_182 [1] : vector<1x128xf32> to vector<1xf32>
    %783 = vector.shape_cast %782 : vector<1xf32> to vector<1x1xf32>
    %784 = vector.broadcast %783 : vector<1x1xf32> to vector<1x128xf32>
    %785 = arith.divf %777, %784 : vector<1x128xf32>
    %c29_i32_183 = arith.constant 29 : i32
    %786 = vector.broadcast %c29_i32_183 : i32 to vector<1x128xi32>
    %787 = arith.cmpi eq, %2, %786 : vector<1x128xi32>
    %cst_184 = arith.constant 0.000000e+00 : f32
    %788 = vector.shape_cast %787 : vector<1x128xi1> to vector<1x128xi1>
    %789 = vector.broadcast %788 : vector<1x128xi1> to vector<32x128xi1>
    %790 = vector.broadcast %cst_184 : f32 to vector<32x128xf32>
    %791 = arith.select %789, %776, %790 : vector<32x128xi1>, vector<32x128xf32>
    %cst_185 = arith.constant dense<0.000000e+00> : vector<32xf32>
    %792 = vector.multi_reduction <add>, %791, %cst_185 [1] : vector<32x128xf32> to vector<32xf32>
    %793 = vector.shape_cast %792 : vector<32xf32> to vector<32x1xf32>
    %c29_i32_186 = arith.constant 29 : i32
    %794 = vector.broadcast %c29_i32_186 : i32 to vector<32x1xi32>
    %795 = arith.cmpi eq, %3, %794 : vector<32x1xi32>
    %796 = arith.extui %795 : vector<32x1xi1> to vector<32x1xi32>
    %797 = arith.sitofp %796 : vector<32x1xi32> to vector<32x1xf32>
    %798 = arith.subf %793, %797 : vector<32x1xf32>
    %799 = vector.broadcast %798 : vector<32x1xf32> to vector<32x128xf32>
    %800 = vector.broadcast %785 : vector<1x128xf32> to vector<32x128xf32>
    %801 = arith.mulf %799, %800 : vector<32x128xf32>
    %802 = arith.subf %776, %801 : vector<32x128xf32>
    %803 = vector.extract_strided_slice %802 {offsets = [30, 0], sizes = [1, 128], strides = [1, 1]} : vector<32x128xf32> to vector<1x128xf32>
    %c30_i32 = arith.constant 30 : i32
    %804 = vector.broadcast %c30_i32 : i32 to vector<1x128xi32>
    %805 = arith.cmpi eq, %2, %804 : vector<1x128xi32>
    %cst_187 = arith.constant 0.000000e+00 : f32
    %806 = vector.broadcast %cst_187 : f32 to vector<1x128xf32>
    %807 = arith.select %805, %803, %806 : vector<1x128xi1>, vector<1x128xf32>
    %cst_188 = arith.constant dense<0.000000e+00> : vector<1xf32>
    %808 = vector.multi_reduction <add>, %807, %cst_188 [1] : vector<1x128xf32> to vector<1xf32>
    %809 = vector.shape_cast %808 : vector<1xf32> to vector<1x1xf32>
    %810 = vector.broadcast %809 : vector<1x1xf32> to vector<1x128xf32>
    %811 = arith.divf %803, %810 : vector<1x128xf32>
    %c30_i32_189 = arith.constant 30 : i32
    %812 = vector.broadcast %c30_i32_189 : i32 to vector<1x128xi32>
    %813 = arith.cmpi eq, %2, %812 : vector<1x128xi32>
    %cst_190 = arith.constant 0.000000e+00 : f32
    %814 = vector.shape_cast %813 : vector<1x128xi1> to vector<1x128xi1>
    %815 = vector.broadcast %814 : vector<1x128xi1> to vector<32x128xi1>
    %816 = vector.broadcast %cst_190 : f32 to vector<32x128xf32>
    %817 = arith.select %815, %802, %816 : vector<32x128xi1>, vector<32x128xf32>
    %cst_191 = arith.constant dense<0.000000e+00> : vector<32xf32>
    %818 = vector.multi_reduction <add>, %817, %cst_191 [1] : vector<32x128xf32> to vector<32xf32>
    %819 = vector.shape_cast %818 : vector<32xf32> to vector<32x1xf32>
    %c30_i32_192 = arith.constant 30 : i32
    %820 = vector.broadcast %c30_i32_192 : i32 to vector<32x1xi32>
    %821 = arith.cmpi eq, %3, %820 : vector<32x1xi32>
    %822 = arith.extui %821 : vector<32x1xi1> to vector<32x1xi32>
    %823 = arith.sitofp %822 : vector<32x1xi32> to vector<32x1xf32>
    %824 = arith.subf %819, %823 : vector<32x1xf32>
    %825 = vector.broadcast %824 : vector<32x1xf32> to vector<32x128xf32>
    %826 = vector.broadcast %811 : vector<1x128xf32> to vector<32x128xf32>
    %827 = arith.mulf %825, %826 : vector<32x128xf32>
    %828 = arith.subf %802, %827 : vector<32x128xf32>
    %829 = vector.extract_strided_slice %828 {offsets = [31, 0], sizes = [1, 128], strides = [1, 1]} : vector<32x128xf32> to vector<1x128xf32>
    %c31_i32 = arith.constant 31 : i32
    %830 = vector.broadcast %c31_i32 : i32 to vector<1x128xi32>
    %831 = arith.cmpi eq, %2, %830 : vector<1x128xi32>
    %cst_193 = arith.constant 0.000000e+00 : f32
    %832 = vector.broadcast %cst_193 : f32 to vector<1x128xf32>
    %833 = arith.select %831, %829, %832 : vector<1x128xi1>, vector<1x128xf32>
    %cst_194 = arith.constant dense<0.000000e+00> : vector<1xf32>
    %834 = vector.multi_reduction <add>, %833, %cst_194 [1] : vector<1x128xf32> to vector<1xf32>
    %835 = vector.shape_cast %834 : vector<1xf32> to vector<1x1xf32>
    %836 = vector.broadcast %835 : vector<1x1xf32> to vector<1x128xf32>
    %837 = arith.divf %829, %836 : vector<1x128xf32>
    %c31_i32_195 = arith.constant 31 : i32
    %838 = vector.broadcast %c31_i32_195 : i32 to vector<1x128xi32>
    %839 = arith.cmpi eq, %2, %838 : vector<1x128xi32>
    %cst_196 = arith.constant 0.000000e+00 : f32
    %840 = vector.shape_cast %839 : vector<1x128xi1> to vector<1x128xi1>
    %841 = vector.broadcast %840 : vector<1x128xi1> to vector<32x128xi1>
    %842 = vector.broadcast %cst_196 : f32 to vector<32x128xf32>
    %843 = arith.select %841, %828, %842 : vector<32x128xi1>, vector<32x128xf32>
    %cst_197 = arith.constant dense<0.000000e+00> : vector<32xf32>
    %844 = vector.multi_reduction <add>, %843, %cst_197 [1] : vector<32x128xf32> to vector<32xf32>
    %845 = vector.shape_cast %844 : vector<32xf32> to vector<32x1xf32>
    %c31_i32_198 = arith.constant 31 : i32
    %846 = vector.broadcast %c31_i32_198 : i32 to vector<32x1xi32>
    %847 = arith.cmpi eq, %3, %846 : vector<32x1xi32>
    %848 = arith.extui %847 : vector<32x1xi1> to vector<32x1xi32>
    %849 = arith.sitofp %848 : vector<32x1xi32> to vector<32x1xf32>
    %850 = arith.subf %845, %849 : vector<32x1xf32>
    %851 = vector.broadcast %850 : vector<32x1xf32> to vector<32x128xf32>
    %852 = vector.broadcast %837 : vector<1x128xf32> to vector<32x128xf32>
    %853 = arith.mulf %851, %852 : vector<32x128xf32>
    %854 = arith.subf %828, %853 : vector<32x128xf32>
    %c96_i32 = arith.constant 96 : i32
    %855 = tpu.dynamic_rotate %854 by %c96_i32 dim 1 : vector<32x128xf32>, i32 -> vector<32x128xf32>
    %c1_i32_199 = arith.constant 1 : i32
    %856 = vector.broadcast %c1_i32_199 : i32 to vector<1x128xi32>
    %857 = arith.cmpi slt, %4, %856 : vector<1x128xi32>
    %cst_200 = arith.constant 0.000000e+00 : f32
    %858 = vector.shape_cast %857 : vector<1x128xi1> to vector<1x128xi1>
    %859 = vector.broadcast %858 : vector<1x128xi1> to vector<32x128xi1>
    %860 = vector.broadcast %cst_200 : f32 to vector<32x128xf32>
    %861 = arith.select %859, %855, %860 : vector<32x128xi1>, vector<32x128xf32>
    %c0_201 = arith.constant 0 : index
    %c0_202 = arith.constant 0 : index
    %862 = vector.load %arg3[%c0_201, %c0_202] : memref<32x128xf32, #tpu.memory_space<vmem>>, vector<32x128xf32>
    tpu.vector_store %arg3[%c0_201, %c0_202], %861 {strides = array<i32>} : memref<32x128xf32, #tpu.memory_space<vmem>>, vector<32x128xf32>,
    return
  }
}

</mosaic_0001>

<bundles_post_ra>
// kernel: tpu_custom_call.1
= control target key start
LH: loop header
LB: loop body
LE: loop exit
PB: predicated region body
PF: predicated region fallthrough
CT: control target
= control target key end

     0   :  { %8 = vsyncpa [#allocation5], 0  ;;  %s2558_s0 = inlined_call_operand.hbm [shape: f32[2], index: 0, kind: input, shape index: {}]   ;;  %s2559_s1 = inlined_call_operand.hbm [shape: f32[2,128], index: 1, kind: input, shape index: {}]   ;;  %s2560_s2 = inlined_call_operand.hbm [shape: f32[32,128], index: 2, kind: input, shape index: {}]   ;;  %s2561_s3 = inlined_call_operand.hbm [shape: f32[32,128], index: 3, kind: output, shape index: {}]  }
   0x1   :  { %9 = vsyncpa [#allocation3], 0 }
   0x2   :  { %10 = vsyncpa [#allocation8], 0 }
   0x3   :  { %11 = vsyncpa [#allocation4], 0  ;;  %s1888_s12 = smov [#allocation2]   ;;  %s1889_s15 = smov [#allocation6]  }
   0x4   :  { %19 = dma.hbm_to_smem %s2558_s0, 16, %s1888_s12, [#allocation5]  }
   0x5   :  { %s26_s16 = sshll.u32 %s1889_s15, 4  ;;  %s1890_s17 = smov [#allocation7]   ;;  %s27_s16 = int_to_ptr.vmem [resolvable:$true] %s26_s16 }
   0x6   :  { %s35_s18 = sshll.u32 %s1890_s17, 4  ;;  %s1828_s19 = scalar_lea.vmem %s27_s16, 32  ;;  %s36_s18 = int_to_ptr.vmem [resolvable:$true] %s35_s18 }
   0x7   :  { %p1829_p0 = scmp.ne.s32.totalorder %s27_s16, %s1828_s19  ;;  %p1833_p1 = scmp.lt.s32.totalorder %s27_s16, %s27_s16 }
   0x8   :  { %p1834_p2 = scmp.lt.s32.totalorder %s1828_s19, %s1828_s19 }
   0xa   :  { %p1835_p3 = por %p1834_p2, %p1833_p1 }
   0xc   :  { %p1836_p4 = pnand %p1835_p3, %p1829_p0 }
   0xe   :  { %1839 = shalt.err (!%p1836_p4)
}
   0xf   :  { %29 = dma.hbm_to_vmem [thread:$0]  %s2559_s1, 32, %s27_s16, [#allocation3]  }
  0x10   :  { %s1848_s22 = scalar_lea.vmem %s36_s18, 512  ;;  %p1853_p6 = scmp.lt.s32.totalorder %s36_s18, %s36_s18 }
  0x11   :  { %p1849_p5 = scmp.ne.s32.totalorder %s36_s18, %s1848_s22  ;;  %p1854_p7 = scmp.lt.s32.totalorder %s1848_s22, %s1848_s22 }
  0x13   :  { %p1855_p8 = por %p1854_p7, %p1853_p6 }
  0x15   :  { %p1856_p9 = pnand %p1855_p8, %p1849_p5 }
  0x17   :  { %1859 = shalt.err (!%p1856_p9)
}
  0x18   :  { %s1891_s0 = smov 128   ;;  %s1892_s23 = smov 8  }
  0x19   :  { %41 = dma.hbm_to_vmem [thread:$0]  %s2560_s2, 512, %s36_s18, [#allocation8], %s1891_s0, %s1891_s0, %s1892_s23  }
  0x1a   :  { %1880 = dma.done.wait [#allocation5], 16  }
  0x1b   :  { %1881 = vsyncadd [#allocation5], 4294967280 }
  0x1c   :  { %1882 = dma.done.wait [#allocation3], 32  }
  0x1d   :  { %1883 = vsyncadd [#allocation3], 4294967264 }
  0x1e   :  { %1884 = dma.done.wait [#allocation8], 512  }
  0x1f   :  { %1885 = vsyncadd [#allocation8], 4294966784 }
  0x20   :  { %51 = sfence }
  0x21   :  { %s52_s1 = sld [smem:[#allocation2]]  ;;  %v62_v0 = vld [vmem:[#allocation6] sm:$0x1]  ;;  %v54_v6 = vlaneseq  ;;  %v69_v9 = vld [vmem:[#allocation6 + $0x1] sm:$0x1]  ;;  %v71_v14 = vld [vmem:[#allocation7] sm:$0xff] }
  0x22   :  { %s1705_s26 = sld [smem:[#allocation2 + $0x1]]  ;;  %vm93_vm3 = vcmask 1040384   ;;  %v72_v19 = vld [vmem:[#allocation7 + $0x8] sm:$0xff]  ;;  %v1893_v25 = vmov 0.0   ;;  %vm143_vm6 = vcmask 1041409   ;;  %vm193_vm9 = vcmask 1042434  }
  0x23   :  { %v1928_v7 = vshrl.u32 %v54_v6, 7  ;;  %v1930_v8 = vand.u32 127, %v54_v6  ;;  %v73_v62 = vld [vmem:[#allocation7 + $0x10] sm:$0xff]  ;;  %vm243_vm13 = vcmask 1043459   ;;  %s1894_s2 = smov 96   ;;  %s1895_s28 = smov [#allocation9]  }
  0x24   :  { %s1691_s29 = sshll.u32 %s1895_s28, 4  ;;  %s1692_s29 = int_to_ptr.vmem [resolvable:$true] %s1691_s29 }
  0x25   :  { %v1933_v10 = vsub.s32 0, %v1928_v7  ;;  %v1936_v13 = vadd.s32 8, %v1928_v7  ;;  %vm75_vm0 = vcmp.eq.s32.totalorder %v1928_v7, %v1930_v8  ;;  %vm91_vm1 = vcmp.eq.s32.totalorder %v1930_v8, 0  ;;  %s1860_s30 = scalar_lea.vmem %s1692_s29, 512  ;;  %p1865_p11 = scmp.lt.s32.totalorder %s1692_s29, %s1692_s29 }
  0x26   :  { %vm113_vm4 = vcmp.eq.s32.totalorder %v1928_v7, 0  ;;  %vm141_vm5 = vcmp.eq.s32.totalorder %v1930_v8, 1  ;;  %vm163_vm7 = vcmp.eq.s32.totalorder %v1928_v7, 1  ;;  %v1965_v37 = vsub.s32 1, %v1928_v7  ;;  %p1861_p10 = scmp.ne.s32.totalorder %s1692_s29, %s1860_s30  ;;  %p1866_p12 = scmp.lt.s32.totalorder %s1860_s30, %s1860_s30 }
  0x27   :  { %s61_s27 = smul.f32 2.3025851, %s52_s1  ;;  %vm76_vm2 = vcmp.eq.s32.totalorder %v1936_v13, %v1930_v8  ;;  %v1706_v26 = vsel %vm113_vm4, 1.0, %v1893_v25  ;;  %v1707_v39 = vsel %vm163_vm7, 1.0, %v1893_v25  ;;  %vm191_vm8 = vcmp.eq.s32.totalorder %v1930_v8, 2 }
  0x28   :  { %v63_v1 = vstv %s1705_s26  ;;  %vm213_vm10 = vcmp.eq.s32.totalorder %v1928_v7, 2  ;;  %v1981_v53 = vadd.s32 16, %v1928_v7  ;;  %v1984_v54 = vsub.s32 2, %v1928_v7  ;;  %p1867_p13 = por %p1866_p12, %p1865_p11 }
  0x29   :  { %v64_v2 = vmul.f32 %v63_v1, %v62_v0  ;;  %v65_v3 = vstv %s61_s27  ;;  %v1708_v56 = vsel %vm213_vm10, 1.0, %v1893_v25  ;;  %vm241_vm12 = vcmp.eq.s32.totalorder %v1930_v8, 3 }
  0x2a   :  { %vm77_vm11 = vcmp.eq.s32.totalorder %v1981_v53, %v1930_v8  ;;  %vm263_vm14 = vcmp.eq.s32.totalorder %v1928_v7, 3  ;;  %vm291_vm15 = vcmp.eq.s32.totalorder %v1930_v8, 4  ;;  %vm313_vm4 = vcmp.eq.s32.totalorder %v1928_v7, 4  ;;  %p1868_p0 = pnand %p1867_p13, %p1861_p10 }
  0x2b   :  { %v66_v4 = vadd.f32 %v65_v3, %v64_v2  ;;  %vm343_vm7 = vcmask 1045509   ;;  %vm363_vm10 = vcmp.eq.s32.totalorder %v1928_v7, 5 }
  0x2d   :  { %v67_v5 = vmul.f32 1.442695, %v66_v4 }
  0x2f   :  { %1746 = vpow2.f32 %v67_v5 }
  0x3c   :  { %v1747_v11 = vpop.eup %1746 }
  0x3d   :  { %v70_v12 = vmul.f32 %v1747_v11, %v69_v9 }
  0x3f   :  { %v1941_v15 = vrot.slane %v70_v12, %v1933_v10 }
  0x41   :  { %v83_v16 = vsel %vm75_vm0, %v1941_v15, 0.0  ;;  %v84_v20 = vsel %vm76_vm2, %v1941_v15, 0.0  ;;  %v85_v63 = vsel %vm77_vm11, %v1941_v15, 0.0  ;;  %vm293_vm0 = vcmask 1044484  }
  0x42   :  { %v87_v17 = vadd.f32 %v83_v16, %v71_v14  ;;  %v88_v22 = vadd.f32 %v84_v20, %v72_v19  ;;  %v89_v3 = vadd.f32 %v85_v63, %v73_v62  ;;  %vm393_vm11 = vcmask 1046534  }
  0x44   :  { %v92_v18 = vsel %vm91_vm1, %v87_v17, 0.0  ;;  %v102_v23 = vsel %vm91_vm1, %v88_v22, 0.0  ;;  %v103_v9 = vsel %vm91_vm1, %v89_v3, 0.0 }
  0x45   :  { %v94_v21 = vsel %vm93_vm3, %v92_v18, 0.0 }
  0x46   :  { %95 = vadd.xlane.f32.xlu0 %v94_v21 }
  0x4a   :  { %105 = vadd.xlane.f32.xlu0 %v92_v18 }
  0x4e   :  { %107 = vadd.xlane.f32.xlu0 %v102_v23 }
  0xcf   :  { %v96_v24 = vpop.xlane.xlu0 %95 }
  0xd0   :  { %1748 = vrcp.f32 %v96_v24  ;;  %v2011_v24 = vsub.s32 3, %v1928_v7 }
  0xd3   :  { %v106_v28 = vpop.xlane.xlu0 %105 }
  0xd4   :  { %v125_v30 = vsub.f32 %v106_v28, %v1706_v26 }
  0xd7   :  { %v108_v42 = vpop.xlane.xlu0 %107 }
  0xdd   :  { %v1749_v27 = vpop.eup %1748 }
  0xde   :  { %v98_v29 = vmul.f32 %v1749_v27, %v87_v17  ;;  %v1709_v27 = vsel %vm263_vm14, 1.0, %v1893_v25  ;;  %vm413_vm14 = vcmp.eq.s32.totalorder %v1928_v7, 6 }
  0xe0   :  { %v1956_v31 = vrot.slane %v98_v29, %v1933_v10 }
  0xe2   :  { %v133_v32 = vmul.f32 %v1956_v31, %v125_v30  ;;  %v134_v46 = vmul.f32 %v1956_v31, %v108_v42 }
  0xe4   :  { %v137_v33 = vsub.f32 %v87_v17, %v133_v32  ;;  %v138_v50 = vsub.f32 %v88_v22, %v134_v46 }
  0xe6   :  { %v142_v34 = vsel %vm141_vm5, %v137_v33, 0.0  ;;  %v152_v51 = vsel %vm141_vm5, %v138_v50, 0.0 }
  0xe7   :  { %v144_v35 = vsel %vm143_vm6, %v142_v34, 0.0 }
  0xe8   :  { %145 = vadd.xlane.f32.xlu1 %v144_v35 }
  0xec   :  { %155 = vadd.xlane.f32.xlu1 %v142_v34 }
 0x171   :  { %v146_v36 = vpop.xlane.xlu1 %145 }
 0x172   :  { %1750 = vrcp.f32 %v146_v36  ;;  %v2023_v36 = vadd.s32 24, %v1928_v7 }
 0x174   :  { %vm78_vm2 = vcmp.eq.s32.totalorder %v2023_v36, %v1930_v8 }
 0x175   :  { %v156_v40 = vpop.xlane.xlu1 %155 }
 0x176   :  { %v175_v44 = vsub.f32 %v156_v40, %v1707_v39  ;;  %v74_v39 = vld [vmem:[#allocation7 + $0x18] sm:$0xff]  ;;  %v86_v40 = vsel %vm78_vm2, %v1941_v15, 0.0  ;;  %vm443_vm2 = vcmask 1047559  }
 0x17f   :  { %v1751_v38 = vpop.eup %1750 }
 0x180   :  { %v148_v41 = vmul.f32 %v1751_v38, %v137_v33 }
 0x182   :  { %v1969_v43 = vrot.slane %v148_v41, %v1965_v37 }
 0x184   :  { %v183_v45 = vmul.f32 %v1969_v43, %v175_v44  ;;  %v90_v44 = vadd.f32 %v86_v40, %v74_v39 }
 0x186   :  { %v187_v47 = vsub.f32 %v137_v33, %v183_v45 }
 0x188   :  { %v192_v48 = vsel %vm191_vm8, %v187_v47, 0.0 }
 0x189   :  { %205 = vadd.xlane.f32.xlu0 %v192_v48  ;;  %v194_v49 = vsel %vm193_vm9, %v192_v48, 0.0  ;;  %v104_v48 = vsel %vm91_vm1, %v90_v44, 0.0  ;;  %vm341_vm1 = vcmp.eq.s32.totalorder %v1930_v8, 5 }
 0x18a   :  { %195 = vadd.xlane.f32.xlu1 %v194_v49 }
 0x18e   :  { %157 = vadd.xlane.f32.xlu1 %v152_v51  ;;  %v2038_v51 = vsub.s32 4, %v1928_v7 }
 0x212   :  { %v206_v57 = vpop.xlane.xlu0 %205 }
 0x213   :  { %v196_v52 = vpop.xlane.xlu1 %195  ;;  %v225_v59 = vsub.f32 %v206_v57, %v1708_v56 }
 0x214   :  { %1752 = vrcp.f32 %v196_v52 }
 0x217   :  { %v158_v60 = vpop.xlane.xlu1 %157 }
 0x218   :  { %v184_v1 = vmul.f32 %v1969_v43, %v158_v60 }
 0x21a   :  { %v188_v6 = vsub.f32 %v138_v50, %v184_v1 }
 0x21c   :  { %v202_v11 = vsel %vm191_vm8, %v188_v6, 0.0 }
 0x221   :  { %v1753_v55 = vpop.eup %1752 }
 0x222   :  { %v198_v58 = vmul.f32 %v1753_v55, %v187_v47  ;;  %v1710_v55 = vsel %vm313_vm4, 1.0, %v1893_v25  ;;  %vm491_vm4 = vcmp.eq.s32.totalorder %v1930_v8, 8 }
 0x224   :  { %v1990_v61 = vrot.slane %v198_v58, %v1984_v54 }
 0x226   :  { %v233_v0 = vmul.f32 %v1990_v61, %v225_v59 }
 0x228   :  { %v237_v2 = vsub.f32 %v187_v47, %v233_v0 }
 0x22a   :  { %v242_v4 = vsel %vm241_vm12, %v237_v2, 0.0 }
 0x22b   :  { %255 = vadd.xlane.f32.xlu1 %v242_v4  ;;  %v244_v5 = vsel %vm243_vm13, %v242_v4, 0.0 }
 0x22c   :  { %245 = vadd.xlane.f32.xlu0 %v244_v5 }
 0x22f   :  { %109 = vadd.xlane.f32.xlu1 %v103_v9 }
 0x230   :  { %207 = vadd.xlane.f32.xlu0 %v202_v11 }
 0x2b4   :  { %v256_v12 = vpop.xlane.xlu1 %255 }
 0x2b5   :  { %v246_v14 = vpop.xlane.xlu0 %245  ;;  %v275_v29 = vsub.f32 %v256_v12, %v1709_v27 }
 0x2b6   :  { %1754 = vrcp.f32 %v246_v14 }
 0x2b8   :  { %v110_v16 = vpop.xlane.xlu1 %109 }
 0x2b9   :  { %v208_v17 = vpop.xlane.xlu0 %207  ;;  %v135_v18 = vmul.f32 %v1956_v31, %v110_v16 }
 0x2ba   :  { %v234_v19 = vmul.f32 %v1990_v61, %v208_v17 }
 0x2bb   :  { %v139_v22 = vsub.f32 %v89_v3, %v135_v18 }
 0x2bc   :  { %v238_v20 = vsub.f32 %v188_v6, %v234_v19 }
 0x2bd   :  { %v153_v23 = vsel %vm141_vm5, %v139_v22, 0.0 }
 0x2be   :  { %v252_v21 = vsel %vm241_vm12, %v238_v20, 0.0 }
 0x2bf   :  { %257 = vadd.xlane.f32.xlu0 %v252_v21 }
 0x2c3   :  { %v1755_v26 = vpop.eup %1754  ;;  %159 = vadd.xlane.f32.xlu0 %v153_v23 }
 0x2c4   :  { %v248_v28 = vmul.f32 %v1755_v26, %v237_v2 }
 0x2c6   :  { %v2015_v30 = vrot.slane %v248_v28, %v2011_v24 }
 0x2c8   :  { %v283_v32 = vmul.f32 %v2015_v30, %v275_v29 }
 0x2ca   :  { %v287_v33 = vsub.f32 %v237_v2, %v283_v32 }
 0x2cc   :  { %v292_v34 = vsel %vm291_vm15, %v287_v33, 0.0 }
 0x2cd   :  { %v294_v35 = vsel %vm293_vm0, %v292_v34, 0.0 }
 0x2ce   :  { %295 = vadd.xlane.f32.xlu1 %v294_v35 }
 0x2d2   :  { %305 = vadd.xlane.f32.xlu1 %v292_v34 }
 0x348   :  { %v258_v38 = vpop.xlane.xlu0 %257 }
 0x349   :  { %v284_v41 = vmul.f32 %v2015_v30, %v258_v38 }
 0x34b   :  { %v288_v42 = vsub.f32 %v238_v20, %v284_v41  ;;  %v1711_v20 = vsel %vm363_vm10, 1.0, %v1893_v25  ;;  %vm589_vm10 = vcmp.eq.s32.totalorder %v1930_v8, 10 }
 0x34c   :  { %v160_v45 = vpop.xlane.xlu0 %159 }
 0x34d   :  { %v185_v46 = vmul.f32 %v1969_v43, %v160_v45  ;;  %v302_v47 = vsel %vm291_vm15, %v288_v42, 0.0 }
 0x34e   :  { %307 = vadd.xlane.f32.xlu0 %v302_v47 }
 0x34f   :  { %v189_v49 = vsub.f32 %v139_v22, %v185_v46 }
 0x351   :  { %v203_v50 = vsel %vm191_vm8, %v189_v49, 0.0 }
 0x352   :  { %111 = vadd.xlane.f32.xlu0 %v104_v48  ;;  %209 = vadd.xlane.f32.xlu1 %v203_v50  ;;  %v1712_v50 = vsel %vm413_vm14, 1.0, %v1893_v25  ;;  %vm638_vm14 = vcmp.eq.s32.totalorder %v1930_v8, 11 }
 0x357   :  { %v296_v15 = vpop.xlane.xlu1 %295 }
 0x358   :  { %1756 = vrcp.f32 %v296_v15 }
 0x35b   :  { %v306_v56 = vpop.xlane.xlu1 %305 }
 0x35c   :  { %v325_v59 = vsub.f32 %v306_v56, %v1710_v55 }
 0x365   :  { %v1757_v52 = vpop.eup %1756 }
 0x366   :  { %v298_v57 = vmul.f32 %v1757_v52, %v287_v33 }
 0x368   :  { %v2042_v58 = vrot.slane %v298_v57, %v2038_v51 }
 0x36a   :  { %v333_v60 = vmul.f32 %v2042_v58, %v325_v59 }
 0x36c   :  { %v337_v62 = vsub.f32 %v287_v33, %v333_v60 }
 0x36e   :  { %v342_v63 = vsel %vm341_vm1, %v337_v62, 0.0 }
 0x36f   :  { %355 = vadd.xlane.f32.xlu0 %v342_v63  ;;  %v344_v0 = vsel %vm343_vm7, %v342_v63, 0.0 }
 0x370   :  { %345 = vadd.xlane.f32.xlu1 %v344_v0 }
 0x3d7   :  { %v308_v1 = vpop.xlane.xlu0 %307 }
 0x3d8   :  { %v334_v2 = vmul.f32 %v2042_v58, %v308_v1 }
 0x3da   :  { %v338_v3 = vsub.f32 %v288_v42, %v334_v2 }
 0x3db   :  { %v210_v4 = vpop.xlane.xlu1 %209  ;;  %v112_v5 = vpop.xlane.xlu0 %111 }
 0x3dc   :  { %v235_v6 = vmul.f32 %v1990_v61, %v210_v4  ;;  %v136_v9 = vmul.f32 %v1956_v31, %v112_v5  ;;  %v352_v11 = vsel %vm341_vm1, %v338_v3, 0.0  ;;  %v2060_v31 = vsub.s32 5, %v1928_v7 }
 0x3dd   :  { %357 = vadd.xlane.f32.xlu1 %v352_v11 }
 0x3de   :  { %v239_v12 = vsub.f32 %v189_v49, %v235_v6  ;;  %v140_v14 = vsub.f32 %v90_v44, %v136_v9 }
 0x3e0   :  { %v253_v16 = vsel %vm241_vm12, %v239_v12, 0.0  ;;  %v154_v17 = vsel %vm141_vm5, %v140_v14, 0.0  ;;  %vm391_vm5 = vcmp.eq.s32.totalorder %v1930_v8, 6 }
 0x3e1   :  { %259 = vadd.xlane.f32.xlu0 %v253_v16  ;;  %161 = vadd.xlane.f32.xlu1 %v154_v17 }
 0x3f8   :  { %v356_v21 = vpop.xlane.xlu0 %355 }
 0x3f9   :  { %v346_v18 = vpop.xlane.xlu1 %345  ;;  %v375_v23 = vsub.f32 %v356_v21, %v1711_v20 }
 0x3fa   :  { %1758 = vrcp.f32 %v346_v18 }
 0x407   :  { %v1759_v19 = vpop.eup %1758 }
 0x408   :  { %v348_v22 = vmul.f32 %v1759_v19, %v337_v62 }
 0x40a   :  { %v2064_v26 = vrot.slane %v348_v22, %v2060_v31 }
 0x40c   :  { %v383_v27 = vmul.f32 %v2064_v26, %v375_v23 }
 0x40e   :  { %v387_v28 = vsub.f32 %v337_v62, %v383_v27 }
 0x410   :  { %v392_v29 = vsel %vm391_vm5, %v387_v28, 0.0 }
 0x411   :  { %405 = vadd.xlane.f32.xlu1 %v392_v29  ;;  %v394_v32 = vsel %vm393_vm11, %v392_v29, 0.0 }
 0x412   :  { %395 = vadd.xlane.f32.xlu0 %v394_v32 }
 0x466   :  { %v358_v33 = vpop.xlane.xlu1 %357 }
 0x467   :  { %v384_v34 = vmul.f32 %v2064_v26, %v358_v33 }
 0x469   :  { %v388_v35 = vsub.f32 %v338_v3, %v384_v34 }
 0x46a   :  { %v162_v38 = vpop.xlane.xlu1 %161  ;;  %v260_v39 = vpop.xlane.xlu0 %259 }
 0x46b   :  { %v186_v40 = vmul.f32 %v1969_v43, %v162_v38  ;;  %v285_v41 = vmul.f32 %v2015_v30, %v260_v39  ;;  %v402_v42 = vsel %vm391_vm5, %v388_v35, 0.0  ;;  %v2082_v43 = vsub.s32 6, %v1928_v7 }
 0x46c   :  { %407 = vadd.xlane.f32.xlu0 %v402_v42 }
 0x46d   :  { %v190_v44 = vsub.f32 %v140_v14, %v186_v40  ;;  %v289_v45 = vsub.f32 %v239_v12, %v285_v41 }
 0x46f   :  { %v204_v46 = vsel %vm191_vm8, %v190_v44, 0.0  ;;  %v303_v47 = vsel %vm291_vm15, %v289_v45, 0.0  ;;  %vm441_vm8 = vcmp.eq.s32.totalorder %v1930_v8, 7 }
 0x470   :  { %211 = vadd.xlane.f32.xlu0 %v204_v46  ;;  %309 = vadd.xlane.f32.xlu1 %v303_v47 }
 0x49a   :  { %v406_v15 = vpop.xlane.xlu1 %405 }
 0x49b   :  { %v396_v48 = vpop.xlane.xlu0 %395  ;;  %v425_v55 = vsub.f32 %v406_v15, %v1712_v50 }
 0x49c   :  { %1760 = vrcp.f32 %v396_v48 }
 0x4a9   :  { %v1761_v49 = vpop.eup %1760 }
 0x4aa   :  { %v398_v52 = vmul.f32 %v1761_v49, %v387_v28 }
 0x4ac   :  { %v2086_v56 = vrot.slane %v398_v52, %v2082_v43 }
 0x4ae   :  { %v433_v57 = vmul.f32 %v2086_v56, %v425_v55 }
 0x4b0   :  { %v2090_v59 = vsub.f32 %v387_v28, %v433_v57 }
 0x4b2   :  { %v2095_v60 = vsel %vm441_vm8, %v2090_v59, 0.0 }
 0x4b3   :  { %v444_v62 = vsel %vm443_vm2, %v2095_v60, 0.0 }
 0x4b4   :  { %445 = vadd.xlane.f32.xlu1 %v444_v62 }
 0x4f5   :  { %v408_v63 = vpop.xlane.xlu0 %407 }
 0x4f6   :  { %v434_v0 = vmul.f32 %v2086_v56, %v408_v63 }
 0x4f8   :  { %v438_v1 = vsub.f32 %v388_v35, %v434_v0 }
 0x4f9   :  { %v310_v2 = vpop.xlane.xlu1 %309  ;;  %v212_v3 = vpop.xlane.xlu0 %211 }
 0x4fa   :  { %v335_v4 = vmul.f32 %v2042_v58, %v310_v2  ;;  %v236_v5 = vmul.f32 %v1990_v61, %v212_v3  ;;  %v452_v6 = vsel %vm441_vm8, %v438_v1, 0.0  ;;  %v2110_v61 = vsub.s32 7, %v1928_v7 }
 0x4fb   :  { %457 = vadd.xlane.f32.xlu0 %v452_v6 }
 0x4fc   :  { %v339_v9 = vsub.f32 %v289_v45, %v335_v4  ;;  %v240_v11 = vsub.f32 %v190_v44, %v236_v5 }
 0x4fe   :  { %v353_v12 = vsel %vm341_vm1, %v339_v9, 0.0  ;;  %v254_v14 = vsel %vm241_vm12, %v240_v11, 0.0  ;;  %vm513_vm12 = vcmp.eq.s32.totalorder %v1936_v13, 8 }
 0x4ff   :  { %359 = vadd.xlane.f32.xlu1 %v353_v12  ;;  %261 = vadd.xlane.f32.xlu0 %v254_v14  ;;  %v1714_v50 = vsel %vm513_vm12, 1.0, %v1893_v25  ;;  %vm687_vm12 = vcmp.eq.s32.totalorder %v1930_v8, 12 }
 0x53d   :  { %v446_v16 = vpop.xlane.xlu1 %445 }
 0x53e   :  { %1762 = vrcp.f32 %v446_v16 }
 0x54b   :  { %v1763_v17 = vpop.eup %1762 }
 0x54c   :  { %v448_v18 = vmul.f32 %v1763_v17, %v2090_v59 }
 0x54e   :  { %v2113_v19 = vrot.slane %v448_v18, %v2110_v61 }
 0x584   :  { %v458_v20 = vpop.xlane.xlu0 %457 }
 0x585   :  { %v484_v21 = vmul.f32 %v2113_v19, %v458_v20 }
 0x587   :  { %v488_v22 = vsub.f32 %v438_v1, %v484_v21 }
 0x588   :  { %v360_v23 = vpop.xlane.xlu1 %359  ;;  %v262_v27 = vpop.xlane.xlu0 %261 }
 0x589   :  { %v385_v28 = vmul.f32 %v2064_v26, %v360_v23  ;;  %v286_v29 = vmul.f32 %v2015_v30, %v262_v27  ;;  %v492_v32 = vsel %vm491_vm4, %v488_v22, 0.0 }
 0x58a   :  { %v493_v33 = vsel %vm93_vm3, %v492_v32, 0.0 }
 0x58b   :  { %494 = vadd.xlane.f32.xlu1 %v493_v33  ;;  %v389_v34 = vsub.f32 %v339_v9, %v385_v28  ;;  %v290_v35 = vsub.f32 %v240_v11, %v286_v29 }
 0x58d   :  { %v403_v38 = vsel %vm391_vm5, %v389_v34, 0.0  ;;  %v304_v39 = vsel %vm291_vm15, %v290_v35, 0.0  ;;  %vm540_vm15 = vcmp.eq.s32.totalorder %v1930_v8, 9 }
 0x58e   :  { %409 = vadd.xlane.f32.xlu0 %v403_v38 }
 0x58f   :  { %311 = vadd.xlane.f32.xlu1 %v304_v39 }
 0x592   :  { %506 = vadd.xlane.f32.xlu0 %v492_v32 }
 0x614   :  { %v495_v40 = vpop.xlane.xlu1 %494 }
 0x615   :  { %1764 = vrcp.f32 %v495_v40 }
 0x617   :  { %v410_v30 = vpop.xlane.xlu0 %409 }
 0x618   :  { %v435_v41 = vmul.f32 %v2086_v56, %v410_v30  ;;  %v312_v42 = vpop.xlane.xlu1 %311 }
 0x619   :  { %v336_v44 = vmul.f32 %v2042_v58, %v312_v42 }
 0x61a   :  { %v439_v45 = vsub.f32 %v389_v34, %v435_v41 }
 0x61b   :  { %v340_v46 = vsub.f32 %v290_v35, %v336_v44  ;;  %v507_v15 = vpop.xlane.xlu0 %506 }
 0x61c   :  { %v453_v47 = vsel %vm441_vm8, %v439_v45, 0.0  ;;  %v525_v58 = vsub.f32 %v507_v15, %v1714_v50 }
 0x61d   :  { %459 = vadd.xlane.f32.xlu1 %v453_v47  ;;  %v354_v48 = vsel %vm341_vm1, %v340_v46, 0.0  ;;  %vm562_vm1 = vcmp.eq.s32.totalorder %v1936_v13, 9 }
 0x61e   :  { %361 = vadd.xlane.f32.xlu0 %v354_v48  ;;  %v1715_v16 = vsel %vm562_vm1, 1.0, %v1893_v25  ;;  %vm463_vm1 = vcmp.eq.s32.totalorder %v1928_v7, 7 }
 0x622   :  { %v1765_v49 = vpop.eup %1764 }
 0x623   :  { %v497_v52 = vmul.f32 %v1765_v49, %v488_v22 }
 0x625   :  { %v2135_v55 = vrot.slane %v497_v52, %v1933_v10 }
 0x627   :  { %v533_v57 = vmul.f32 %v2135_v55, %v525_v58 }
 0x629   :  { %v537_v62 = vsub.f32 %v488_v22, %v533_v57 }
 0x62b   :  { %v541_v63 = vsel %vm540_vm15, %v537_v62, 0.0 }
 0x62c   :  { %555 = vadd.xlane.f32.xlu0 %v541_v63  ;;  %v542_v0 = vsel %vm143_vm6, %v541_v63, 0.0 }
 0x62d   :  { %543 = vadd.xlane.f32.xlu1 %v542_v0 }
 0x6a6   :  { %v460_v1 = vpop.xlane.xlu1 %459 }
 0x6a7   :  { %v485_v2 = vmul.f32 %v2113_v19, %v460_v1  ;;  %v362_v3 = vpop.xlane.xlu0 %361 }
 0x6a8   :  { %v386_v4 = vmul.f32 %v2064_v26, %v362_v3 }
 0x6a9   :  { %v489_v5 = vsub.f32 %v439_v45, %v485_v2 }
 0x6aa   :  { %v390_v6 = vsub.f32 %v340_v46, %v386_v4 }
 0x6ab   :  { %v502_v9 = vsel %vm491_vm4, %v489_v5, 0.0 }
 0x6ac   :  { %508 = vadd.xlane.f32.xlu1 %v502_v9  ;;  %v404_v11 = vsel %vm391_vm5, %v390_v6, 0.0  ;;  %vm611_vm5 = vcmp.eq.s32.totalorder %v1936_v13, 10 }
 0x6ad   :  { %411 = vadd.xlane.f32.xlu0 %v404_v11  ;;  %v1716_v41 = vsel %vm611_vm5, 1.0, %v1893_v25  ;;  %vm709_vm5 = vcmp.eq.s32.totalorder %v1936_v13, 12 }
 0x6b5   :  { %v556_v17 = vpop.xlane.xlu0 %555 }
 0x6b6   :  { %v544_v12 = vpop.xlane.xlu1 %543  ;;  %v574_v26 = vsub.f32 %v556_v17, %v1715_v16 }
 0x6b7   :  { %1766 = vrcp.f32 %v544_v12 }
 0x6c4   :  { %v1767_v14 = vpop.eup %1766 }
 0x6c5   :  { %v546_v18 = vmul.f32 %v1767_v14, %v537_v62 }
 0x6c7   :  { %v2151_v20 = vrot.slane %v546_v18, %v1965_v37 }
 0x6c9   :  { %v582_v21 = vmul.f32 %v2151_v20, %v574_v26 }
 0x6cb   :  { %v586_v22 = vsub.f32 %v537_v62, %v582_v21 }
 0x6cd   :  { %v590_v23 = vsel %vm589_vm10, %v586_v22, 0.0 }
 0x6ce   :  { %604 = vadd.xlane.f32.xlu0 %v590_v23  ;;  %v591_v27 = vsel %vm193_vm9, %v590_v23, 0.0 }
 0x6cf   :  { %592 = vadd.xlane.f32.xlu1 %v591_v27 }
 0x735   :  { %v509_v28 = vpop.xlane.xlu1 %508 }
 0x736   :  { %v534_v29 = vmul.f32 %v2135_v55, %v509_v28  ;;  %v412_v32 = vpop.xlane.xlu0 %411 }
 0x737   :  { %v436_v33 = vmul.f32 %v2086_v56, %v412_v32 }
 0x738   :  { %v538_v34 = vsub.f32 %v489_v5, %v534_v29 }
 0x739   :  { %v440_v35 = vsub.f32 %v390_v6, %v436_v33 }
 0x73a   :  { %v551_v38 = vsel %vm540_vm15, %v538_v34, 0.0 }
 0x73b   :  { %557 = vadd.xlane.f32.xlu1 %v551_v38  ;;  %v454_v39 = vsel %vm441_vm8, %v440_v35, 0.0  ;;  %vm660_vm8 = vcmp.eq.s32.totalorder %v1936_v13, 11 }
 0x73c   :  { %461 = vadd.xlane.f32.xlu0 %v454_v39  ;;  %v1717_v3 = vsel %vm660_vm8, 1.0, %v1893_v25  ;;  %v1713_v39 = vsel %vm463_vm1, 1.0, %v1893_v25  ;;  %vm736_vm8 = vcmp.eq.s32.totalorder %v1930_v8, 13  ;;  %vm785_vm1 = vcmp.eq.s32.totalorder %v1930_v8, 14 }
 0x757   :  { %v605_v42 = vpop.xlane.xlu0 %604 }
 0x758   :  { %v593_v40 = vpop.xlane.xlu1 %592  ;;  %v623_v56 = vsub.f32 %v605_v42, %v1716_v41 }
 0x759   :  { %1768 = vrcp.f32 %v593_v40 }
 0x766   :  { %v1769_v30 = vpop.eup %1768 }
 0x767   :  { %v595_v44 = vmul.f32 %v1769_v30, %v586_v22 }
 0x769   :  { %v2167_v45 = vrot.slane %v595_v44, %v1984_v54 }
 0x76b   :  { %v631_v46 = vmul.f32 %v2167_v45, %v623_v56  ;;  %v1718_v56 = vsel %vm709_vm5, 1.0, %v1893_v25  ;;  %vm834_vm5 = vcmp.eq.s32.totalorder %v1930_v8, 15 }
 0x76d   :  { %v635_v47 = vsub.f32 %v586_v22, %v631_v46 }
 0x76f   :  { %v639_v48 = vsel %vm638_vm14, %v635_v47, 0.0 }
 0x770   :  { %653 = vadd.xlane.f32.xlu0 %v639_v48  ;;  %v640_v49 = vsel %vm243_vm13, %v639_v48, 0.0 }
 0x771   :  { %641 = vadd.xlane.f32.xlu1 %v640_v49 }
 0x7c4   :  { %v558_v50 = vpop.xlane.xlu1 %557 }
 0x7c5   :  { %v583_v15 = vmul.f32 %v2151_v20, %v558_v50  ;;  %v462_v52 = vpop.xlane.xlu0 %461 }
 0x7c6   :  { %v486_v58 = vmul.f32 %v2113_v19, %v462_v52 }
 0x7c7   :  { %v587_v57 = vsub.f32 %v538_v34, %v583_v15 }
 0x7c8   :  { %v490_v62 = vsub.f32 %v440_v35, %v486_v58 }
 0x7c9   :  { %v600_v63 = vsel %vm589_vm10, %v587_v57, 0.0 }
 0x7ca   :  { %606 = vadd.xlane.f32.xlu1 %v600_v63  ;;  %v503_v0 = vsel %vm491_vm4, %v490_v62, 0.0 }
 0x7cb   :  { %510 = vadd.xlane.f32.xlu0 %v503_v0 }
 0x7f9   :  { %v654_v4 = vpop.xlane.xlu0 %653 }
 0x7fa   :  { %v642_v1 = vpop.xlane.xlu1 %641  ;;  %v672_v6 = vsub.f32 %v654_v4, %v1717_v3 }
 0x7fb   :  { %1770 = vrcp.f32 %v642_v1 }
 0x808   :  { %v1771_v2 = vpop.eup %1770 }
 0x809   :  { %v644_v5 = vmul.f32 %v1771_v2, %v635_v47 }
 0x80b   :  { %v2183_v9 = vrot.slane %v644_v5, %v2011_v24 }
 0x80d   :  { %v680_v11 = vmul.f32 %v2183_v9, %v672_v6 }
 0x80f   :  { %v684_v12 = vsub.f32 %v635_v47, %v680_v11 }
 0x811   :  { %v688_v14 = vsel %vm687_vm12, %v684_v12, 0.0 }
 0x812   :  { %v689_v16 = vsel %vm293_vm0, %v688_v14, 0.0 }
 0x813   :  { %690 = vadd.xlane.f32.xlu0 %v689_v16 }
 0x853   :  { %v607_v17 = vpop.xlane.xlu1 %606 }
 0x854   :  { %v632_v18 = vmul.f32 %v2167_v45, %v607_v17  ;;  %v511_v26 = vpop.xlane.xlu0 %510 }
 0x855   :  { %v535_v21 = vmul.f32 %v2135_v55, %v511_v26 }
 0x856   :  { %v636_v22 = vsub.f32 %v587_v57, %v632_v18 }
 0x857   :  { %v539_v23 = vsub.f32 %v490_v62, %v535_v21 }
 0x858   :  { %v649_v27 = vsel %vm638_vm14, %v636_v22, 0.0 }
 0x859   :  { %655 = vadd.xlane.f32.xlu1 %v649_v27  ;;  %v552_v28 = vsel %vm540_vm15, %v539_v23, 0.0 }
 0x85a   :  { %559 = vadd.xlane.f32.xlu0 %v552_v28 }
 0x85d   :  { %455 = vadd.xlane.f32.xlu1 %v2095_v60 }
 0x861   :  { %702 = vadd.xlane.f32.xlu1 %v688_v14 }
 0x89c   :  { %v691_v29 = vpop.xlane.xlu0 %690 }
 0x89d   :  { %1772 = vrcp.f32 %v691_v29 }
 0x8aa   :  { %v1773_v35 = vpop.eup %1772 }
 0x8ab   :  { %v693_v44 = vmul.f32 %v1773_v35, %v684_v12 }
 0x8ad   :  { %v2209_v49 = vrot.slane %v693_v44, %v2038_v51 }
 0x8e2   :  { %v656_v32 = vpop.xlane.xlu1 %655 }
 0x8e3   :  { %v681_v33 = vmul.f32 %v2183_v9, %v656_v32  ;;  %v560_v34 = vpop.xlane.xlu0 %559 }
 0x8e4   :  { %v584_v38 = vmul.f32 %v2151_v20, %v560_v34 }
 0x8e5   :  { %v685_v40 = vsub.f32 %v636_v22, %v681_v33 }
 0x8e6   :  { %v456_v30 = vpop.xlane.xlu1 %455  ;;  %v588_v41 = vsub.f32 %v539_v23, %v584_v38 }
 0x8e7   :  { %v475_v60 = vsub.f32 %v456_v30, %v1713_v39  ;;  %v698_v42 = vsel %vm687_vm12, %v685_v40, 0.0 }
 0x8e8   :  { %704 = vadd.xlane.f32.xlu0 %v698_v42  ;;  %v601_v7 = vsel %vm589_vm10, %v588_v41, 0.0 }
 0x8e9   :  { %v483_v46 = vmul.f32 %v2113_v19, %v475_v60  ;;  %608 = vadd.xlane.f32.xlu1 %v601_v7 }
 0x8ea   :  { %v703_v47 = vpop.xlane.xlu1 %702 }
 0x8eb   :  { %v721_v48 = vsub.f32 %v703_v47, %v1718_v56  ;;  %v487_v50 = vsub.f32 %v2090_v59, %v483_v46 }
 0x8ed   :  { %v729_v15 = vmul.f32 %v2209_v49, %v721_v48  ;;  %v500_v52 = vsel %vm491_vm4, %v487_v50, 0.0  ;;  %vm758_vm4 = vcmp.eq.s32.totalorder %v1936_v13, 13 }
 0x8ee   :  { %504 = vadd.xlane.f32.xlu0 %v500_v52  ;;  %v1719_v17 = vsel %vm758_vm4, 1.0, %v1893_v25  ;;  %vm981_vm4 = vcmp.eq.s32.totalorder %v1930_v8, 18 }
 0x8ef   :  { %v733_v58 = vsub.f32 %v684_v12, %v729_v15 }
 0x8f1   :  { %v737_v19 = vsel %vm736_vm8, %v733_v58, 0.0 }
 0x8f2   :  { %751 = vadd.xlane.f32.xlu0 %v737_v19  ;;  %v738_v57 = vsel %vm343_vm7, %v737_v19, 0.0 }
 0x8f3   :  { %739 = vadd.xlane.f32.xlu1 %v738_v57 }
 0x971   :  { %v705_v62 = vpop.xlane.xlu0 %704 }
 0x972   :  { %v730_v63 = vmul.f32 %v2209_v49, %v705_v62  ;;  %v609_v59 = vpop.xlane.xlu1 %608 }
 0x973   :  { %v633_v0 = vmul.f32 %v2167_v45, %v609_v59 }
 0x974   :  { %v734_v1 = vsub.f32 %v685_v40, %v730_v63 }
 0x975   :  { %v637_v2 = vsub.f32 %v588_v41, %v633_v0 }
 0x976   :  { %v747_v3 = vsel %vm736_vm8, %v734_v1, 0.0 }
 0x977   :  { %753 = vadd.xlane.f32.xlu1 %v747_v3  ;;  %v505_v4 = vpop.xlane.xlu0 %504  ;;  %v650_v5 = vsel %vm638_vm14, %v637_v2, 0.0 }
 0x978   :  { %v532_v6 = vmul.f32 %v2135_v55, %v505_v4  ;;  %657 = vadd.xlane.f32.xlu0 %v650_v5 }
 0x97a   :  { %v536_v11 = vsub.f32 %v487_v50, %v532_v6 }
 0x97b   :  { %v752_v18 = vpop.xlane.xlu0 %751 }
 0x97c   :  { %v740_v12 = vpop.xlane.xlu1 %739  ;;  %v549_v14 = vsel %vm540_vm15, %v536_v11, 0.0  ;;  %v770_v21 = vsub.f32 %v752_v18, %v1719_v17  ;;  %vm807_vm15 = vcmp.eq.s32.totalorder %v1936_v13, 14 }
 0x97d   :  { %1774 = vrcp.f32 %v740_v12  ;;  %553 = vadd.xlane.f32.xlu1 %v549_v14  ;;  %v1720_v56 = vsel %vm807_vm15, 1.0, %v1893_v25  ;;  %vm1030_vm15 = vcmp.eq.s32.totalorder %v1930_v8, 19 }
 0x98a   :  { %v1775_v16 = vpop.eup %1774 }
 0x98b   :  { %v742_v26 = vmul.f32 %v1775_v16, %v733_v58 }
 0x98d   :  { %v2231_v22 = vrot.slane %v742_v26, %v2060_v31 }
 0x98f   :  { %v778_v55 = vmul.f32 %v2231_v22, %v770_v21 }
 0x991   :  { %v782_v23 = vsub.f32 %v733_v58, %v778_v55 }
 0x993   :  { %v786_v27 = vsel %vm785_vm1, %v782_v23, 0.0 }
 0x994   :  { %800 = vadd.xlane.f32.xlu1 %v786_v27  ;;  %v787_v28 = vsel %vm393_vm11, %v786_v27, 0.0 }
 0x995   :  { %788 = vadd.xlane.f32.xlu0 %v787_v28 }
 0xa00   :  { %v754_v29 = vpop.xlane.xlu1 %753 }
 0xa01   :  { %v779_v32 = vmul.f32 %v2231_v22, %v754_v29  ;;  %v658_v33 = vpop.xlane.xlu0 %657 }
 0xa02   :  { %v682_v34 = vmul.f32 %v2183_v9, %v658_v33 }
 0xa03   :  { %v783_v35 = vsub.f32 %v734_v1, %v779_v32 }
 0xa04   :  { %v686_v38 = vsub.f32 %v637_v2, %v682_v34 }
 0xa05   :  { %v796_v39 = vsel %vm785_vm1, %v783_v35, 0.0 }
 0xa06   :  { %v554_v40 = vpop.xlane.xlu1 %553  ;;  %802 = vadd.xlane.f32.xlu0 %v796_v39  ;;  %v699_v30 = vsel %vm687_vm12, %v686_v38, 0.0 }
 0xa07   :  { %v581_v41 = vmul.f32 %v2151_v20, %v554_v40  ;;  %706 = vadd.xlane.f32.xlu1 %v699_v30 }
 0xa09   :  { %v585_v60 = vsub.f32 %v536_v11, %v581_v41 }
 0xa0b   :  { %v598_v42 = vsel %vm589_vm10, %v585_v60, 0.0  ;;  %vm883_vm10 = vcmp.eq.s32.totalorder %v1930_v8, 16 }
 0xa0c   :  { %602 = vadd.xlane.f32.xlu0 %v598_v42 }
 0xa1d   :  { %v801_v46 = vpop.xlane.xlu1 %800 }
 0xa1e   :  { %v789_v44 = vpop.xlane.xlu0 %788  ;;  %v819_v48 = vsub.f32 %v801_v46, %v1720_v56 }
 0xa1f   :  { %1776 = vrcp.f32 %v789_v44 }
 0xa2c   :  { %v1777_v7 = vpop.eup %1776 }
 0xa2d   :  { %v791_v47 = vmul.f32 %v1777_v7, %v782_v23 }
 0xa2f   :  { %v2250_v50 = vrot.slane %v791_v47, %v2082_v43 }
 0xa31   :  { %v827_v20 = vmul.f32 %v2250_v50, %v819_v48 }
 0xa33   :  { %v2254_v15 = vsub.f32 %v782_v23, %v827_v20 }
 0xa35   :  { %v2259_v52 = vsel %vm834_vm5, %v2254_v15, 0.0 }
 0xa36   :  { %v836_v58 = vsel %vm443_vm2, %v2259_v52, 0.0 }
 0xa37   :  { %837 = vadd.xlane.f32.xlu1 %v836_v58 }
 0xa8f   :  { %v803_v19 = vpop.xlane.xlu0 %802 }
 0xa90   :  { %v828_v57 = vmul.f32 %v2250_v50, %v803_v19  ;;  %v707_v62 = vpop.xlane.xlu1 %706 }
 0xa91   :  { %v731_v63 = vmul.f32 %v2209_v49, %v707_v62 }
 0xa92   :  { %v832_v59 = vsub.f32 %v783_v35, %v828_v57 }
 0xa93   :  { %v735_v0 = vsub.f32 %v686_v38, %v731_v63 }
 0xa94   :  { %v845_v1 = vsel %vm834_vm5, %v832_v59, 0.0 }
 0xa95   :  { %851 = vadd.xlane.f32.xlu0 %v845_v1  ;;  %v603_v2 = vpop.xlane.xlu0 %602  ;;  %v748_v3 = vsel %vm736_vm8, %v735_v0, 0.0 }
 0xa96   :  { %v630_v4 = vmul.f32 %v2167_v45, %v603_v2  ;;  %755 = vadd.xlane.f32.xlu1 %v748_v3 }
 0xa98   :  { %v634_v5 = vsub.f32 %v585_v60, %v630_v4 }
 0xa9a   :  { %v647_v6 = vsel %vm638_vm14, %v634_v5, 0.0  ;;  %vm906_vm14 = vcmp.eq.s32.totalorder %v1981_v53, 16 }
 0xa9b   :  { %651 = vadd.xlane.f32.xlu0 %v647_v6  ;;  %v1722_v7 = vsel %vm906_vm14, 1.0, %v1893_v25  ;;  %vm1053_vm14 = vcmp.eq.s32.totalorder %v1981_v53, 19 }
 0xac0   :  { %v838_v11 = vpop.xlane.xlu1 %837 }
 0xac1   :  { %1778 = vrcp.f32 %v838_v11 }
 0xace   :  { %v1779_v12 = vpop.eup %1778 }
 0xacf   :  { %v840_v14 = vmul.f32 %v1779_v12, %v2254_v15 }
 0xad1   :  { %v2274_v16 = vrot.slane %v840_v14, %v2110_v61 }
 0xb1e   :  { %v852_v17 = vpop.xlane.xlu0 %851 }
 0xb1f   :  { %v877_v18 = vmul.f32 %v2274_v16, %v852_v17  ;;  %v756_v26 = vpop.xlane.xlu1 %755 }
 0xb20   :  { %v780_v45 = vmul.f32 %v2231_v22, %v756_v26 }
 0xb21   :  { %v881_v21 = vsub.f32 %v832_v59, %v877_v18 }
 0xb22   :  { %v784_v55 = vsub.f32 %v735_v0, %v780_v45 }
 0xb23   :  { %v884_v23 = vsel %vm883_vm10, %v881_v21, 0.0 }
 0xb24   :  { %v652_v27 = vpop.xlane.xlu0 %651  ;;  %v797_v28 = vsel %vm785_vm1, %v784_v55, 0.0  ;;  %v885_v29 = vsel %vm93_vm3, %v884_v23, 0.0 }
 0xb25   :  { %v679_v32 = vmul.f32 %v2183_v9, %v652_v27  ;;  %804 = vadd.xlane.f32.xlu0 %v797_v28  ;;  %886 = vadd.xlane.f32.xlu1 %v885_v29 }
 0xb27   :  { %v683_v33 = vsub.f32 %v634_v5, %v679_v32 }
 0xb29   :  { %900 = vadd.xlane.f32.xlu0 %v884_v23  ;;  %v696_v34 = vsel %vm687_vm12, %v683_v33, 0.0  ;;  %vm932_vm12 = vcmp.eq.s32.totalorder %v1930_v8, 17 }
 0xb2a   :  { %700 = vadd.xlane.f32.xlu1 %v696_v34 }
 0xbae   :  { %v887_v35 = vpop.xlane.xlu1 %886  ;;  %v805_v38 = vpop.xlane.xlu0 %804 }
 0xbaf   :  { %1780 = vrcp.f32 %v887_v35  ;;  %v829_v39 = vmul.f32 %v2250_v50, %v805_v38 }
 0xbb1   :  { %v833_v40 = vsub.f32 %v784_v55, %v829_v39 }
 0xbb2   :  { %v901_v56 = vpop.xlane.xlu0 %900 }
 0xbb3   :  { %v701_v30 = vpop.xlane.xlu1 %700  ;;  %v846_v41 = vsel %vm834_vm5, %v833_v40, 0.0  ;;  %v918_v48 = vsub.f32 %v901_v56, %v1722_v7 }
 0xbb4   :  { %v728_v9 = vmul.f32 %v2209_v49, %v701_v30  ;;  %853 = vadd.xlane.f32.xlu1 %v846_v41 }
 0xbb6   :  { %v732_v60 = vsub.f32 %v683_v33, %v728_v9 }
 0xbb8   :  { %v745_v42 = vsel %vm736_vm8, %v732_v60, 0.0  ;;  %vm955_vm8 = vcmp.eq.s32.totalorder %v1981_v53, 17 }
 0xbb9   :  { %749 = vadd.xlane.f32.xlu0 %v745_v42  ;;  %v1723_v6 = vsel %vm955_vm8, 1.0, %v1893_v25  ;;  %vm1079_vm8 = vcmp.eq.s32.totalorder %v1930_v8, 20 }
 0xbbc   :  { %v1781_v44 = vpop.eup %1780 }
 0xbbd   :  { %v889_v46 = vmul.f32 %v1781_v44, %v881_v21 }
 0xbbf   :  { %v2296_v47 = vrot.slane %v889_v46, %v1933_v10 }
 0xbc1   :  { %v926_v20 = vmul.f32 %v2296_v47, %v918_v48 }
 0xbc3   :  { %v930_v49 = vsub.f32 %v881_v21, %v926_v20 }
 0xbc5   :  { %v933_v58 = vsel %vm932_vm12, %v930_v49, 0.0 }
 0xbc6   :  { %949 = vadd.xlane.f32.xlu0 %v933_v58  ;;  %v934_v19 = vsel %vm143_vm6, %v933_v58, 0.0 }
 0xbc7   :  { %935 = vadd.xlane.f32.xlu1 %v934_v19 }
 0xc3d   :  { %v854_v57 = vpop.xlane.xlu1 %853 }
 0xc3e   :  { %v878_v62 = vmul.f32 %v2274_v16, %v854_v57 }
 0xc40   :  { %v882_v63 = vsub.f32 %v833_v40, %v878_v62 }
 0xc42   :  { %v750_v59 = vpop.xlane.xlu0 %749  ;;  %v895_v0 = vsel %vm883_vm10, %v882_v63, 0.0 }
 0xc43   :  { %v777_v1 = vmul.f32 %v2231_v22, %v750_v59  ;;  %902 = vadd.xlane.f32.xlu1 %v895_v0 }
 0xc45   :  { %v781_v2 = vsub.f32 %v732_v60, %v777_v1  ;;  %v1725_v1 = vsel %vm1053_vm14, 1.0, %v1893_v25  ;;  %vm1275_vm14 = vcmp.eq.s32.totalorder %v1930_v8, 24 }
 0xc47   :  { %v794_v3 = vsel %vm785_vm1, %v781_v2, 0.0  ;;  %vm1004_vm1 = vcmp.eq.s32.totalorder %v1981_v53, 18 }
 0xc48   :  { %798 = vadd.xlane.f32.xlu0 %v794_v3  ;;  %v1724_v35 = vsel %vm1004_vm1, 1.0, %v1893_v25  ;;  %vm1177_vm1 = vcmp.eq.s32.totalorder %v1930_v8, 22 }
 0xc4f   :  { %v950_v11 = vpop.xlane.xlu0 %949 }
 0xc50   :  { %v936_v4 = vpop.xlane.xlu1 %935  ;;  %v967_v14 = vsub.f32 %v950_v11, %v1723_v6 }
 0xc51   :  { %1782 = vrcp.f32 %v936_v4 }
 0xc5e   :  { %v1783_v5 = vpop.eup %1782 }
 0xc5f   :  { %v938_v12 = vmul.f32 %v1783_v5, %v930_v49 }
 0xc61   :  { %v2312_v17 = vrot.slane %v938_v12, %v1965_v37 }
 0xc63   :  { %v975_v22 = vmul.f32 %v2312_v17, %v967_v14 }
 0xc65   :  { %v979_v18 = vsub.f32 %v930_v49, %v975_v22 }
 0xc67   :  { %v982_v26 = vsel %vm981_vm4, %v979_v18, 0.0 }
 0xc68   :  { %998 = vadd.xlane.f32.xlu0 %v982_v26  ;;  %v983_v45 = vsel %vm193_vm9, %v982_v26, 0.0 }
 0xc69   :  { %984 = vadd.xlane.f32.xlu1 %v983_v45 }
 0xc6d   :  { %849 = vadd.xlane.f32.xlu1 %v2259_v52 }
 0xccc   :  { %v903_v21 = vpop.xlane.xlu1 %902 }
 0xccd   :  { %v927_v55 = vmul.f32 %v2296_v47, %v903_v21 }
 0xccf   :  { %v931_v23 = vsub.f32 %v882_v63, %v927_v55 }
 0xcd1   :  { %v799_v27 = vpop.xlane.xlu0 %798  ;;  %v944_v28 = vsel %vm932_vm12, %v931_v23, 0.0 }
 0xcd2   :  { %v826_v29 = vmul.f32 %v2250_v50, %v799_v27  ;;  %951 = vadd.xlane.f32.xlu0 %v944_v28 }
 0xcd4   :  { %v830_v32 = vsub.f32 %v781_v2, %v826_v29 }
 0xcd6   :  { %v843_v33 = vsel %vm834_vm5, %v830_v32, 0.0  ;;  %vm856_vm5 = vcmp.eq.s32.totalorder %v1936_v13, 15 }
 0xcd7   :  { %847 = vadd.xlane.f32.xlu1 %v843_v33  ;;  %v1721_v42 = vsel %vm856_vm5, 1.0, %v1893_v25  ;;  %vm1226_vm5 = vcmp.eq.s32.totalorder %v1930_v8, 23 }
 0xcf1   :  { %v999_v38 = vpop.xlane.xlu0 %998 }
 0xcf2   :  { %v985_v34 = vpop.xlane.xlu1 %984  ;;  %v1016_v40 = vsub.f32 %v999_v38, %v1724_v35 }
 0xcf3   :  { %1784 = vrcp.f32 %v985_v34 }
 0xcf6   :  { %v850_v44 = vpop.xlane.xlu1 %849 }
 0xcf7   :  { %v868_v7 = vsub.f32 %v850_v44, %v1721_v42 }
 0xcf9   :  { %v876_v46 = vmul.f32 %v2274_v16, %v868_v7 }
 0xcfb   :  { %v880_v19 = vsub.f32 %v2254_v15, %v876_v46 }
 0xcfd   :  { %v893_v62 = vsel %vm883_vm10, %v880_v19, 0.0 }
 0xd00   :  { %v1785_v52 = vpop.eup %1784 }
 0xd01   :  { %v987_v39 = vmul.f32 %v1785_v52, %v979_v18 }
 0xd03   :  { %v2329_v30 = vrot.slane %v987_v39, %v1984_v54 }
 0xd05   :  { %v1024_v50 = vmul.f32 %v2329_v30, %v1016_v40 }
 0xd07   :  { %v1028_v41 = vsub.f32 %v979_v18, %v1024_v50 }
 0xd09   :  { %v1031_v9 = vsel %vm1030_vm15, %v1028_v41, 0.0 }
 0xd0a   :  { %1047 = vadd.xlane.f32.xlu1 %v1031_v9  ;;  %v1032_v60 = vsel %vm243_vm13, %v1031_v9, 0.0 }
 0xd0b   :  { %1033 = vadd.xlane.f32.xlu0 %v1032_v60 }
 0xd5b   :  { %v952_v56 = vpop.xlane.xlu0 %951 }
 0xd5c   :  { %v976_v48 = vmul.f32 %v2312_v17, %v952_v56 }
 0xd5e   :  { %v980_v20 = vsub.f32 %v931_v23, %v976_v48 }
 0xd60   :  { %v848_v49 = vpop.xlane.xlu1 %847  ;;  %v993_v58 = vsel %vm981_vm4, %v980_v20, 0.0 }
 0xd61   :  { %v875_v57 = vmul.f32 %v2274_v16, %v848_v49  ;;  %1000 = vadd.xlane.f32.xlu0 %v993_v58 }
 0xd63   :  { %v879_v13 = vsub.f32 %v830_v32, %v875_v57 }
 0xd65   :  { %898 = vadd.xlane.f32.xlu0 %v893_v62  ;;  %v892_v63 = vsel %vm883_vm10, %v879_v13, 0.0  ;;  %vm1102_vm10 = vcmp.eq.s32.totalorder %v1981_v53, 20 }
 0xd66   :  { %896 = vadd.xlane.f32.xlu1 %v892_v63  ;;  %v1726_v60 = vsel %vm1102_vm10, 1.0, %v1893_v25  ;;  %vm1249_vm10 = vcmp.eq.s32.totalorder %v1981_v53, 23 }
 0xd93   :  { %v1048_v15 = vpop.xlane.xlu1 %1047 }
 0xd94   :  { %v1034_v59 = vpop.xlane.xlu0 %1033  ;;  %v1065_v16 = vsub.f32 %v1048_v15, %v1725_v1 }
 0xd95   :  { %1786 = vrcp.f32 %v1034_v59 }
 0xda2   :  { %v1787_v0 = vpop.eup %1786 }
 0xda3   :  { %v1036_v2 = vmul.f32 %v1787_v0, %v1028_v41 }
 0xda5   :  { %v2351_v3 = vrot.slane %v1036_v2, %v2011_v24 }
 0xda7   :  { %v1073_v4 = vmul.f32 %v2351_v3, %v1065_v16 }
 0xda9   :  { %v1077_v5 = vsub.f32 %v1028_v41, %v1073_v4 }
 0xdab   :  { %v1080_v6 = vsel %vm1079_vm8, %v1077_v5, 0.0 }
 0xdac   :  { %v1081_v11 = vsel %vm293_vm0, %v1080_v6, 0.0 }
 0xdad   :  { %1082 = vadd.xlane.f32.xlu0 %v1081_v11 }
 0xdea   :  { %v1001_v12 = vpop.xlane.xlu0 %1000 }
 0xdeb   :  { %v1025_v14 = vmul.f32 %v2329_v30, %v1001_v12 }
 0xded   :  { %v1029_v22 = vsub.f32 %v980_v20, %v1025_v14 }
 0xdee   :  { %v899_v18 = vpop.xlane.xlu0 %898 }
 0xdef   :  { %v925_v26 = vmul.f32 %v2296_v47, %v899_v18  ;;  %v897_v45 = vpop.xlane.xlu1 %896  ;;  %v1042_v21 = vsel %vm1030_vm15, %v1029_v22, 0.0 }
 0xdf0   :  { %v924_v55 = vmul.f32 %v2296_v47, %v897_v45  ;;  %1049 = vadd.xlane.f32.xlu1 %v1042_v21 }
 0xdf1   :  { %v929_v23 = vsub.f32 %v880_v19, %v925_v26 }
 0xdf2   :  { %v928_v27 = vsub.f32 %v879_v13, %v924_v55 }
 0xdf3   :  { %v942_v28 = vsel %vm932_vm12, %v929_v23, 0.0 }
 0xdf4   :  { %947 = vadd.xlane.f32.xlu0 %v942_v28  ;;  %v941_v29 = vsel %vm932_vm12, %v928_v27, 0.0  ;;  %vm1128_vm12 = vcmp.eq.s32.totalorder %v1930_v8, 21 }
 0xdf5   :  { %945 = vadd.xlane.f32.xlu1 %v941_v29 }
 0xdf9   :  { %1096 = vadd.xlane.f32.xlu1 %v1080_v6 }
 0xe36   :  { %v1083_v32 = vpop.xlane.xlu0 %1082 }
 0xe37   :  { %1788 = vrcp.f32 %v1083_v32 }
 0xe44   :  { %v1789_v52 = vpop.eup %1788 }
 0xe45   :  { %v1085_v41 = vmul.f32 %v1789_v52, %v1077_v5 }
 0xe47   :  { %v2377_v46 = vrot.slane %v1085_v41, %v2038_v51 }
 0xe79   :  { %v1050_v33 = vpop.xlane.xlu1 %1049 }
 0xe7a   :  { %v1074_v34 = vmul.f32 %v2351_v3, %v1050_v33 }
 0xe7c   :  { %v1078_v35 = vsub.f32 %v1029_v22, %v1074_v34 }
 0xe7d   :  { %v948_v47 = vpop.xlane.xlu0 %947 }
 0xe7e   :  { %v974_v38 = vmul.f32 %v2312_v17, %v948_v47  ;;  %v946_v39 = vpop.xlane.xlu1 %945  ;;  %v1091_v40 = vsel %vm1079_vm8, %v1078_v35, 0.0 }
 0xe7f   :  { %v973_v50 = vmul.f32 %v2312_v17, %v946_v39  ;;  %1098 = vadd.xlane.f32.xlu0 %v1091_v40 }
 0xe80   :  { %v978_v9 = vsub.f32 %v929_v23, %v974_v38 }
 0xe81   :  { %v977_v42 = vsub.f32 %v928_v27, %v973_v50 }
 0xe82   :  { %v1097_v44 = vpop.xlane.xlu1 %1096  ;;  %v991_v7 = vsel %vm981_vm4, %v978_v9, 0.0 }
 0xe83   :  { %v1114_v56 = vsub.f32 %v1097_v44, %v1726_v60  ;;  %996 = vadd.xlane.f32.xlu0 %v991_v7  ;;  %v990_v48 = vsel %vm981_vm4, %v977_v42, 0.0  ;;  %vm1151_vm4 = vcmp.eq.s32.totalorder %v1981_v53, 21 }
 0xe84   :  { %994 = vadd.xlane.f32.xlu1 %v990_v48  ;;  %v1727_v11 = vsel %vm1151_vm4, 1.0, %v1893_v25  ;;  %vm1422_vm4 = vcmp.eq.s32.totalorder %v1930_v8, 27 }
 0xe85   :  { %v1122_v17 = vmul.f32 %v2377_v46, %v1114_v56 }
 0xe87   :  { %v1126_v20 = vsub.f32 %v1077_v5, %v1122_v17 }
 0xe89   :  { %v1129_v49 = vsel %vm1128_vm12, %v1126_v20, 0.0 }
 0xe8a   :  { %1145 = vadd.xlane.f32.xlu0 %v1129_v49  ;;  %v1130_v58 = vsel %vm343_vm7, %v1129_v49, 0.0 }
 0xe8b   :  { %1131 = vadd.xlane.f32.xlu1 %v1130_v58 }
 0xf08   :  { %v1099_v19 = vpop.xlane.xlu0 %1098 }
 0xf09   :  { %v1123_v57 = vmul.f32 %v2377_v46, %v1099_v19 }
 0xf0b   :  { %v1127_v13 = vsub.f32 %v1078_v35, %v1123_v57 }
 0xf0c   :  { %v997_v62 = vpop.xlane.xlu0 %996 }
 0xf0d   :  { %v1023_v63 = vmul.f32 %v2329_v30, %v997_v62  ;;  %v995_v59 = vpop.xlane.xlu1 %994  ;;  %v1140_v0 = vsel %vm1128_vm12, %v1127_v13, 0.0 }
 0xf0e   :  { %v1022_v1 = vmul.f32 %v2329_v30, %v995_v59  ;;  %1147 = vadd.xlane.f32.xlu1 %v1140_v0 }
 0xf0f   :  { %v1027_v15 = vsub.f32 %v978_v9, %v1023_v63 }
 0xf10   :  { %v1026_v2 = vsub.f32 %v977_v42, %v1022_v1 }
 0xf11   :  { %v1040_v16 = vsel %vm1030_vm15, %v1027_v15, 0.0 }
 0xf12   :  { %1045 = vadd.xlane.f32.xlu1 %v1040_v16  ;;  %v1039_v4 = vsel %vm1030_vm15, %v1026_v2, 0.0  ;;  %vm1200_vm15 = vcmp.eq.s32.totalorder %v1981_v53, 22 }
 0xf13   :  { %1043 = vadd.xlane.f32.xlu0 %v1039_v4  ;;  %v1146_v12 = vpop.xlane.xlu0 %1145  ;;  %v1728_v50 = vsel %vm1200_vm15, 1.0, %v1893_v25  ;;  %vm1520_vm15 = vcmp.eq.s32.totalorder %v1930_v8, 29 }
 0xf14   :  { %v1132_v5 = vpop.xlane.xlu1 %1131  ;;  %v1163_v14 = vsub.f32 %v1146_v12, %v1727_v11 }
 0xf15   :  { %1790 = vrcp.f32 %v1132_v5 }
 0xf22   :  { %v1791_v6 = vpop.eup %1790 }
 0xf23   :  { %v1134_v30 = vmul.f32 %v1791_v6, %v1126_v20 }
 0xf25   :  { %v2398_v22 = vrot.slane %v1134_v30, %v2060_v31 }
 0xf27   :  { %v1171_v18 = vmul.f32 %v2398_v22, %v1163_v14 }
 0xf29   :  { %v1175_v26 = vsub.f32 %v1126_v20, %v1171_v18 }
 0xf2b   :  { %v1178_v45 = vsel %vm1177_vm1, %v1175_v26, 0.0 }
 0xf2c   :  { %1194 = vadd.xlane.f32.xlu1 %v1178_v45  ;;  %v1179_v21 = vsel %vm393_vm11, %v1178_v45, 0.0 }
 0xf2d   :  { %1180 = vadd.xlane.f32.xlu0 %v1179_v21 }
 0xf97   :  { %v1148_v55 = vpop.xlane.xlu1 %1147 }
 0xf98   :  { %v1172_v23 = vmul.f32 %v2398_v22, %v1148_v55 }
 0xf9a   :  { %v1176_v27 = vsub.f32 %v1127_v13, %v1172_v23 }
 0xf9b   :  { %v1046_v28 = vpop.xlane.xlu1 %1045 }
 0xf9c   :  { %v1072_v29 = vmul.f32 %v2351_v3, %v1046_v28  ;;  %v1044_v32 = vpop.xlane.xlu0 %1043  ;;  %v1189_v33 = vsel %vm1177_vm1, %v1176_v27, 0.0 }
 0xf9d   :  { %v1071_v34 = vmul.f32 %v2351_v3, %v1044_v32  ;;  %1196 = vadd.xlane.f32.xlu0 %v1189_v33 }
 0xf9e   :  { %v1076_v52 = vsub.f32 %v1027_v15, %v1072_v29 }
 0xf9f   :  { %v1075_v35 = vsub.f32 %v1026_v2, %v1071_v34 }
 0xfa0   :  { %v1089_v47 = vsel %vm1079_vm8, %v1076_v52, 0.0 }
 0xfa1   :  { %1094 = vadd.xlane.f32.xlu0 %v1089_v47  ;;  %v1088_v38 = vsel %vm1079_vm8, %v1075_v35, 0.0  ;;  %vm1324_vm8 = vcmp.eq.s32.totalorder %v1930_v8, 25 }
 0xfa2   :  { %1092 = vadd.xlane.f32.xlu1 %v1088_v38 }
 0xfb5   :  { %v1195_v41 = vpop.xlane.xlu1 %1194 }
 0xfb6   :  { %v1181_v39 = vpop.xlane.xlu0 %1180  ;;  %v1212_v9 = vsub.f32 %v1195_v41, %v1728_v50 }
 0xfb7   :  { %1792 = vrcp.f32 %v1181_v39 }
 0xfc4   :  { %v1793_v40 = vpop.eup %1792 }
 0xfc5   :  { %v1183_v3 = vmul.f32 %v1793_v40, %v1175_v26 }
 0xfc7   :  { %v1217_v60 = vrot.slane %v1183_v3, %v2082_v43 }
 0xfc9   :  { %v1220_v42 = vmul.f32 %v1217_v60, %v1212_v9 }
 0xfcb   :  { %v2418_v44 = vsub.f32 %v1175_v26, %v1220_v42  ;;  %v1729_v42 = vsel %vm1249_vm10, 1.0, %v1893_v25 }
 0xfcd   :  { %v1227_v7 = vsel %vm1226_vm5, %v2418_v44, 0.0 }
 0xfce   :  { %v1228_v56 = vsel %vm443_vm2, %v1227_v7, 0.0 }
 0xfcf   :  { %1229 = vadd.xlane.f32.xlu1 %v1228_v56 }
0x1026   :  { %v1197_v48 = vpop.xlane.xlu0 %1196 }
0x1027   :  { %v1221_v17 = vmul.f32 %v1217_v60, %v1197_v48 }
0x1029   :  { %v1225_v20 = vsub.f32 %v1176_v27, %v1221_v17 }
0x102a   :  { %v1095_v49 = vpop.xlane.xlu0 %1094 }
0x102b   :  { %v1121_v58 = vmul.f32 %v2377_v46, %v1095_v49  ;;  %v1093_v19 = vpop.xlane.xlu1 %1092  ;;  %v1238_v57 = vsel %vm1226_vm5, %v1225_v20, 0.0 }
0x102c   :  { %v1120_v13 = vmul.f32 %v2377_v46, %v1093_v19  ;;  %1245 = vadd.xlane.f32.xlu0 %v1238_v57 }
0x102d   :  { %v1125_v62 = vsub.f32 %v1076_v52, %v1121_v58 }
0x102e   :  { %v1124_v63 = vsub.f32 %v1075_v35, %v1120_v13 }
0x102f   :  { %v1138_v59 = vsel %vm1128_vm12, %v1125_v62, 0.0 }
0x1030   :  { %1143 = vadd.xlane.f32.xlu0 %v1138_v59  ;;  %v1137_v0 = vsel %vm1128_vm12, %v1124_v63, 0.0  ;;  %vm1373_vm12 = vcmp.eq.s32.totalorder %v1930_v8, 26 }
0x1031   :  { %1141 = vadd.xlane.f32.xlu1 %v1137_v0 }
0x1058   :  { %v1230_v1 = vpop.xlane.xlu1 %1229 }
0x1059   :  { %1794 = vrcp.f32 %v1230_v1 }
0x1066   :  { %v1795_v15 = vpop.eup %1794 }
0x1067   :  { %v1232_v2 = vmul.f32 %v1795_v15, %v2418_v44 }
0x1069   :  { %v1266_v16 = vrot.slane %v1232_v2, %v2110_v61 }
0x10b5   :  { %v1246_v4 = vpop.xlane.xlu0 %1245 }
0x10b6   :  { %v1270_v46 = vmul.f32 %v1266_v16, %v1246_v4 }
0x10b8   :  { %v1274_v5 = vsub.f32 %v1225_v20, %v1270_v46 }
0x10b9   :  { %v1144_v6 = vpop.xlane.xlu0 %1143 }
0x10ba   :  { %v1170_v11 = vmul.f32 %v2398_v22, %v1144_v6  ;;  %v1142_v12 = vpop.xlane.xlu1 %1141  ;;  %v1276_v30 = vsel %vm1275_vm14, %v1274_v5, 0.0 }
0x10bb   :  { %v1169_v14 = vmul.f32 %v2398_v22, %v1142_v12  ;;  %v1277_v18 = vsel %vm93_vm3, %v1276_v30, 0.0  ;;  %vm1299_vm3 = vcmp.eq.s32.totalorder %v2023_v36, 24 }
0x10bc   :  { %v1174_v26 = vsub.f32 %v1125_v62, %v1170_v11  ;;  %1278 = vadd.xlane.f32.xlu1 %v1277_v18  ;;  %v1730_v47 = vsel %vm1299_vm3, 1.0, %v1893_v25  ;;  %vm1675_vm3 = vcmp.lt.s32.totalorder %v1930_v8, 1 }
0x10bd   :  { %v1173_v45 = vsub.f32 %v1124_v63, %v1169_v14 }
0x10be   :  { %v1187_v21 = vsel %vm1177_vm1, %v1174_v26, 0.0 }
0x10bf   :  { %v1186_v55 = vsel %vm1177_vm1, %v1173_v45, 0.0  ;;  %vm1471_vm1 = vcmp.eq.s32.totalorder %v1930_v8, 28 }
0x10c0   :  { %1190 = vadd.xlane.f32.xlu0 %v1186_v55  ;;  %1192 = vadd.xlane.f32.xlu1 %v1187_v21 }
0x10c4   :  { %1294 = vadd.xlane.f32.xlu0 %v1276_v30  ;;  %1243 = vadd.xlane.f32.xlu1 %v1227_v7 }
0x1145   :  { %v1279_v23 = vpop.xlane.xlu1 %1278 }
0x1146   :  { %1796 = vrcp.f32 %v1279_v23 }
0x1149   :  { %v1193_v27 = vpop.xlane.xlu1 %1192  ;;  %v1191_v28 = vpop.xlane.xlu0 %1190 }
0x114a   :  { %v1219_v22 = vmul.f32 %v1217_v60, %v1193_v27  ;;  %v1218_v29 = vmul.f32 %v1217_v60, %v1191_v28 }
0x114c   :  { %v1223_v32 = vsub.f32 %v1174_v26, %v1219_v22  ;;  %v1222_v33 = vsub.f32 %v1173_v45, %v1218_v29 }
0x114d   :  { %v1295_v38 = vpop.xlane.xlu0 %1294  ;;  %v1244_v7 = vpop.xlane.xlu1 %1243 }
0x114e   :  { %v1236_v34 = vsel %vm1226_vm5, %v1223_v32, 0.0  ;;  %v1235_v52 = vsel %vm1226_vm5, %v1222_v33, 0.0  ;;  %v1311_v50 = vsub.f32 %v1295_v38, %v1730_v47  ;;  %v1261_v56 = vsub.f32 %v1244_v7, %v1729_v42 }
0x114f   :  { %1241 = vadd.xlane.f32.xlu1 %v1236_v34  ;;  %1239 = vadd.xlane.f32.xlu0 %v1235_v52  ;;  %vm1569_vm5 = vcmp.eq.s32.totalorder %v1930_v8, 30 }
0x1150   :  { %v1269_v17 = vmul.f32 %v1266_v16, %v1261_v56 }
0x1152   :  { %v1273_v62 = vsub.f32 %v2418_v44, %v1269_v17 }
0x1153   :  { %v1797_v35 = vpop.eup %1796 }
0x1154   :  { %v1281_v39 = vmul.f32 %v1797_v35, %v1274_v5  ;;  %v1286_v53 = vsel %vm1275_vm14, %v1273_v62, 0.0 }
0x1156   :  { %v1315_v40 = vrot.slane %v1281_v39, %v1933_v10 }
0x1158   :  { %v1319_v41 = vmul.f32 %v1315_v40, %v1311_v50 }
0x115a   :  { %v1323_v3 = vsub.f32 %v1274_v5, %v1319_v41 }
0x115c   :  { %v1325_v9 = vsel %vm1324_vm8, %v1323_v3, 0.0 }
0x115d   :  { %1343 = vadd.xlane.f32.xlu1 %v1325_v9  ;;  %v1326_v60 = vsel %vm143_vm6, %v1325_v9, 0.0  ;;  %vm1348_vm6 = vcmp.eq.s32.totalorder %v2023_v36, 25 }
0x115e   :  { %1327 = vadd.xlane.f32.xlu0 %v1326_v60  ;;  %v1731_v0 = vsel %vm1348_vm6, 1.0, %v1893_v25 }
0x11d8   :  { %v1242_v48 = vpop.xlane.xlu1 %1241  ;;  %v1240_v10 = vpop.xlane.xlu0 %1239 }
0x11d9   :  { %v1268_v20 = vmul.f32 %v1266_v16, %v1242_v48  ;;  %v1267_v49 = vmul.f32 %v1266_v16, %v1240_v10 }
0x11db   :  { %v1272_v58 = vsub.f32 %v1223_v32, %v1268_v20  ;;  %v1271_v19 = vsub.f32 %v1222_v33, %v1267_v49 }
0x11dd   :  { %v1285_v57 = vsel %vm1275_vm14, %v1272_v58, 0.0  ;;  %v1284_v13 = vsel %vm1275_vm14, %v1271_v19, 0.0  ;;  %vm1618_vm14 = vcmp.eq.s32.totalorder %v1930_v8, 31 }
0x11de   :  { %1290 = vadd.xlane.f32.xlu1 %v1285_v57  ;;  %1288 = vadd.xlane.f32.xlu0 %v1284_v13 }
0x11e2   :  { %1292 = vadd.xlane.f32.xlu0 %v1286_v53 }
0x11e6   :  { %v1344_v1 = vpop.xlane.xlu1 %1343 }
0x11e7   :  { %v1328_v63 = vpop.xlane.xlu0 %1327  ;;  %v1360_v2 = vsub.f32 %v1344_v1, %v1731_v0 }
0x11e8   :  { %1798 = vrcp.f32 %v1328_v63 }
0x11f5   :  { %v1799_v59 = vpop.eup %1798 }
0x11f6   :  { %v1330_v15 = vmul.f32 %v1799_v59, %v1323_v3 }
0x11f8   :  { %v1364_v16 = vrot.slane %v1330_v15, %v1965_v37 }
0x11fa   :  { %v1368_v4 = vmul.f32 %v1364_v16, %v1360_v2 }
0x11fc   :  { %v1372_v44 = vsub.f32 %v1323_v3, %v1368_v4 }
0x11fe   :  { %v1374_v46 = vsel %vm1373_vm12, %v1372_v44, 0.0 }
0x11ff   :  { %1392 = vadd.xlane.f32.xlu0 %v1374_v46  ;;  %v1375_v5 = vsel %vm193_vm9, %v1374_v46, 0.0  ;;  %vm1397_vm9 = vcmp.eq.s32.totalorder %v2023_v36, 26 }
0x1200   :  { %1376 = vadd.xlane.f32.xlu1 %v1375_v5  ;;  %v1732_v22 = vsel %vm1397_vm9, 1.0, %v1893_v25 }
0x1267   :  { %v1291_v6 = vpop.xlane.xlu1 %1290  ;;  %v1289_v11 = vpop.xlane.xlu0 %1288 }
0x1268   :  { %v1317_v12 = vmul.f32 %v1315_v40, %v1291_v6  ;;  %v1316_v30 = vmul.f32 %v1315_v40, %v1289_v11 }
0x126a   :  { %v1321_v14 = vsub.f32 %v1272_v58, %v1317_v12  ;;  %v1320_v18 = vsub.f32 %v1271_v19, %v1316_v30 }
0x126b   :  { %v1293_v26 = vpop.xlane.xlu0 %1292 }
0x126c   :  { %v1318_v45 = vmul.f32 %v1315_v40, %v1293_v26  ;;  %v1334_v37 = vsel %vm1324_vm8, %v1321_v14, 0.0  ;;  %v1333_v21 = vsel %vm1324_vm8, %v1320_v18, 0.0 }
0x126d   :  { %1339 = vadd.xlane.f32.xlu0 %v1334_v37  ;;  %1337 = vadd.xlane.f32.xlu1 %v1333_v21 }
0x126e   :  { %v1322_v55 = vsub.f32 %v1273_v62, %v1318_v45 }
0x1270   :  { %v1335_v23 = vsel %vm1324_vm8, %v1322_v55, 0.0 }
0x1271   :  { %1341 = vadd.xlane.f32.xlu1 %v1335_v23 }
0x1288   :  { %v1393_v29 = vpop.xlane.xlu0 %1392 }
0x1289   :  { %v1377_v27 = vpop.xlane.xlu1 %1376  ;;  %v1409_v33 = vsub.f32 %v1393_v29, %v1732_v22 }
0x128a   :  { %1800 = vrcp.f32 %v1377_v27 }
0x1297   :  { %v1801_v28 = vpop.eup %1800 }
0x1298   :  { %v1379_v32 = vmul.f32 %v1801_v28, %v1372_v44 }
0x129a   :  { %v1413_v34 = vrot.slane %v1379_v32, %v1984_v54 }
0x129c   :  { %v1417_v52 = vmul.f32 %v1413_v34, %v1409_v33 }
0x129e   :  { %v1421_v35 = vsub.f32 %v1372_v44, %v1417_v52 }
0x12a0   :  { %v1423_v47 = vsel %vm1422_vm4, %v1421_v35, 0.0 }
0x12a1   :  { %1441 = vadd.xlane.f32.xlu1 %v1423_v47  ;;  %v1424_v38 = vsel %vm243_vm13, %v1423_v47, 0.0  ;;  %vm1446_vm13 = vcmp.eq.s32.totalorder %v2023_v36, 27 }
0x12a2   :  { %1425 = vadd.xlane.f32.xlu0 %v1424_v38  ;;  %v1733_v49 = vsel %vm1446_vm13, 1.0, %v1893_v25 }
0x12f6   :  { %v1338_v39 = vpop.xlane.xlu1 %1337  ;;  %v1340_v40 = vpop.xlane.xlu0 %1339 }
0x12f7   :  { %v1365_v50 = vmul.f32 %v1364_v16, %v1338_v39  ;;  %v1366_v41 = vmul.f32 %v1364_v16, %v1340_v40 }
0x12f9   :  { %v1369_v3 = vsub.f32 %v1320_v18, %v1365_v50  ;;  %v1370_v9 = vsub.f32 %v1321_v14, %v1366_v41 }
0x12fa   :  { %v1342_v60 = vpop.xlane.xlu1 %1341 }
0x12fb   :  { %v1367_v42 = vmul.f32 %v1364_v16, %v1342_v60  ;;  %v1382_v54 = vsel %vm1373_vm12, %v1369_v3, 0.0  ;;  %v1383_v7 = vsel %vm1373_vm12, %v1370_v9, 0.0 }
0x12fc   :  { %1386 = vadd.xlane.f32.xlu0 %v1382_v54  ;;  %1388 = vadd.xlane.f32.xlu1 %v1383_v7 }
0x12fd   :  { %v1371_v56 = vsub.f32 %v1322_v55, %v1367_v42 }
0x12ff   :  { %v1384_v48 = vsel %vm1373_vm12, %v1371_v56, 0.0 }
0x1300   :  { %1390 = vadd.xlane.f32.xlu0 %v1384_v48 }
0x132a   :  { %v1442_v58 = vpop.xlane.xlu1 %1441 }
0x132b   :  { %v1426_v10 = vpop.xlane.xlu0 %1425  ;;  %v1458_v57 = vsub.f32 %v1442_v58, %v1733_v49 }
0x132c   :  { %1802 = vrcp.f32 %v1426_v10 }
0x1339   :  { %v1803_v17 = vpop.eup %1802 }
0x133a   :  { %v1428_v20 = vmul.f32 %v1803_v17, %v1421_v35 }
0x133c   :  { %v1462_v19 = vrot.slane %v1428_v20, %v2011_v24 }
0x133e   :  { %v1466_v13 = vmul.f32 %v1462_v19, %v1458_v57 }
0x1340   :  { %v1470_v0 = vsub.f32 %v1421_v35, %v1466_v13 }
0x1342   :  { %v1472_v24 = vsel %vm1471_vm1, %v1470_v0, 0.0 }
0x1343   :  { %v1473_v5 = vsel %vm293_vm0, %v1472_v24, 0.0  ;;  %vm1495_vm0 = vcmp.eq.s32.totalorder %v2023_v36, 28 }
0x1344   :  { %v1734_v29 = vsel %vm1495_vm0, 1.0, %v1893_v25 }
0x1385   :  { %v1389_v62 = vpop.xlane.xlu1 %1388  ;;  %v1387_v53 = vpop.xlane.xlu0 %1386 }
0x1386   :  { %v1415_v63 = vmul.f32 %v1413_v34, %v1389_v62  ;;  %v1414_v59 = vmul.f32 %v1413_v34, %v1387_v53 }
0x1388   :  { %v1419_v1 = vsub.f32 %v1370_v9, %v1415_v63  ;;  %v1418_v15 = vsub.f32 %v1369_v3, %v1414_v59 }
0x1389   :  { %v1391_v2 = vpop.xlane.xlu0 %1390 }
0x138a   :  { %v1416_v16 = vmul.f32 %v1413_v34, %v1391_v2  ;;  %v1432_v4 = vsel %vm1422_vm4, %v1419_v1, 0.0  ;;  %v1431_v44 = vsel %vm1422_vm4, %v1418_v15, 0.0 }
0x138b   :  { %1437 = vadd.xlane.f32.xlu0 %v1432_v4  ;;  %1435 = vadd.xlane.f32.xlu1 %v1431_v44 }
0x138c   :  { %v1420_v46 = vsub.f32 %v1371_v56, %v1416_v16 }
0x138e   :  { %v1433_v6 = vsel %vm1422_vm4, %v1420_v46, 0.0 }
0x138f   :  { %1474 = vadd.xlane.f32.xlu0 %v1473_v5  ;;  %1439 = vadd.xlane.f32.xlu1 %v1433_v6 }
0x1393   :  { %1490 = vadd.xlane.f32.xlu1 %v1472_v24 }
0x1414   :  { %v1436_v11 = vpop.xlane.xlu1 %1435  ;;  %v1438_v12 = vpop.xlane.xlu0 %1437 }
0x1415   :  { %v1463_v30 = vmul.f32 %v1462_v19, %v1436_v11  ;;  %v1464_v14 = vmul.f32 %v1462_v19, %v1438_v12 }
0x1417   :  { %v1467_v18 = vsub.f32 %v1418_v15, %v1463_v30  ;;  %v1468_v26 = vsub.f32 %v1419_v1, %v1464_v14 }
0x1418   :  { %v1440_v45 = vpop.xlane.xlu1 %1439  ;;  %v1475_v37 = vpop.xlane.xlu0 %1474 }
0x1419   :  { %v1465_v21 = vmul.f32 %v1462_v19, %v1440_v45  ;;  %1804 = vrcp.f32 %v1475_v37  ;;  %v1480_v55 = vsel %vm1471_vm1, %v1467_v18, 0.0  ;;  %v1481_v23 = vsel %vm1471_vm1, %v1468_v26, 0.0 }
0x141a   :  { %1484 = vadd.xlane.f32.xlu0 %v1480_v55  ;;  %1486 = vadd.xlane.f32.xlu1 %v1481_v23 }
0x141b   :  { %v1469_v27 = vsub.f32 %v1420_v46, %v1465_v21 }
0x141c   :  { %v1491_v32 = vpop.xlane.xlu1 %1490 }
0x141d   :  { %v1482_v28 = vsel %vm1471_vm1, %v1469_v27, 0.0  ;;  %v1507_v34 = vsub.f32 %v1491_v32, %v1734_v29 }
0x141e   :  { %1488 = vadd.xlane.f32.xlu0 %v1482_v28 }
0x1426   :  { %v1805_v22 = vpop.eup %1804 }
0x1427   :  { %v1477_v33 = vmul.f32 %v1805_v22, %v1470_v0 }
0x1429   :  { %v1511_v52 = vrot.slane %v1477_v33, %v2038_v51 }
0x142b   :  { %v1515_v35 = vmul.f32 %v1511_v52, %v1507_v34 }
0x142d   :  { %v1519_v47 = vsub.f32 %v1470_v0, %v1515_v35 }
0x142f   :  { %v1521_v38 = vsel %vm1520_vm15, %v1519_v47, 0.0 }
0x1430   :  { %1539 = vadd.xlane.f32.xlu0 %v1521_v38  ;;  %v1522_v39 = vsel %vm343_vm7, %v1521_v38, 0.0  ;;  %vm1544_vm7 = vcmp.eq.s32.totalorder %v2023_v36, 29 }
0x1431   :  { %1523 = vadd.xlane.f32.xlu1 %v1522_v39  ;;  %v1735_v20 = vsel %vm1544_vm7, 1.0, %v1893_v25 }
0x14a3   :  { %v1487_v40 = vpop.xlane.xlu1 %1486  ;;  %v1485_v50 = vpop.xlane.xlu0 %1484 }
0x14a4   :  { %v1513_v41 = vmul.f32 %v1511_v52, %v1487_v40  ;;  %v1512_v3 = vmul.f32 %v1511_v52, %v1485_v50 }
0x14a6   :  { %v1517_v9 = vsub.f32 %v1468_v26, %v1513_v41  ;;  %v1516_v60 = vsub.f32 %v1467_v18, %v1512_v3 }
0x14a7   :  { %v1489_v42 = vpop.xlane.xlu0 %1488 }
0x14a8   :  { %v1514_v54 = vmul.f32 %v1511_v52, %v1489_v42  ;;  %v1530_v51 = vsel %vm1520_vm15, %v1517_v9, 0.0  ;;  %v1529_v7 = vsel %vm1520_vm15, %v1516_v60, 0.0 }
0x14a9   :  { %1535 = vadd.xlane.f32.xlu0 %v1530_v51  ;;  %1533 = vadd.xlane.f32.xlu1 %v1529_v7 }
0x14aa   :  { %v1518_v56 = vsub.f32 %v1469_v27, %v1514_v54 }
0x14ac   :  { %v1531_v48 = vsel %vm1520_vm15, %v1518_v56, 0.0 }
0x14ad   :  { %1537 = vadd.xlane.f32.xlu1 %v1531_v48 }
0x14b9   :  { %v1540_v49 = vpop.xlane.xlu0 %1539 }
0x14ba   :  { %v1524_v10 = vpop.xlane.xlu1 %1523  ;;  %v1556_v19 = vsub.f32 %v1540_v49, %v1735_v20 }
0x14bb   :  { %1806 = vrcp.f32 %v1524_v10 }
0x14c8   :  { %v1807_v17 = vpop.eup %1806 }
0x14c9   :  { %v1526_v58 = vmul.f32 %v1807_v17, %v1519_v47 }
0x14cb   :  { %v1560_v57 = vrot.slane %v1526_v58, %v2060_v31 }
0x14cd   :  { %v1564_v13 = vmul.f32 %v1560_v57, %v1556_v19 }
0x14cf   :  { %v1568_v62 = vsub.f32 %v1519_v47, %v1564_v13 }
0x14d1   :  { %v1570_v53 = vsel %vm1569_vm5, %v1568_v62, 0.0 }
0x14d2   :  { %1588 = vadd.xlane.f32.xlu1 %v1570_v53  ;;  %v1571_v63 = vsel %vm393_vm11, %v1570_v53, 0.0  ;;  %vm1593_vm11 = vcmp.eq.s32.totalorder %v2023_v36, 30 }
0x14d3   :  { %1572 = vadd.xlane.f32.xlu0 %v1571_v63  ;;  %v1736_v12 = vsel %vm1593_vm11, 1.0, %v1893_v25 }
0x1532   :  { %v1534_v59 = vpop.xlane.xlu1 %1533  ;;  %v1536_v0 = vpop.xlane.xlu0 %1535 }
0x1533   :  { %v1561_v1 = vmul.f32 %v1560_v57, %v1534_v59  ;;  %v1562_v15 = vmul.f32 %v1560_v57, %v1536_v0 }
0x1535   :  { %v1565_v2 = vsub.f32 %v1516_v60, %v1561_v1  ;;  %v1566_v16 = vsub.f32 %v1517_v9, %v1562_v15 }
0x1536   :  { %v1538_v4 = vpop.xlane.xlu1 %1537 }
0x1537   :  { %v1563_v44 = vmul.f32 %v1560_v57, %v1538_v4  ;;  %v1578_v31 = vsel %vm1569_vm5, %v1565_v2, 0.0  ;;  %v1579_v24 = vsel %vm1569_vm5, %v1566_v16, 0.0 }
0x1538   :  { %1582 = vadd.xlane.f32.xlu0 %v1578_v31  ;;  %1584 = vadd.xlane.f32.xlu1 %v1579_v24 }
0x1539   :  { %v1567_v46 = vsub.f32 %v1518_v56, %v1563_v44 }
0x153b   :  { %v1580_v5 = vsel %vm1569_vm5, %v1567_v46, 0.0 }
0x153c   :  { %1586 = vadd.xlane.f32.xlu0 %v1580_v5 }
0x155b   :  { %v1589_v30 = vpop.xlane.xlu1 %1588 }
0x155c   :  { %v1573_v6 = vpop.xlane.xlu0 %1572  ;;  %v1605_v18 = vsub.f32 %v1589_v30, %v1736_v12 }
0x155d   :  { %1808 = vrcp.f32 %v1573_v6 }
0x156a   :  { %v1809_v11 = vpop.eup %1808 }
0x156b   :  { %v1575_v14 = vmul.f32 %v1809_v11, %v1568_v62 }
0x156d   :  { %v1609_v26 = vrot.slane %v1575_v14, %v2082_v43 }
0x156f   :  { %v1613_v45 = vmul.f32 %v1609_v26, %v1605_v18 }
0x1571   :  { %v1617_v37 = vsub.f32 %v1568_v62, %v1613_v45 }
0x1573   :  { %v1619_v21 = vsel %vm1618_vm14, %v1617_v37, 0.0 }
0x1574   :  { %1637 = vadd.xlane.f32.xlu0 %v1619_v21  ;;  %v1620_v55 = vsel %vm443_vm2, %v1619_v21, 0.0  ;;  %vm1642_vm2 = vcmp.eq.s32.totalorder %v2023_v36, 31 }
0x1575   :  { %1621 = vadd.xlane.f32.xlu1 %v1620_v55  ;;  %v1737_v54 = vsel %vm1642_vm2, 1.0, %v1893_v25 }
0x15c1   :  { %v1585_v23 = vpop.xlane.xlu1 %1584  ;;  %v1583_v27 = vpop.xlane.xlu0 %1582 }
0x15c2   :  { %v1611_v28 = vmul.f32 %v1609_v26, %v1585_v23  ;;  %v1610_v22 = vmul.f32 %v1609_v26, %v1583_v27 }
0x15c4   :  { %v1615_v29 = vsub.f32 %v1566_v16, %v1611_v28  ;;  %v1614_v32 = vsub.f32 %v1565_v2, %v1610_v22 }
0x15c5   :  { %v1587_v33 = vpop.xlane.xlu0 %1586 }
0x15c6   :  { %v1612_v34 = vmul.f32 %v1609_v26, %v1587_v33  ;;  %v1628_v43 = vsel %vm1618_vm14, %v1615_v29, 0.0  ;;  %v1627_v52 = vsel %vm1618_vm14, %v1614_v32, 0.0 }
0x15c7   :  { %1633 = vadd.xlane.f32.xlu0 %v1628_v43  ;;  %1631 = vadd.xlane.f32.xlu1 %v1627_v52 }
0x15c8   :  { %v1616_v35 = vsub.f32 %v1567_v46, %v1612_v34 }
0x15ca   :  { %v1629_v47 = vsel %vm1618_vm14, %v1616_v35, 0.0 }
0x15cb   :  { %1635 = vadd.xlane.f32.xlu1 %v1629_v47 }
0x15fd   :  { %v1638_v50 = vpop.xlane.xlu0 %1637 }
0x15fe   :  { %v1622_v38 = vpop.xlane.xlu1 %1621  ;;  %v1654_v48 = vsub.f32 %v1638_v50, %v1737_v54 }
0x15ff   :  { %1810 = vrcp.f32 %v1622_v38 }
0x160c   :  { %v1811_v39 = vpop.eup %1810 }
0x160d   :  { %v1624_v40 = vmul.f32 %v1811_v39, %v1617_v37 }
0x160f   :  { %v1658_v41 = vrot.slane %v1624_v40, %v2110_v61 }
0x1611   :  { %v1662_v20 = vmul.f32 %v1658_v41, %v1654_v48 }
0x1613   :  { %v1666_v36 = vsub.f32 %v1617_v37, %v1662_v20 }
0x1650   :  { %v1632_v3 = vpop.xlane.xlu1 %1631  ;;  %v1634_v9 = vpop.xlane.xlu0 %1633 }
0x1651   :  { %v1659_v60 = vmul.f32 %v1658_v41, %v1632_v3  ;;  %v1660_v42 = vmul.f32 %v1658_v41, %v1634_v9 }
0x1653   :  { %v1663_v51 = vsub.f32 %v1614_v32, %v1659_v60  ;;  %v1664_v7 = vsub.f32 %v1615_v29, %v1660_v42 }
0x1654   :  { %v1636_v56 = vpop.xlane.xlu1 %1635 }
0x1655   :  { %v1661_v10 = vmul.f32 %v1658_v41, %v1636_v56  ;;  %1667 = vrot.lane.b32.xlu0 %v1663_v51, %s1894_s2  ;;  %1669 = vrot.lane.b32.xlu1 %v1664_v7, %s1894_s2 }
0x1657   :  { %v1665_v17 = vsub.f32 %v1616_v35, %v1661_v10 }
0x1659   :  { %1671 = vrot.lane.b32.xlu1 %v1665_v17, %s1894_s2 }
0x165d   :  { %1673 = vrot.lane.b32.xlu1 %v1666_v36, %s1894_s2 }
0x16c7   :  { %v1670_v61 = vpop.permute.xlu1 %1669  ;;  %v1668_v49 = vpop.permute.xlu0 %1667 }
0x16c8   :  { %v1679_v58 = vsel %vm1675_vm3, %v1670_v61, 0.0  ;;  %v1678_v19 = vsel %vm1675_vm3, %v1668_v49, 0.0 }
0x16c9   :  { %1683 = vst [vmem:[#allocation9 + $0x8] sm:$0xff] %v1679_v58  ;;  %1682 = vst [vmem:[#allocation9] sm:$0xff] %v1678_v19 }
0x16cb   :  { %v1672_v25 = vpop.permute.xlu1 %1671 }
0x16cc   :  { %v1680_v57 = vsel %vm1675_vm3, %v1672_v25, 0.0 }
0x16cd   :  { %1684 = vst [vmem:[#allocation9 + $0x10] sm:$0xff] %v1680_v57 }
0x16cf   :  { %v1674_v13 = vpop.permute.xlu1 %1673 }
0x16d0   :  { %v1681_v62 = vsel %vm1675_vm3, %v1674_v13, 0.0 }
0x16d1   :  { %1685 = vst [vmem:[#allocation9 + $0x18] sm:$0xff] %v1681_v62 }
0x16d2   :  { %1871 = shalt.err (!%p1868_p0)
}
0x16d3   :  { %1697 = dma.vmem_to_hbm [thread:$0]  %s1692_s29, 512, %s2561_s3, [#allocation4], %s1891_s0, %s1891_s0, %s1892_s23  }
0x16d4   :  { %1886 = dma.done.wait [#allocation4], 512  }
0x16d5   :  { %1887 = vsyncadd [#allocation4], 4294966784 }
0x16d6   :  { %1701 = vsyncpa [#allocation3], 1 }
0x16d7   :  { %1702 = vsyncpa [#allocation8], 1 }
0x16d8   :  { %1703 = vsyncpa [#allocation4], 1 }
0x16d9   :  { %1704 = vsyncpa [#allocation5], 1 }

</bundles_post_ra>
